<compile_context>
chip_gen: v7x
topology: tpu7x:2x2x1
jax: 0.10.0
libtpu: 0.0.40
codegen_flags: <defaults>
</compile_context>

<pallas_src>
import numpy as np
import jax
import jax.numpy as jnp
from jax.experimental import pallas as pl
from jax.experimental.pallas import tpu as pltpu


# ----------------------------- kernel helpers ------------------------------

def _layernorm(x, w, b, eps=1e-5):
    mu = jnp.mean(x, axis=-1, keepdims=True)
    xc = x - mu
    var = jnp.mean(xc * xc, axis=-1, keepdims=True)
    return xc * jax.lax.rsqrt(var + eps) * w + b


def _recip(x):
    # Softmax denominator on the (otherwise idle) EUP slot when available.
    if hasattr(pl, "reciprocal"):
        return pl.reciprocal(x, approx=True)
    return 1.0 / x


# ------------------------------ fused kernel --------------------------------

def fused_kernel(x_ref, clsp_ref, post_ref,
                 wq_ref, wk_ref, wv_ref, bq_ref, bk_ref, bv_ref,
                 wo_ref, bo_ref,
                 ln1w_ref, ln1b_ref, w1_ref, b1_ref, w2_ref, b2_ref,
                 ln2w_ref, ln2b_ref,
                 hlnw_ref, hlnb_ref, fc1w_ref, fc1b_ref, fc2w_ref, fc2b_ref,
                 out_ref):
    B, S, D = x_ref.shape
    S1 = S + 1
    L, H = wq_ref.shape[0], wq_ref.shape[1]
    dh = wq_ref.shape[3]
    scale = 1.0 / (dh ** 0.5)
    f32 = jnp.float32
    bf16 = jnp.bfloat16

    # ---- CLS prepend + positional encoding: per-batch (S1, D) blocks -------
    # (cls_token + pos[0] already folded on the host into clsp_ref)
    cls_row = clsp_ref[...]                               # (1, D) f32
    pos_tok = post_ref[...]                               # (S, D) f32
    xs = [jnp.concatenate([cls_row, x_ref[b] + pos_tok], axis=0)
          for b in range(B)]                              # B x (S1, D) f32

    # ---------------------------- encoder layers ----------------------------
    for l in range(L):
        wo_l = wo_ref[l]                                  # (D, D) bf16
        new_xs = []
        for b in range(B):
            xb = xs[b]                                    # (S1, D) f32
            xb_bf = xb.astype(bf16)                       # cast once per (l, b)

            # Per-head attention with leading-axis weight indexing.
            heads = []
            for h in range(H):
                qh = jnp.dot(xb_bf, wq_ref[l, h],
                             preferred_element_type=f32) + bq_ref[l, h]
                kh = jnp.dot(xb_bf, wk_ref[l, h],
                             preferred_element_type=f32) + bk_ref[l, h]
                vh = jnp.dot(xb_bf, wv_ref[l, h],
                             preferred_element_type=f32) + bv_ref[l, h]
                # q @ k^T via dot_general (no materialized transpose).
                s = jax.lax.dot_general(
                    qh.astype(bf16), kh.astype(bf16),
                    dimension_numbers=(((1,), (1,)), ((), ())),
                    preferred_element_type=f32) * scale   # (S1, S1) f32
                s = s - jnp.max(s, axis=-1, keepdims=True)
                p = jnp.exp(s)
                p = p * _recip(jnp.sum(p, axis=-1, keepdims=True))
                heads.append(jnp.dot(p.astype(bf16), vh.astype(bf16),
                                     preferred_element_type=f32))  # (S1, dh)

            # Single contraction-32 output projection per batch.
            hcat = jnp.concatenate(heads, axis=-1).astype(bf16)    # (S1, D)
            attn = jnp.dot(hcat, wo_l,
                           preferred_element_type=f32) + bo_ref[l]  # (S1, D)

            # Post-norm residual blocks (torch norm_first=False), ReLU FFN.
            x1 = _layernorm(xb + attn, ln1w_ref[l], ln1b_ref[l])
            h1 = jnp.maximum(
                jnp.dot(x1.astype(bf16), w1_ref[l],
                        preferred_element_type=f32) + b1_ref[l], 0.0)
            ff = jnp.dot(h1.astype(bf16), w2_ref[l],
                         preferred_element_type=f32) + b2_ref[l]
            new_xs.append(_layernorm(x1 + ff, ln2w_ref[l], ln2b_ref[l]))
        xs = new_xs

    # --------------- final LayerNorm + MLP head on the CLS rows -------------
    cls_out = jnp.concatenate([xs[b][0:1, :] for b in range(B)], axis=0)  # (B, D)
    cn = _layernorm(cls_out, hlnw_ref[...], hlnb_ref[...])
    hh = jnp.maximum(
        jnp.dot(cn.astype(bf16), fc1w_ref[...],
                preferred_element_type=f32) + fc1b_ref[...], 0.0)
    logits = jnp.dot(hh.astype(bf16), fc2w_ref[...],
                     preferred_element_type=f32) + fc2b_ref[...]
    out_ref[...] = logits.astype(out_ref.dtype)


# ------------------------------ pallas wrapper -------------------------------

def pack_params(params, num_heads):
    """Host-side, one-time weight packing:
       * per-head Q/K/V weights on leading (L, H) axes, pre-transposed,
       * all MXU weights pre-cast to bf16 (biases / LN params stay f32),
       * cls_token + pos[0] folded into one row."""
    lps = params['layers']
    D = params['cls_token'].shape[-1]
    H = num_heads
    dh = D // H
    bf16, f32 = jnp.bfloat16, jnp.float32

    def heads_w(w, off):          # w: (3D, D) fused in_proj (torch layout)
        return jnp.stack([w[off * D + h * dh: off * D + (h + 1) * dh, :].T
                          for h in range(H)])               # (H, D, dh)

    def heads_b(bvec, off):       # bvec: (1, 3D)
        return jnp.stack([bvec[0:1, off * D + h * dh: off * D + (h + 1) * dh]
                          for h in range(H)])               # (H, 1, dh)

    stk = lambda fn: jnp.stack([fn(lp) for lp in lps])
    hp = params['head']
    return dict(
        cls_pos=(params['cls_token'][0] + params['pos'][0, 0:1, :]).astype(f32),
        pos_tok=params['pos'][0, 1:, :].astype(f32),
        wq=stk(lambda lp: heads_w(lp['wqkv'], 0)).astype(bf16),   # (L,H,D,dh)
        wk=stk(lambda lp: heads_w(lp['wqkv'], 1)).astype(bf16),
        wv=stk(lambda lp: heads_w(lp['wqkv'], 2)).astype(bf16),
        bq=stk(lambda lp: heads_b(lp['bqkv'], 0)).astype(f32),    # (L,H,1,dh)
        bk=stk(lambda lp: heads_b(lp['bqkv'], 1)).astype(f32),
        bv=stk(lambda lp: heads_b(lp['bqkv'], 2)).astype(f32),
        wo=stk(lambda lp: lp['wo'].T).astype(bf16),               # (L,D,D)
        bo=stk(lambda lp: lp['bo']).astype(f32),                  # (L,1,D)
        ln1w=stk(lambda lp: lp['ln1w']).astype(f32),
        ln1b=stk(lambda lp: lp['ln1b']).astype(f32),
        w1=stk(lambda lp: lp['w1'].T).astype(bf16),               # (L,D,Hid)
        b1=stk(lambda lp: lp['b1']).astype(f32),
        w2=stk(lambda lp: lp['w2'].T).astype(bf16),               # (L,Hid,D)
        b2=stk(lambda lp: lp['b2']).astype(f32),
        ln2w=stk(lambda lp: lp['ln2w']).astype(f32),
        ln2b=stk(lambda lp: lp['ln2b']).astype(f32),
        hlnw=hp['lnw'].astype(f32), hlnb=hp['lnb'].astype(f32),
        fc1w=hp['fc1w'].T.astype(bf16), fc1b=hp['fc1b'].astype(f32),
        fc2w=hp['fc2w'].T.astype(bf16), fc2b=hp['fc2b'].astype(f32),
    )


def forward(x, packed):
    B, S, D = x.shape
    C = packed['fc2w'].shape[1]
    order = ('cls_pos', 'pos_tok', 'wq', 'wk', 'wv', 'bq', 'bk', 'bv',
             'wo', 'bo', 'ln1w', 'ln1b', 'w1', 'b1', 'w2', 'b2',
             'ln2w', 'ln2b', 'hlnw', 'hlnb', 'fc1w', 'fc1b', 'fc2w', 'fc2b')
    args = (x,) + tuple(packed[k] for k in order)
    vmem = pl.BlockSpec(memory_space=pltpu.MemorySpace.VMEM)
    # Grid-less call: whole (tiny) problem resident in VMEM, no double
    # buffering / pipeline prologue for a single step.
    return pl.pallas_call(
        fused_kernel,
        out_shape=jax.ShapeDtypeStruct((B, C), jnp.float32),
        in_specs=[vmem] * len(args),
        out_specs=vmem,
    )(*args)


# ----------------------------- parameter init --------------------------------

def init_params(key, input_dim, seq_len, hidden_dim, num_classes, num_layers):
    keys = iter(jax.random.split(key, 8 * num_layers + 16))

    def nrm(shape, scale=0.05):
        return (scale * jax.random.normal(next(keys), shape)).astype(jnp.float32)

    params = {
        'cls_token': nrm((1, 1, input_dim)),
        'pos': nrm((1, seq_len + 1, input_dim)),
        'layers': [],
        'head': {
            'lnw': jnp.ones((1, input_dim), jnp.float32),
            'lnb': jnp.zeros((1, input_dim), jnp.float32),
            'fc1w': nrm((hidden_dim, input_dim)),
            'fc1b': nrm((1, hidden_dim)),
            'fc2w': nrm((num_classes, hidden_dim)),
            'fc2b': nrm((1, num_classes)),
        },
    }
    for _ in range(num_layers):
        params['layers'].append(dict(
            wqkv=nrm((3 * input_dim, input_dim)),
            bqkv=nrm((1, 3 * input_dim)),
            wo=nrm((input_dim, input_dim)),
            bo=nrm((1, input_dim)),
            ln1w=jnp.ones((1, input_dim), jnp.float32),
            ln1b=jnp.zeros((1, input_dim), jnp.float32),
            w1=nrm((hidden_dim, input_dim)),
            b1=nrm((1, hidden_dim)),
            w2=nrm((input_dim, hidden_dim)),
            b2=nrm((1, input_dim)),
            ln2w=jnp.ones((1, input_dim), jnp.float32),
            ln2b=jnp.zeros((1, input_dim), jnp.float32),
        ))
    return params


# ------------------------------ plain-JAX reference --------------------------

def _ref_ln(x, w, b, eps=1e-5):
    mu = jnp.mean(x, axis=-1, keepdims=True)
    var = jnp.mean((x - mu) ** 2, axis=-1, keepdims=True)
    return (x - mu) / jnp.sqrt(var + eps) * w + b


def ref_forward(x, params, num_heads):
    B, S, D = x.shape
    H = num_heads
    dh = D // H
    cls = jnp.broadcast_to(params['cls_token'], (B, 1, D))
    x = jnp.concatenate([cls, x], axis=1)
    x = x + params['pos'][:, :x.shape[1], :]
    for lp in params['layers']:
        qkv = x @ lp['wqkv'].T + lp['bqkv'][0]
        q, k, v = jnp.split(qkv, 3, axis=-1)
        sp = lambda t: t.reshape(B, x.shape[1], H, dh).transpose(0, 2, 1, 3)
        q, k, v = sp(q), sp(k), sp(v)
        s = jnp.einsum('bhqd,bhkd->bhqk', q, k) / jnp.sqrt(dh)
        p = jax.nn.softmax(s, axis=-1)
        o = jnp.einsum('bhqk,bhkd->bhqd', p, v).transpose(0, 2, 1, 3)
        o = o.reshape(B, x.shape[1], D) @ lp['wo'].T + lp['bo'][0]
        x1 = _ref_ln(x + o, lp['ln1w'][0], lp['ln1b'][0])
        hmid = jax.nn.relu(x1 @ lp['w1'].T + lp['b1'][0])
        x = _ref_ln(x1 + hmid @ lp['w2'].T + lp['b2'][0],
                    lp['ln2w'][0], lp['ln2b'][0])
    hp = params['head']
    c = _ref_ln(x[:, 0, :], hp['lnw'][0], hp['lnb'][0])
    return jax.nn.relu(c @ hp['fc1w'].T + hp['fc1b'][0]) @ hp['fc2w'].T + hp['fc2b'][0]


# ----------------------------------- main ------------------------------------

if __name__ == "__main__":
    # Small shapes consistent with the module's forward:
    B, seq_len, input_dim = 2, 8, 32
    hidden_dim, num_classes, num_heads, num_layers = 64, 4, 4, 2

    key = jax.random.PRNGKey(0)
    kx, kp = jax.random.split(key)
    x = jax.random.normal(kx, (B, seq_len, input_dim), dtype=jnp.float32)
    params = init_params(kp, input_dim, seq_len, hidden_dim, num_classes,
                         num_layers)
    packed = pack_params(params, num_heads)

    out = jax.block_until_ready(forward(x, packed))
    ref = jax.block_until_ready(ref_forward(x, params, num_heads))
    np.testing.assert_allclose(np.asarray(out), np.asarray(ref),
                               rtol=2e-2, atol=2e-2)

    assert out.shape == (B, num_classes)
    print("KERNEL_OK")
</pallas_src>

<mosaic_0001>
module attributes {stable_mosaic.version = 11 : i64} {
  func.func @fused_kernel(%arg0: memref<2x8x32xf32, #tpu.memory_space<vmem>>, %arg1: memref<1x32xf32, #tpu.memory_space<vmem>>, %arg2: memref<8x32xf32, #tpu.memory_space<vmem>>, %arg3: memref<2x4x32x8xbf16, #tpu.memory_space<vmem>>, %arg4: memref<2x4x32x8xbf16, #tpu.memory_space<vmem>>, %arg5: memref<2x4x32x8xbf16, #tpu.memory_space<vmem>>, %arg6: memref<2x4x1x8xf32, #tpu.memory_space<vmem>>, %arg7: memref<2x4x1x8xf32, #tpu.memory_space<vmem>>, %arg8: memref<2x4x1x8xf32, #tpu.memory_space<vmem>>, %arg9: memref<2x32x32xbf16, #tpu.memory_space<vmem>>, %arg10: memref<2x1x32xf32, #tpu.memory_space<vmem>>, %arg11: memref<2x1x32xf32, #tpu.memory_space<vmem>>, %arg12: memref<2x1x32xf32, #tpu.memory_space<vmem>>, %arg13: memref<2x32x64xbf16, #tpu.memory_space<vmem>>, %arg14: memref<2x1x64xf32, #tpu.memory_space<vmem>>, %arg15: memref<2x64x32xbf16, #tpu.memory_space<vmem>>, %arg16: memref<2x1x32xf32, #tpu.memory_space<vmem>>, %arg17: memref<2x1x32xf32, #tpu.memory_space<vmem>>, %arg18: memref<2x1x32xf32, #tpu.memory_space<vmem>>, %arg19: memref<1x32xf32, #tpu.memory_space<vmem>>, %arg20: memref<1x32xf32, #tpu.memory_space<vmem>>, %arg21: memref<32x64xbf16, #tpu.memory_space<vmem>>, %arg22: memref<1x64xf32, #tpu.memory_space<vmem>>, %arg23: memref<64x4xbf16, #tpu.memory_space<vmem>>, %arg24: memref<1x4xf32, #tpu.memory_space<vmem>>, %arg25: memref<2x4xf32, #tpu.memory_space<vmem>>) attributes {dimension_semantics = [], scalar_prefetch = 0 : i64, scratch_operands = 0 : i64, tpu.core_type = #tpu.core_type<tc>} {
    %c0 = arith.constant 0 : index
    %c0_0 = arith.constant 0 : index
    %0 = vector.load %arg1[%c0, %c0_0] : memref<1x32xf32, #tpu.memory_space<vmem>>, vector<1x32xf32>
    %c0_1 = arith.constant 0 : index
    %c0_2 = arith.constant 0 : index
    %1 = vector.load %arg2[%c0_1, %c0_2] : memref<8x32xf32, #tpu.memory_space<vmem>>, vector<8x32xf32>
    %c0_3 = arith.constant 0 : index
    %c0_4 = arith.constant 0 : index
    %c0_5 = arith.constant 0 : index
    %2 = vector.load %arg0[%c0_3, %c0_4, %c0_5] : memref<2x8x32xf32, #tpu.memory_space<vmem>>, vector<1x8x32xf32>
    %3 = vector.shape_cast %2 : vector<1x8x32xf32> to vector<8x32xf32>
    %4 = arith.addf %3, %1 : vector<8x32xf32>
    %5 = tpu.concatenate %0, %4 in 0 : vector<1x32xf32>, vector<8x32xf32> -> vector<9x32xf32>
    %c1 = arith.constant 1 : index
    %c0_6 = arith.constant 0 : index
    %c0_7 = arith.constant 0 : index
    %6 = vector.load %arg0[%c1, %c0_6, %c0_7] : memref<2x8x32xf32, #tpu.memory_space<vmem>>, vector<1x8x32xf32>
    %7 = vector.shape_cast %6 : vector<1x8x32xf32> to vector<8x32xf32>
    %8 = arith.addf %7, %1 : vector<8x32xf32>
    %9 = tpu.concatenate %0, %8 in 0 : vector<1x32xf32>, vector<8x32xf32> -> vector<9x32xf32>
    %c0_8 = arith.constant 0 : index
    %c0_9 = arith.constant 0 : index
    %c0_10 = arith.constant 0 : index
    %10 = vector.load %arg9[%c0_8, %c0_9, %c0_10] : memref<2x32x32xbf16, #tpu.memory_space<vmem>>, vector<1x32x32xbf16>
    %11 = vector.shape_cast %10 : vector<1x32x32xbf16> to vector<32x32xbf16>
    %12 = arith.truncf %5 : vector<9x32xf32> to vector<9x32xbf16>
    %c0_11 = arith.constant 0 : index
    %c0_12 = arith.constant 0 : index
    %c0_13 = arith.constant 0 : index
    %c0_14 = arith.constant 0 : index
    %13 = vector.load %arg3[%c0_11, %c0_12, %c0_13, %c0_14] : memref<2x4x32x8xbf16, #tpu.memory_space<vmem>>, vector<1x1x32x8xbf16>
    %14 = vector.shape_cast %13 : vector<1x1x32x8xbf16> to vector<32x8xbf16>
    %cst = arith.constant dense<0.000000e+00> : vector<9x8xf32>
    %15 = tpu.matmul %12, %14, %cst {dimension_numbers = #tpu.dot_dimension_numbers<[1], [0], [0], [1], [0, 0, 1, 1], [], []>} : vector<9x32xbf16>, vector<32x8xbf16>, vector<9x8xf32> -> vector<9x8xf32>
    %c0_15 = arith.constant 0 : index
    %c0_16 = arith.constant 0 : index
    %c0_17 = arith.constant 0 : index
    %c0_18 = arith.constant 0 : index
    %16 = vector.load %arg6[%c0_15, %c0_16, %c0_17, %c0_18] : memref<2x4x1x8xf32, #tpu.memory_space<vmem>>, vector<1x1x1x8xf32>
    %17 = vector.shape_cast %16 : vector<1x1x1x8xf32> to vector<1x8xf32>
    %18 = vector.broadcast %17 : vector<1x8xf32> to vector<9x8xf32>
    %19 = arith.addf %15, %18 : vector<9x8xf32>
    %c0_19 = arith.constant 0 : index
    %c0_20 = arith.constant 0 : index
    %c0_21 = arith.constant 0 : index
    %c0_22 = arith.constant 0 : index
    %20 = vector.load %arg4[%c0_19, %c0_20, %c0_21, %c0_22] : memref<2x4x32x8xbf16, #tpu.memory_space<vmem>>, vector<1x1x32x8xbf16>
    %21 = vector.shape_cast %20 : vector<1x1x32x8xbf16> to vector<32x8xbf16>
    %cst_23 = arith.constant dense<0.000000e+00> : vector<9x8xf32>
    %22 = tpu.matmul %12, %21, %cst_23 {dimension_numbers = #tpu.dot_dimension_numbers<[1], [0], [0], [1], [0, 0, 1, 1], [], []>} : vector<9x32xbf16>, vector<32x8xbf16>, vector<9x8xf32> -> vector<9x8xf32>
    %c0_24 = arith.constant 0 : index
    %c0_25 = arith.constant 0 : index
    %c0_26 = arith.constant 0 : index
    %c0_27 = arith.constant 0 : index
    %23 = vector.load %arg7[%c0_24, %c0_25, %c0_26, %c0_27] : memref<2x4x1x8xf32, #tpu.memory_space<vmem>>, vector<1x1x1x8xf32>
    %24 = vector.shape_cast %23 : vector<1x1x1x8xf32> to vector<1x8xf32>
    %25 = vector.broadcast %24 : vector<1x8xf32> to vector<9x8xf32>
    %26 = arith.addf %22, %25 : vector<9x8xf32>
    %c0_28 = arith.constant 0 : index
    %c0_29 = arith.constant 0 : index
    %c0_30 = arith.constant 0 : index
    %c0_31 = arith.constant 0 : index
    %27 = vector.load %arg5[%c0_28, %c0_29, %c0_30, %c0_31] : memref<2x4x32x8xbf16, #tpu.memory_space<vmem>>, vector<1x1x32x8xbf16>
    %28 = vector.shape_cast %27 : vector<1x1x32x8xbf16> to vector<32x8xbf16>
    %cst_32 = arith.constant dense<0.000000e+00> : vector<9x8xf32>
    %29 = tpu.matmul %12, %28, %cst_32 {dimension_numbers = #tpu.dot_dimension_numbers<[1], [0], [0], [1], [0, 0, 1, 1], [], []>} : vector<9x32xbf16>, vector<32x8xbf16>, vector<9x8xf32> -> vector<9x8xf32>
    %c0_33 = arith.constant 0 : index
    %c0_34 = arith.constant 0 : index
    %c0_35 = arith.constant 0 : index
    %c0_36 = arith.constant 0 : index
    %30 = vector.load %arg8[%c0_33, %c0_34, %c0_35, %c0_36] : memref<2x4x1x8xf32, #tpu.memory_space<vmem>>, vector<1x1x1x8xf32>
    %31 = vector.shape_cast %30 : vector<1x1x1x8xf32> to vector<1x8xf32>
    %32 = vector.broadcast %31 : vector<1x8xf32> to vector<9x8xf32>
    %33 = arith.addf %29, %32 : vector<9x8xf32>
    %34 = arith.truncf %19 : vector<9x8xf32> to vector<9x8xbf16>
    %35 = arith.truncf %26 : vector<9x8xf32> to vector<9x8xbf16>
    %cst_37 = arith.constant dense<0.000000e+00> : vector<9x9xf32>
    %36 = tpu.matmul %34, %35, %cst_37 {dimension_numbers = #tpu.dot_dimension_numbers<[1], [1], [0], [0], [0, 0, 1, 0], [], []>} : vector<9x8xbf16>, vector<9x8xbf16>, vector<9x9xf32> -> vector<9x9xf32>
    %cst_38 = arith.constant 0.353553385 : f32
    %37 = vector.broadcast %cst_38 : f32 to vector<9x9xf32>
    %38 = arith.mulf %36, %37 : vector<9x9xf32>
    %cst_39 = arith.constant dense<0xFF800000> : vector<9xf32>
    %39 = vector.multi_reduction <maximumf>, %38, %cst_39 [1] : vector<9x9xf32> to vector<9xf32>
    %40 = vector.shape_cast %39 : vector<9xf32> to vector<9x1xf32>
    %41 = vector.broadcast %40 : vector<9x1xf32> to vector<9x9xf32>
    %42 = arith.subf %38, %41 : vector<9x9xf32>
    %43 = math.exp %42 : vector<9x9xf32>
    %cst_40 = arith.constant dense<0.000000e+00> : vector<9xf32>
    %44 = vector.multi_reduction <add>, %43, %cst_40 [1] : vector<9x9xf32> to vector<9xf32>
    %45 = vector.shape_cast %44 : vector<9xf32> to vector<9x1xf32>
    %46 = tpu.reciprocal %45 {approx = true} : vector<9x1xf32> -> vector<9x1xf32>
    %47 = vector.broadcast %46 : vector<9x1xf32> to vector<9x9xf32>
    %48 = arith.mulf %43, %47 : vector<9x9xf32>
    %49 = arith.truncf %48 : vector<9x9xf32> to vector<9x9xbf16>
    %50 = arith.truncf %33 : vector<9x8xf32> to vector<9x8xbf16>
    %cst_41 = arith.constant dense<0.000000e+00> : vector<9x8xf32>
    %51 = tpu.matmul %49, %50, %cst_41 {dimension_numbers = #tpu.dot_dimension_numbers<[1], [0], [0], [1], [0, 0, 1, 1], [], []>} : vector<9x9xbf16>, vector<9x8xbf16>, vector<9x8xf32> -> vector<9x8xf32>
    %c0_42 = arith.constant 0 : index
    %c1_43 = arith.constant 1 : index
    %c0_44 = arith.constant 0 : index
    %c0_45 = arith.constant 0 : index
    %52 = vector.load %arg3[%c0_42, %c1_43, %c0_44, %c0_45] : memref<2x4x32x8xbf16, #tpu.memory_space<vmem>>, vector<1x1x32x8xbf16>
    %53 = vector.shape_cast %52 : vector<1x1x32x8xbf16> to vector<32x8xbf16>
    %cst_46 = arith.constant dense<0.000000e+00> : vector<9x8xf32>
    %54 = tpu.matmul %12, %53, %cst_46 {dimension_numbers = #tpu.dot_dimension_numbers<[1], [0], [0], [1], [0, 0, 1, 1], [], []>} : vector<9x32xbf16>, vector<32x8xbf16>, vector<9x8xf32> -> vector<9x8xf32>
    %c0_47 = arith.constant 0 : index
    %c1_48 = arith.constant 1 : index
    %c0_49 = arith.constant 0 : index
    %c0_50 = arith.constant 0 : index
    %55 = vector.load %arg6[%c0_47, %c1_48, %c0_49, %c0_50] : memref<2x4x1x8xf32, #tpu.memory_space<vmem>>, vector<1x1x1x8xf32>
    %56 = vector.shape_cast %55 : vector<1x1x1x8xf32> to vector<1x8xf32>
    %57 = vector.broadcast %56 : vector<1x8xf32> to vector<9x8xf32>
    %58 = arith.addf %54, %57 : vector<9x8xf32>
    %c0_51 = arith.constant 0 : index
    %c1_52 = arith.constant 1 : index
    %c0_53 = arith.constant 0 : index
    %c0_54 = arith.constant 0 : index
    %59 = vector.load %arg4[%c0_51, %c1_52, %c0_53, %c0_54] : memref<2x4x32x8xbf16, #tpu.memory_space<vmem>>, vector<1x1x32x8xbf16>
    %60 = vector.shape_cast %59 : vector<1x1x32x8xbf16> to vector<32x8xbf16>
    %cst_55 = arith.constant dense<0.000000e+00> : vector<9x8xf32>
    %61 = tpu.matmul %12, %60, %cst_55 {dimension_numbers = #tpu.dot_dimension_numbers<[1], [0], [0], [1], [0, 0, 1, 1], [], []>} : vector<9x32xbf16>, vector<32x8xbf16>, vector<9x8xf32> -> vector<9x8xf32>
    %c0_56 = arith.constant 0 : index
    %c1_57 = arith.constant 1 : index
    %c0_58 = arith.constant 0 : index
    %c0_59 = arith.constant 0 : index
    %62 = vector.load %arg7[%c0_56, %c1_57, %c0_58, %c0_59] : memref<2x4x1x8xf32, #tpu.memory_space<vmem>>, vector<1x1x1x8xf32>
    %63 = vector.shape_cast %62 : vector<1x1x1x8xf32> to vector<1x8xf32>
    %64 = vector.broadcast %63 : vector<1x8xf32> to vector<9x8xf32>
    %65 = arith.addf %61, %64 : vector<9x8xf32>
    %c0_60 = arith.constant 0 : index
    %c1_61 = arith.constant 1 : index
    %c0_62 = arith.constant 0 : index
    %c0_63 = arith.constant 0 : index
    %66 = vector.load %arg5[%c0_60, %c1_61, %c0_62, %c0_63] : memref<2x4x32x8xbf16, #tpu.memory_space<vmem>>, vector<1x1x32x8xbf16>
    %67 = vector.shape_cast %66 : vector<1x1x32x8xbf16> to vector<32x8xbf16>
    %cst_64 = arith.constant dense<0.000000e+00> : vector<9x8xf32>
    %68 = tpu.matmul %12, %67, %cst_64 {dimension_numbers = #tpu.dot_dimension_numbers<[1], [0], [0], [1], [0, 0, 1, 1], [], []>} : vector<9x32xbf16>, vector<32x8xbf16>, vector<9x8xf32> -> vector<9x8xf32>
    %c0_65 = arith.constant 0 : index
    %c1_66 = arith.constant 1 : index
    %c0_67 = arith.constant 0 : index
    %c0_68 = arith.constant 0 : index
    %69 = vector.load %arg8[%c0_65, %c1_66, %c0_67, %c0_68] : memref<2x4x1x8xf32, #tpu.memory_space<vmem>>, vector<1x1x1x8xf32>
    %70 = vector.shape_cast %69 : vector<1x1x1x8xf32> to vector<1x8xf32>
    %71 = vector.broadcast %70 : vector<1x8xf32> to vector<9x8xf32>
    %72 = arith.addf %68, %71 : vector<9x8xf32>
    %73 = arith.truncf %58 : vector<9x8xf32> to vector<9x8xbf16>
    %74 = arith.truncf %65 : vector<9x8xf32> to vector<9x8xbf16>
    %cst_69 = arith.constant dense<0.000000e+00> : vector<9x9xf32>
    %75 = tpu.matmul %73, %74, %cst_69 {dimension_numbers = #tpu.dot_dimension_numbers<[1], [1], [0], [0], [0, 0, 1, 0], [], []>} : vector<9x8xbf16>, vector<9x8xbf16>, vector<9x9xf32> -> vector<9x9xf32>
    %cst_70 = arith.constant 0.353553385 : f32
    %76 = vector.broadcast %cst_70 : f32 to vector<9x9xf32>
    %77 = arith.mulf %75, %76 : vector<9x9xf32>
    %cst_71 = arith.constant dense<0xFF800000> : vector<9xf32>
    %78 = vector.multi_reduction <maximumf>, %77, %cst_71 [1] : vector<9x9xf32> to vector<9xf32>
    %79 = vector.shape_cast %78 : vector<9xf32> to vector<9x1xf32>
    %80 = vector.broadcast %79 : vector<9x1xf32> to vector<9x9xf32>
    %81 = arith.subf %77, %80 : vector<9x9xf32>
    %82 = math.exp %81 : vector<9x9xf32>
    %cst_72 = arith.constant dense<0.000000e+00> : vector<9xf32>
    %83 = vector.multi_reduction <add>, %82, %cst_72 [1] : vector<9x9xf32> to vector<9xf32>
    %84 = vector.shape_cast %83 : vector<9xf32> to vector<9x1xf32>
    %85 = tpu.reciprocal %84 {approx = true} : vector<9x1xf32> -> vector<9x1xf32>
    %86 = vector.broadcast %85 : vector<9x1xf32> to vector<9x9xf32>
    %87 = arith.mulf %82, %86 : vector<9x9xf32>
    %88 = arith.truncf %87 : vector<9x9xf32> to vector<9x9xbf16>
    %89 = arith.truncf %72 : vector<9x8xf32> to vector<9x8xbf16>
    %cst_73 = arith.constant dense<0.000000e+00> : vector<9x8xf32>
    %90 = tpu.matmul %88, %89, %cst_73 {dimension_numbers = #tpu.dot_dimension_numbers<[1], [0], [0], [1], [0, 0, 1, 1], [], []>} : vector<9x9xbf16>, vector<9x8xbf16>, vector<9x8xf32> -> vector<9x8xf32>
    %c0_74 = arith.constant 0 : index
    %c2 = arith.constant 2 : index
    %c0_75 = arith.constant 0 : index
    %c0_76 = arith.constant 0 : index
    %91 = vector.load %arg3[%c0_74, %c2, %c0_75, %c0_76] : memref<2x4x32x8xbf16, #tpu.memory_space<vmem>>, vector<1x1x32x8xbf16>
    %92 = vector.shape_cast %91 : vector<1x1x32x8xbf16> to vector<32x8xbf16>
    %cst_77 = arith.constant dense<0.000000e+00> : vector<9x8xf32>
    %93 = tpu.matmul %12, %92, %cst_77 {dimension_numbers = #tpu.dot_dimension_numbers<[1], [0], [0], [1], [0, 0, 1, 1], [], []>} : vector<9x32xbf16>, vector<32x8xbf16>, vector<9x8xf32> -> vector<9x8xf32>
    %c0_78 = arith.constant 0 : index
    %c2_79 = arith.constant 2 : index
    %c0_80 = arith.constant 0 : index
    %c0_81 = arith.constant 0 : index
    %94 = vector.load %arg6[%c0_78, %c2_79, %c0_80, %c0_81] : memref<2x4x1x8xf32, #tpu.memory_space<vmem>>, vector<1x1x1x8xf32>
    %95 = vector.shape_cast %94 : vector<1x1x1x8xf32> to vector<1x8xf32>
    %96 = vector.broadcast %95 : vector<1x8xf32> to vector<9x8xf32>
    %97 = arith.addf %93, %96 : vector<9x8xf32>
    %c0_82 = arith.constant 0 : index
    %c2_83 = arith.constant 2 : index
    %c0_84 = arith.constant 0 : index
    %c0_85 = arith.constant 0 : index
    %98 = vector.load %arg4[%c0_82, %c2_83, %c0_84, %c0_85] : memref<2x4x32x8xbf16, #tpu.memory_space<vmem>>, vector<1x1x32x8xbf16>
    %99 = vector.shape_cast %98 : vector<1x1x32x8xbf16> to vector<32x8xbf16>
    %cst_86 = arith.constant dense<0.000000e+00> : vector<9x8xf32>
    %100 = tpu.matmul %12, %99, %cst_86 {dimension_numbers = #tpu.dot_dimension_numbers<[1], [0], [0], [1], [0, 0, 1, 1], [], []>} : vector<9x32xbf16>, vector<32x8xbf16>, vector<9x8xf32> -> vector<9x8xf32>
    %c0_87 = arith.constant 0 : index
    %c2_88 = arith.constant 2 : index
    %c0_89 = arith.constant 0 : index
    %c0_90 = arith.constant 0 : index
    %101 = vector.load %arg7[%c0_87, %c2_88, %c0_89, %c0_90] : memref<2x4x1x8xf32, #tpu.memory_space<vmem>>, vector<1x1x1x8xf32>
    %102 = vector.shape_cast %101 : vector<1x1x1x8xf32> to vector<1x8xf32>
    %103 = vector.broadcast %102 : vector<1x8xf32> to vector<9x8xf32>
    %104 = arith.addf %100, %103 : vector<9x8xf32>
    %c0_91 = arith.constant 0 : index
    %c2_92 = arith.constant 2 : index
    %c0_93 = arith.constant 0 : index
    %c0_94 = arith.constant 0 : index
    %105 = vector.load %arg5[%c0_91, %c2_92, %c0_93, %c0_94] : memref<2x4x32x8xbf16, #tpu.memory_space<vmem>>, vector<1x1x32x8xbf16>
    %106 = vector.shape_cast %105 : vector<1x1x32x8xbf16> to vector<32x8xbf16>
    %cst_95 = arith.constant dense<0.000000e+00> : vector<9x8xf32>
    %107 = tpu.matmul %12, %106, %cst_95 {dimension_numbers = #tpu.dot_dimension_numbers<[1], [0], [0], [1], [0, 0, 1, 1], [], []>} : vector<9x32xbf16>, vector<32x8xbf16>, vector<9x8xf32> -> vector<9x8xf32>
    %c0_96 = arith.constant 0 : index
    %c2_97 = arith.constant 2 : index
    %c0_98 = arith.constant 0 : index
    %c0_99 = arith.constant 0 : index
    %108 = vector.load %arg8[%c0_96, %c2_97, %c0_98, %c0_99] : memref<2x4x1x8xf32, #tpu.memory_space<vmem>>, vector<1x1x1x8xf32>
    %109 = vector.shape_cast %108 : vector<1x1x1x8xf32> to vector<1x8xf32>
    %110 = vector.broadcast %109 : vector<1x8xf32> to vector<9x8xf32>
    %111 = arith.addf %107, %110 : vector<9x8xf32>
    %112 = arith.truncf %97 : vector<9x8xf32> to vector<9x8xbf16>
    %113 = arith.truncf %104 : vector<9x8xf32> to vector<9x8xbf16>
    %cst_100 = arith.constant dense<0.000000e+00> : vector<9x9xf32>
    %114 = tpu.matmul %112, %113, %cst_100 {dimension_numbers = #tpu.dot_dimension_numbers<[1], [1], [0], [0], [0, 0, 1, 0], [], []>} : vector<9x8xbf16>, vector<9x8xbf16>, vector<9x9xf32> -> vector<9x9xf32>
    %cst_101 = arith.constant 0.353553385 : f32
    %115 = vector.broadcast %cst_101 : f32 to vector<9x9xf32>
    %116 = arith.mulf %114, %115 : vector<9x9xf32>
    %cst_102 = arith.constant dense<0xFF800000> : vector<9xf32>
    %117 = vector.multi_reduction <maximumf>, %116, %cst_102 [1] : vector<9x9xf32> to vector<9xf32>
    %118 = vector.shape_cast %117 : vector<9xf32> to vector<9x1xf32>
    %119 = vector.broadcast %118 : vector<9x1xf32> to vector<9x9xf32>
    %120 = arith.subf %116, %119 : vector<9x9xf32>
    %121 = math.exp %120 : vector<9x9xf32>
    %cst_103 = arith.constant dense<0.000000e+00> : vector<9xf32>
    %122 = vector.multi_reduction <add>, %121, %cst_103 [1] : vector<9x9xf32> to vector<9xf32>
    %123 = vector.shape_cast %122 : vector<9xf32> to vector<9x1xf32>
    %124 = tpu.reciprocal %123 {approx = true} : vector<9x1xf32> -> vector<9x1xf32>
    %125 = vector.broadcast %124 : vector<9x1xf32> to vector<9x9xf32>
    %126 = arith.mulf %121, %125 : vector<9x9xf32>
    %127 = arith.truncf %126 : vector<9x9xf32> to vector<9x9xbf16>
    %128 = arith.truncf %111 : vector<9x8xf32> to vector<9x8xbf16>
    %cst_104 = arith.constant dense<0.000000e+00> : vector<9x8xf32>
    %129 = tpu.matmul %127, %128, %cst_104 {dimension_numbers = #tpu.dot_dimension_numbers<[1], [0], [0], [1], [0, 0, 1, 1], [], []>} : vector<9x9xbf16>, vector<9x8xbf16>, vector<9x8xf32> -> vector<9x8xf32>
    %c0_105 = arith.constant 0 : index
    %c3 = arith.constant 3 : index
    %c0_106 = arith.constant 0 : index
    %c0_107 = arith.constant 0 : index
    %130 = vector.load %arg3[%c0_105, %c3, %c0_106, %c0_107] : memref<2x4x32x8xbf16, #tpu.memory_space<vmem>>, vector<1x1x32x8xbf16>
    %131 = vector.shape_cast %130 : vector<1x1x32x8xbf16> to vector<32x8xbf16>
    %cst_108 = arith.constant dense<0.000000e+00> : vector<9x8xf32>
    %132 = tpu.matmul %12, %131, %cst_108 {dimension_numbers = #tpu.dot_dimension_numbers<[1], [0], [0], [1], [0, 0, 1, 1], [], []>} : vector<9x32xbf16>, vector<32x8xbf16>, vector<9x8xf32> -> vector<9x8xf32>
    %c0_109 = arith.constant 0 : index
    %c3_110 = arith.constant 3 : index
    %c0_111 = arith.constant 0 : index
    %c0_112 = arith.constant 0 : index
    %133 = vector.load %arg6[%c0_109, %c3_110, %c0_111, %c0_112] : memref<2x4x1x8xf32, #tpu.memory_space<vmem>>, vector<1x1x1x8xf32>
    %134 = vector.shape_cast %133 : vector<1x1x1x8xf32> to vector<1x8xf32>
    %135 = vector.broadcast %134 : vector<1x8xf32> to vector<9x8xf32>
    %136 = arith.addf %132, %135 : vector<9x8xf32>
    %c0_113 = arith.constant 0 : index
    %c3_114 = arith.constant 3 : index
    %c0_115 = arith.constant 0 : index
    %c0_116 = arith.constant 0 : index
    %137 = vector.load %arg4[%c0_113, %c3_114, %c0_115, %c0_116] : memref<2x4x32x8xbf16, #tpu.memory_space<vmem>>, vector<1x1x32x8xbf16>
    %138 = vector.shape_cast %137 : vector<1x1x32x8xbf16> to vector<32x8xbf16>
    %cst_117 = arith.constant dense<0.000000e+00> : vector<9x8xf32>
    %139 = tpu.matmul %12, %138, %cst_117 {dimension_numbers = #tpu.dot_dimension_numbers<[1], [0], [0], [1], [0, 0, 1, 1], [], []>} : vector<9x32xbf16>, vector<32x8xbf16>, vector<9x8xf32> -> vector<9x8xf32>
    %c0_118 = arith.constant 0 : index
    %c3_119 = arith.constant 3 : index
    %c0_120 = arith.constant 0 : index
    %c0_121 = arith.constant 0 : index
    %140 = vector.load %arg7[%c0_118, %c3_119, %c0_120, %c0_121] : memref<2x4x1x8xf32, #tpu.memory_space<vmem>>, vector<1x1x1x8xf32>
    %141 = vector.shape_cast %140 : vector<1x1x1x8xf32> to vector<1x8xf32>
    %142 = vector.broadcast %141 : vector<1x8xf32> to vector<9x8xf32>
    %143 = arith.addf %139, %142 : vector<9x8xf32>
    %c0_122 = arith.constant 0 : index
    %c3_123 = arith.constant 3 : index
    %c0_124 = arith.constant 0 : index
    %c0_125 = arith.constant 0 : index
    %144 = vector.load %arg5[%c0_122, %c3_123, %c0_124, %c0_125] : memref<2x4x32x8xbf16, #tpu.memory_space<vmem>>, vector<1x1x32x8xbf16>
    %145 = vector.shape_cast %144 : vector<1x1x32x8xbf16> to vector<32x8xbf16>
    %cst_126 = arith.constant dense<0.000000e+00> : vector<9x8xf32>
    %146 = tpu.matmul %12, %145, %cst_126 {dimension_numbers = #tpu.dot_dimension_numbers<[1], [0], [0], [1], [0, 0, 1, 1], [], []>} : vector<9x32xbf16>, vector<32x8xbf16>, vector<9x8xf32> -> vector<9x8xf32>
    %c0_127 = arith.constant 0 : index
    %c3_128 = arith.constant 3 : index
    %c0_129 = arith.constant 0 : index
    %c0_130 = arith.constant 0 : index
    %147 = vector.load %arg8[%c0_127, %c3_128, %c0_129, %c0_130] : memref<2x4x1x8xf32, #tpu.memory_space<vmem>>, vector<1x1x1x8xf32>
    %148 = vector.shape_cast %147 : vector<1x1x1x8xf32> to vector<1x8xf32>
    %149 = vector.broadcast %148 : vector<1x8xf32> to vector<9x8xf32>
    %150 = arith.addf %146, %149 : vector<9x8xf32>
    %151 = arith.truncf %136 : vector<9x8xf32> to vector<9x8xbf16>
    %152 = arith.truncf %143 : vector<9x8xf32> to vector<9x8xbf16>
    %cst_131 = arith.constant dense<0.000000e+00> : vector<9x9xf32>
    %153 = tpu.matmul %151, %152, %cst_131 {dimension_numbers = #tpu.dot_dimension_numbers<[1], [1], [0], [0], [0, 0, 1, 0], [], []>} : vector<9x8xbf16>, vector<9x8xbf16>, vector<9x9xf32> -> vector<9x9xf32>
    %cst_132 = arith.constant 0.353553385 : f32
    %154 = vector.broadcast %cst_132 : f32 to vector<9x9xf32>
    %155 = arith.mulf %153, %154 : vector<9x9xf32>
    %cst_133 = arith.constant dense<0xFF800000> : vector<9xf32>
    %156 = vector.multi_reduction <maximumf>, %155, %cst_133 [1] : vector<9x9xf32> to vector<9xf32>
    %157 = vector.shape_cast %156 : vector<9xf32> to vector<9x1xf32>
    %158 = vector.broadcast %157 : vector<9x1xf32> to vector<9x9xf32>
    %159 = arith.subf %155, %158 : vector<9x9xf32>
    %160 = math.exp %159 : vector<9x9xf32>
    %cst_134 = arith.constant dense<0.000000e+00> : vector<9xf32>
    %161 = vector.multi_reduction <add>, %160, %cst_134 [1] : vector<9x9xf32> to vector<9xf32>
    %162 = vector.shape_cast %161 : vector<9xf32> to vector<9x1xf32>
    %163 = tpu.reciprocal %162 {approx = true} : vector<9x1xf32> -> vector<9x1xf32>
    %164 = vector.broadcast %163 : vector<9x1xf32> to vector<9x9xf32>
    %165 = arith.mulf %160, %164 : vector<9x9xf32>
    %166 = arith.truncf %165 : vector<9x9xf32> to vector<9x9xbf16>
    %167 = arith.truncf %150 : vector<9x8xf32> to vector<9x8xbf16>
    %cst_135 = arith.constant dense<0.000000e+00> : vector<9x8xf32>
    %168 = tpu.matmul %166, %167, %cst_135 {dimension_numbers = #tpu.dot_dimension_numbers<[1], [0], [0], [1], [0, 0, 1, 1], [], []>} : vector<9x9xbf16>, vector<9x8xbf16>, vector<9x8xf32> -> vector<9x8xf32>
    %169 = tpu.concatenate %51, %90, %129, %168 in 1 : vector<9x8xf32>, vector<9x8xf32>, vector<9x8xf32>, vector<9x8xf32> -> vector<9x32xf32>
    %170 = arith.truncf %169 : vector<9x32xf32> to vector<9x32xbf16>
    %cst_136 = arith.constant dense<0.000000e+00> : vector<9x32xf32>
    %171 = tpu.matmul %170, %11, %cst_136 {dimension_numbers = #tpu.dot_dimension_numbers<[1], [0], [0], [1], [0, 0, 1, 1], [], []>} : vector<9x32xbf16>, vector<32x32xbf16>, vector<9x32xf32> -> vector<9x32xf32>
    %c0_137 = arith.constant 0 : index
    %c0_138 = arith.constant 0 : index
    %c0_139 = arith.constant 0 : index
    %172 = vector.load %arg10[%c0_137, %c0_138, %c0_139] : memref<2x1x32xf32, #tpu.memory_space<vmem>>, vector<1x1x32xf32>
    %173 = vector.shape_cast %172 : vector<1x1x32xf32> to vector<1x32xf32>
    %174 = vector.broadcast %173 : vector<1x32xf32> to vector<9x32xf32>
    %175 = arith.addf %171, %174 : vector<9x32xf32>
    %176 = arith.addf %5, %175 : vector<9x32xf32>
    %c0_140 = arith.constant 0 : index
    %c0_141 = arith.constant 0 : index
    %c0_142 = arith.constant 0 : index
    %177 = vector.load %arg11[%c0_140, %c0_141, %c0_142] : memref<2x1x32xf32, #tpu.memory_space<vmem>>, vector<1x1x32xf32>
    %178 = vector.shape_cast %177 : vector<1x1x32xf32> to vector<1x32xf32>
    %c0_143 = arith.constant 0 : index
    %c0_144 = arith.constant 0 : index
    %c0_145 = arith.constant 0 : index
    %179 = vector.load %arg12[%c0_143, %c0_144, %c0_145] : memref<2x1x32xf32, #tpu.memory_space<vmem>>, vector<1x1x32xf32>
    %180 = vector.shape_cast %179 : vector<1x1x32xf32> to vector<1x32xf32>
    %cst_146 = arith.constant dense<0.000000e+00> : vector<9xf32>
    %181 = vector.multi_reduction <add>, %176, %cst_146 [1] : vector<9x32xf32> to vector<9xf32>
    %182 = vector.shape_cast %181 : vector<9xf32> to vector<9x1xf32>
    %cst_147 = arith.constant 3.200000e+01 : f32
    %183 = vector.broadcast %cst_147 : f32 to vector<9x1xf32>
    %184 = arith.divf %182, %183 : vector<9x1xf32>
    %185 = vector.broadcast %184 : vector<9x1xf32> to vector<9x32xf32>
    %186 = arith.subf %176, %185 : vector<9x32xf32>
    %187 = arith.mulf %186, %186 : vector<9x32xf32>
    %cst_148 = arith.constant dense<0.000000e+00> : vector<9xf32>
    %188 = vector.multi_reduction <add>, %187, %cst_148 [1] : vector<9x32xf32> to vector<9xf32>
    %189 = vector.shape_cast %188 : vector<9xf32> to vector<9x1xf32>
    %cst_149 = arith.constant 3.200000e+01 : f32
    %190 = vector.broadcast %cst_149 : f32 to vector<9x1xf32>
    %191 = arith.divf %189, %190 : vector<9x1xf32>
    %cst_150 = arith.constant 9.99999974E-6 : f32
    %192 = vector.broadcast %cst_150 : f32 to vector<9x1xf32>
    %193 = arith.addf %191, %192 : vector<9x1xf32>
    %194 = math.rsqrt %193 : vector<9x1xf32>
    %195 = vector.broadcast %194 : vector<9x1xf32> to vector<9x32xf32>
    %196 = arith.mulf %186, %195 : vector<9x32xf32>
    %197 = vector.broadcast %178 : vector<1x32xf32> to vector<9x32xf32>
    %198 = arith.mulf %196, %197 : vector<9x32xf32>
    %199 = vector.broadcast %180 : vector<1x32xf32> to vector<9x32xf32>
    %200 = arith.addf %198, %199 : vector<9x32xf32>
    %201 = arith.truncf %200 : vector<9x32xf32> to vector<9x32xbf16>
    %c0_151 = arith.constant 0 : index
    %c0_152 = arith.constant 0 : index
    %c0_153 = arith.constant 0 : index
    %202 = vector.load %arg13[%c0_151, %c0_152, %c0_153] : memref<2x32x64xbf16, #tpu.memory_space<vmem>>, vector<1x32x64xbf16>
    %203 = vector.shape_cast %202 : vector<1x32x64xbf16> to vector<32x64xbf16>
    %cst_154 = arith.constant dense<0.000000e+00> : vector<9x64xf32>
    %204 = tpu.matmul %201, %203, %cst_154 {dimension_numbers = #tpu.dot_dimension_numbers<[1], [0], [0], [1], [0, 0, 1, 1], [], []>} : vector<9x32xbf16>, vector<32x64xbf16>, vector<9x64xf32> -> vector<9x64xf32>
    %c0_155 = arith.constant 0 : index
    %c0_156 = arith.constant 0 : index
    %c0_157 = arith.constant 0 : index
    %205 = vector.load %arg14[%c0_155, %c0_156, %c0_157] : memref<2x1x64xf32, #tpu.memory_space<vmem>>, vector<1x1x64xf32>
    %206 = vector.shape_cast %205 : vector<1x1x64xf32> to vector<1x64xf32>
    %207 = vector.broadcast %206 : vector<1x64xf32> to vector<9x64xf32>
    %208 = arith.addf %204, %207 : vector<9x64xf32>
    %cst_158 = arith.constant 0.000000e+00 : f32
    %209 = vector.broadcast %cst_158 : f32 to vector<9x64xf32>
    %210 = arith.maximumf %208, %209 : vector<9x64xf32>
    %211 = arith.truncf %210 : vector<9x64xf32> to vector<9x64xbf16>
    %c0_159 = arith.constant 0 : index
    %c0_160 = arith.constant 0 : index
    %c0_161 = arith.constant 0 : index
    %212 = vector.load %arg15[%c0_159, %c0_160, %c0_161] : memref<2x64x32xbf16, #tpu.memory_space<vmem>>, vector<1x64x32xbf16>
    %213 = vector.shape_cast %212 : vector<1x64x32xbf16> to vector<64x32xbf16>
    %cst_162 = arith.constant dense<0.000000e+00> : vector<9x32xf32>
    %214 = tpu.matmul %211, %213, %cst_162 {dimension_numbers = #tpu.dot_dimension_numbers<[1], [0], [0], [1], [0, 0, 1, 1], [], []>} : vector<9x64xbf16>, vector<64x32xbf16>, vector<9x32xf32> -> vector<9x32xf32>
    %c0_163 = arith.constant 0 : index
    %c0_164 = arith.constant 0 : index
    %c0_165 = arith.constant 0 : index
    %215 = vector.load %arg16[%c0_163, %c0_164, %c0_165] : memref<2x1x32xf32, #tpu.memory_space<vmem>>, vector<1x1x32xf32>
    %216 = vector.shape_cast %215 : vector<1x1x32xf32> to vector<1x32xf32>
    %217 = vector.broadcast %216 : vector<1x32xf32> to vector<9x32xf32>
    %218 = arith.addf %214, %217 : vector<9x32xf32>
    %219 = arith.addf %200, %218 : vector<9x32xf32>
    %c0_166 = arith.constant 0 : index
    %c0_167 = arith.constant 0 : index
    %c0_168 = arith.constant 0 : index
    %220 = vector.load %arg17[%c0_166, %c0_167, %c0_168] : memref<2x1x32xf32, #tpu.memory_space<vmem>>, vector<1x1x32xf32>
    %221 = vector.shape_cast %220 : vector<1x1x32xf32> to vector<1x32xf32>
    %c0_169 = arith.constant 0 : index
    %c0_170 = arith.constant 0 : index
    %c0_171 = arith.constant 0 : index
    %222 = vector.load %arg18[%c0_169, %c0_170, %c0_171] : memref<2x1x32xf32, #tpu.memory_space<vmem>>, vector<1x1x32xf32>
    %223 = vector.shape_cast %222 : vector<1x1x32xf32> to vector<1x32xf32>
    %cst_172 = arith.constant dense<0.000000e+00> : vector<9xf32>
    %224 = vector.multi_reduction <add>, %219, %cst_172 [1] : vector<9x32xf32> to vector<9xf32>
    %225 = vector.shape_cast %224 : vector<9xf32> to vector<9x1xf32>
    %cst_173 = arith.constant 3.200000e+01 : f32
    %226 = vector.broadcast %cst_173 : f32 to vector<9x1xf32>
    %227 = arith.divf %225, %226 : vector<9x1xf32>
    %228 = vector.broadcast %227 : vector<9x1xf32> to vector<9x32xf32>
    %229 = arith.subf %219, %228 : vector<9x32xf32>
    %230 = arith.mulf %229, %229 : vector<9x32xf32>
    %cst_174 = arith.constant dense<0.000000e+00> : vector<9xf32>
    %231 = vector.multi_reduction <add>, %230, %cst_174 [1] : vector<9x32xf32> to vector<9xf32>
    %232 = vector.shape_cast %231 : vector<9xf32> to vector<9x1xf32>
    %cst_175 = arith.constant 3.200000e+01 : f32
    %233 = vector.broadcast %cst_175 : f32 to vector<9x1xf32>
    %234 = arith.divf %232, %233 : vector<9x1xf32>
    %cst_176 = arith.constant 9.99999974E-6 : f32
    %235 = vector.broadcast %cst_176 : f32 to vector<9x1xf32>
    %236 = arith.addf %234, %235 : vector<9x1xf32>
    %237 = math.rsqrt %236 : vector<9x1xf32>
    %238 = vector.broadcast %237 : vector<9x1xf32> to vector<9x32xf32>
    %239 = arith.mulf %229, %238 : vector<9x32xf32>
    %240 = vector.broadcast %221 : vector<1x32xf32> to vector<9x32xf32>
    %241 = arith.mulf %239, %240 : vector<9x32xf32>
    %242 = vector.broadcast %223 : vector<1x32xf32> to vector<9x32xf32>
    %243 = arith.addf %241, %242 : vector<9x32xf32>
    %244 = arith.truncf %9 : vector<9x32xf32> to vector<9x32xbf16>
    %c0_177 = arith.constant 0 : index
    %c0_178 = arith.constant 0 : index
    %c0_179 = arith.constant 0 : index
    %c0_180 = arith.constant 0 : index
    %245 = vector.load %arg3[%c0_177, %c0_178, %c0_179, %c0_180] : memref<2x4x32x8xbf16, #tpu.memory_space<vmem>>, vector<1x1x32x8xbf16>
    %246 = vector.shape_cast %245 : vector<1x1x32x8xbf16> to vector<32x8xbf16>
    %cst_181 = arith.constant dense<0.000000e+00> : vector<9x8xf32>
    %247 = tpu.matmul %244, %246, %cst_181 {dimension_numbers = #tpu.dot_dimension_numbers<[1], [0], [0], [1], [0, 0, 1, 1], [], []>} : vector<9x32xbf16>, vector<32x8xbf16>, vector<9x8xf32> -> vector<9x8xf32>
    %c0_182 = arith.constant 0 : index
    %c0_183 = arith.constant 0 : index
    %c0_184 = arith.constant 0 : index
    %c0_185 = arith.constant 0 : index
    %248 = vector.load %arg6[%c0_182, %c0_183, %c0_184, %c0_185] : memref<2x4x1x8xf32, #tpu.memory_space<vmem>>, vector<1x1x1x8xf32>
    %249 = vector.shape_cast %248 : vector<1x1x1x8xf32> to vector<1x8xf32>
    %250 = vector.broadcast %249 : vector<1x8xf32> to vector<9x8xf32>
    %251 = arith.addf %247, %250 : vector<9x8xf32>
    %c0_186 = arith.constant 0 : index
    %c0_187 = arith.constant 0 : index
    %c0_188 = arith.constant 0 : index
    %c0_189 = arith.constant 0 : index
    %252 = vector.load %arg4[%c0_186, %c0_187, %c0_188, %c0_189] : memref<2x4x32x8xbf16, #tpu.memory_space<vmem>>, vector<1x1x32x8xbf16>
    %253 = vector.shape_cast %252 : vector<1x1x32x8xbf16> to vector<32x8xbf16>
    %cst_190 = arith.constant dense<0.000000e+00> : vector<9x8xf32>
    %254 = tpu.matmul %244, %253, %cst_190 {dimension_numbers = #tpu.dot_dimension_numbers<[1], [0], [0], [1], [0, 0, 1, 1], [], []>} : vector<9x32xbf16>, vector<32x8xbf16>, vector<9x8xf32> -> vector<9x8xf32>
    %c0_191 = arith.constant 0 : index
    %c0_192 = arith.constant 0 : index
    %c0_193 = arith.constant 0 : index
    %c0_194 = arith.constant 0 : index
    %255 = vector.load %arg7[%c0_191, %c0_192, %c0_193, %c0_194] : memref<2x4x1x8xf32, #tpu.memory_space<vmem>>, vector<1x1x1x8xf32>
    %256 = vector.shape_cast %255 : vector<1x1x1x8xf32> to vector<1x8xf32>
    %257 = vector.broadcast %256 : vector<1x8xf32> to vector<9x8xf32>
    %258 = arith.addf %254, %257 : vector<9x8xf32>
    %c0_195 = arith.constant 0 : index
    %c0_196 = arith.constant 0 : index
    %c0_197 = arith.constant 0 : index
    %c0_198 = arith.constant 0 : index
    %259 = vector.load %arg5[%c0_195, %c0_196, %c0_197, %c0_198] : memref<2x4x32x8xbf16, #tpu.memory_space<vmem>>, vector<1x1x32x8xbf16>
    %260 = vector.shape_cast %259 : vector<1x1x32x8xbf16> to vector<32x8xbf16>
    %cst_199 = arith.constant dense<0.000000e+00> : vector<9x8xf32>
    %261 = tpu.matmul %244, %260, %cst_199 {dimension_numbers = #tpu.dot_dimension_numbers<[1], [0], [0], [1], [0, 0, 1, 1], [], []>} : vector<9x32xbf16>, vector<32x8xbf16>, vector<9x8xf32> -> vector<9x8xf32>
    %c0_200 = arith.constant 0 : index
    %c0_201 = arith.constant 0 : index
    %c0_202 = arith.constant 0 : index
    %c0_203 = arith.constant 0 : index
    %262 = vector.load %arg8[%c0_200, %c0_201, %c0_202, %c0_203] : memref<2x4x1x8xf32, #tpu.memory_space<vmem>>, vector<1x1x1x8xf32>
    %263 = vector.shape_cast %262 : vector<1x1x1x8xf32> to vector<1x8xf32>
    %264 = vector.broadcast %263 : vector<1x8xf32> to vector<9x8xf32>
    %265 = arith.addf %261, %264 : vector<9x8xf32>
    %266 = arith.truncf %251 : vector<9x8xf32> to vector<9x8xbf16>
    %267 = arith.truncf %258 : vector<9x8xf32> to vector<9x8xbf16>
    %cst_204 = arith.constant dense<0.000000e+00> : vector<9x9xf32>
    %268 = tpu.matmul %266, %267, %cst_204 {dimension_numbers = #tpu.dot_dimension_numbers<[1], [1], [0], [0], [0, 0, 1, 0], [], []>} : vector<9x8xbf16>, vector<9x8xbf16>, vector<9x9xf32> -> vector<9x9xf32>
    %cst_205 = arith.constant 0.353553385 : f32
    %269 = vector.broadcast %cst_205 : f32 to vector<9x9xf32>
    %270 = arith.mulf %268, %269 : vector<9x9xf32>
    %cst_206 = arith.constant dense<0xFF800000> : vector<9xf32>
    %271 = vector.multi_reduction <maximumf>, %270, %cst_206 [1] : vector<9x9xf32> to vector<9xf32>
    %272 = vector.shape_cast %271 : vector<9xf32> to vector<9x1xf32>
    %273 = vector.broadcast %272 : vector<9x1xf32> to vector<9x9xf32>
    %274 = arith.subf %270, %273 : vector<9x9xf32>
    %275 = math.exp %274 : vector<9x9xf32>
    %cst_207 = arith.constant dense<0.000000e+00> : vector<9xf32>
    %276 = vector.multi_reduction <add>, %275, %cst_207 [1] : vector<9x9xf32> to vector<9xf32>
    %277 = vector.shape_cast %276 : vector<9xf32> to vector<9x1xf32>
    %278 = tpu.reciprocal %277 {approx = true} : vector<9x1xf32> -> vector<9x1xf32>
    %279 = vector.broadcast %278 : vector<9x1xf32> to vector<9x9xf32>
    %280 = arith.mulf %275, %279 : vector<9x9xf32>
    %281 = arith.truncf %280 : vector<9x9xf32> to vector<9x9xbf16>
    %282 = arith.truncf %265 : vector<9x8xf32> to vector<9x8xbf16>
    %cst_208 = arith.constant dense<0.000000e+00> : vector<9x8xf32>
    %283 = tpu.matmul %281, %282, %cst_208 {dimension_numbers = #tpu.dot_dimension_numbers<[1], [0], [0], [1], [0, 0, 1, 1], [], []>} : vector<9x9xbf16>, vector<9x8xbf16>, vector<9x8xf32> -> vector<9x8xf32>
    %c0_209 = arith.constant 0 : index
    %c1_210 = arith.constant 1 : index
    %c0_211 = arith.constant 0 : index
    %c0_212 = arith.constant 0 : index
    %284 = vector.load %arg3[%c0_209, %c1_210, %c0_211, %c0_212] : memref<2x4x32x8xbf16, #tpu.memory_space<vmem>>, vector<1x1x32x8xbf16>
    %285 = vector.shape_cast %284 : vector<1x1x32x8xbf16> to vector<32x8xbf16>
    %cst_213 = arith.constant dense<0.000000e+00> : vector<9x8xf32>
    %286 = tpu.matmul %244, %285, %cst_213 {dimension_numbers = #tpu.dot_dimension_numbers<[1], [0], [0], [1], [0, 0, 1, 1], [], []>} : vector<9x32xbf16>, vector<32x8xbf16>, vector<9x8xf32> -> vector<9x8xf32>
    %c0_214 = arith.constant 0 : index
    %c1_215 = arith.constant 1 : index
    %c0_216 = arith.constant 0 : index
    %c0_217 = arith.constant 0 : index
    %287 = vector.load %arg6[%c0_214, %c1_215, %c0_216, %c0_217] : memref<2x4x1x8xf32, #tpu.memory_space<vmem>>, vector<1x1x1x8xf32>
    %288 = vector.shape_cast %287 : vector<1x1x1x8xf32> to vector<1x8xf32>
    %289 = vector.broadcast %288 : vector<1x8xf32> to vector<9x8xf32>
    %290 = arith.addf %286, %289 : vector<9x8xf32>
    %c0_218 = arith.constant 0 : index
    %c1_219 = arith.constant 1 : index
    %c0_220 = arith.constant 0 : index
    %c0_221 = arith.constant 0 : index
    %291 = vector.load %arg4[%c0_218, %c1_219, %c0_220, %c0_221] : memref<2x4x32x8xbf16, #tpu.memory_space<vmem>>, vector<1x1x32x8xbf16>
    %292 = vector.shape_cast %291 : vector<1x1x32x8xbf16> to vector<32x8xbf16>
    %cst_222 = arith.constant dense<0.000000e+00> : vector<9x8xf32>
    %293 = tpu.matmul %244, %292, %cst_222 {dimension_numbers = #tpu.dot_dimension_numbers<[1], [0], [0], [1], [0, 0, 1, 1], [], []>} : vector<9x32xbf16>, vector<32x8xbf16>, vector<9x8xf32> -> vector<9x8xf32>
    %c0_223 = arith.constant 0 : index
    %c1_224 = arith.constant 1 : index
    %c0_225 = arith.constant 0 : index
    %c0_226 = arith.constant 0 : index
    %294 = vector.load %arg7[%c0_223, %c1_224, %c0_225, %c0_226] : memref<2x4x1x8xf32, #tpu.memory_space<vmem>>, vector<1x1x1x8xf32>
    %295 = vector.shape_cast %294 : vector<1x1x1x8xf32> to vector<1x8xf32>
    %296 = vector.broadcast %295 : vector<1x8xf32> to vector<9x8xf32>
    %297 = arith.addf %293, %296 : vector<9x8xf32>
    %c0_227 = arith.constant 0 : index
    %c1_228 = arith.constant 1 : index
    %c0_229 = arith.constant 0 : index
    %c0_230 = arith.constant 0 : index
    %298 = vector.load %arg5[%c0_227, %c1_228, %c0_229, %c0_230] : memref<2x4x32x8xbf16, #tpu.memory_space<vmem>>, vector<1x1x32x8xbf16>
    %299 = vector.shape_cast %298 : vector<1x1x32x8xbf16> to vector<32x8xbf16>
    %cst_231 = arith.constant dense<0.000000e+00> : vector<9x8xf32>
    %300 = tpu.matmul %244, %299, %cst_231 {dimension_numbers = #tpu.dot_dimension_numbers<[1], [0], [0], [1], [0, 0, 1, 1], [], []>} : vector<9x32xbf16>, vector<32x8xbf16>, vector<9x8xf32> -> vector<9x8xf32>
    %c0_232 = arith.constant 0 : index
    %c1_233 = arith.constant 1 : index
    %c0_234 = arith.constant 0 : index
    %c0_235 = arith.constant 0 : index
    %301 = vector.load %arg8[%c0_232, %c1_233, %c0_234, %c0_235] : memref<2x4x1x8xf32, #tpu.memory_space<vmem>>, vector<1x1x1x8xf32>
    %302 = vector.shape_cast %301 : vector<1x1x1x8xf32> to vector<1x8xf32>
    %303 = vector.broadcast %302 : vector<1x8xf32> to vector<9x8xf32>
    %304 = arith.addf %300, %303 : vector<9x8xf32>
    %305 = arith.truncf %290 : vector<9x8xf32> to vector<9x8xbf16>
    %306 = arith.truncf %297 : vector<9x8xf32> to vector<9x8xbf16>
    %cst_236 = arith.constant dense<0.000000e+00> : vector<9x9xf32>
    %307 = tpu.matmul %305, %306, %cst_236 {dimension_numbers = #tpu.dot_dimension_numbers<[1], [1], [0], [0], [0, 0, 1, 0], [], []>} : vector<9x8xbf16>, vector<9x8xbf16>, vector<9x9xf32> -> vector<9x9xf32>
    %cst_237 = arith.constant 0.353553385 : f32
    %308 = vector.broadcast %cst_237 : f32 to vector<9x9xf32>
    %309 = arith.mulf %307, %308 : vector<9x9xf32>
    %cst_238 = arith.constant dense<0xFF800000> : vector<9xf32>
    %310 = vector.multi_reduction <maximumf>, %309, %cst_238 [1] : vector<9x9xf32> to vector<9xf32>
    %311 = vector.shape_cast %310 : vector<9xf32> to vector<9x1xf32>
    %312 = vector.broadcast %311 : vector<9x1xf32> to vector<9x9xf32>
    %313 = arith.subf %309, %312 : vector<9x9xf32>
    %314 = math.exp %313 : vector<9x9xf32>
    %cst_239 = arith.constant dense<0.000000e+00> : vector<9xf32>
    %315 = vector.multi_reduction <add>, %314, %cst_239 [1] : vector<9x9xf32> to vector<9xf32>
    %316 = vector.shape_cast %315 : vector<9xf32> to vector<9x1xf32>
    %317 = tpu.reciprocal %316 {approx = true} : vector<9x1xf32> -> vector<9x1xf32>
    %318 = vector.broadcast %317 : vector<9x1xf32> to vector<9x9xf32>
    %319 = arith.mulf %314, %318 : vector<9x9xf32>
    %320 = arith.truncf %319 : vector<9x9xf32> to vector<9x9xbf16>
    %321 = arith.truncf %304 : vector<9x8xf32> to vector<9x8xbf16>
    %cst_240 = arith.constant dense<0.000000e+00> : vector<9x8xf32>
    %322 = tpu.matmul %320, %321, %cst_240 {dimension_numbers = #tpu.dot_dimension_numbers<[1], [0], [0], [1], [0, 0, 1, 1], [], []>} : vector<9x9xbf16>, vector<9x8xbf16>, vector<9x8xf32> -> vector<9x8xf32>
    %c0_241 = arith.constant 0 : index
    %c2_242 = arith.constant 2 : index
    %c0_243 = arith.constant 0 : index
    %c0_244 = arith.constant 0 : index
    %323 = vector.load %arg3[%c0_241, %c2_242, %c0_243, %c0_244] : memref<2x4x32x8xbf16, #tpu.memory_space<vmem>>, vector<1x1x32x8xbf16>
    %324 = vector.shape_cast %323 : vector<1x1x32x8xbf16> to vector<32x8xbf16>
    %cst_245 = arith.constant dense<0.000000e+00> : vector<9x8xf32>
    %325 = tpu.matmul %244, %324, %cst_245 {dimension_numbers = #tpu.dot_dimension_numbers<[1], [0], [0], [1], [0, 0, 1, 1], [], []>} : vector<9x32xbf16>, vector<32x8xbf16>, vector<9x8xf32> -> vector<9x8xf32>
    %c0_246 = arith.constant 0 : index
    %c2_247 = arith.constant 2 : index
    %c0_248 = arith.constant 0 : index
    %c0_249 = arith.constant 0 : index
    %326 = vector.load %arg6[%c0_246, %c2_247, %c0_248, %c0_249] : memref<2x4x1x8xf32, #tpu.memory_space<vmem>>, vector<1x1x1x8xf32>
    %327 = vector.shape_cast %326 : vector<1x1x1x8xf32> to vector<1x8xf32>
    %328 = vector.broadcast %327 : vector<1x8xf32> to vector<9x8xf32>
    %329 = arith.addf %325, %328 : vector<9x8xf32>
    %c0_250 = arith.constant 0 : index
    %c2_251 = arith.constant 2 : index
    %c0_252 = arith.constant 0 : index
    %c0_253 = arith.constant 0 : index
    %330 = vector.load %arg4[%c0_250, %c2_251, %c0_252, %c0_253] : memref<2x4x32x8xbf16, #tpu.memory_space<vmem>>, vector<1x1x32x8xbf16>
    %331 = vector.shape_cast %330 : vector<1x1x32x8xbf16> to vector<32x8xbf16>
    %cst_254 = arith.constant dense<0.000000e+00> : vector<9x8xf32>
    %332 = tpu.matmul %244, %331, %cst_254 {dimension_numbers = #tpu.dot_dimension_numbers<[1], [0], [0], [1], [0, 0, 1, 1], [], []>} : vector<9x32xbf16>, vector<32x8xbf16>, vector<9x8xf32> -> vector<9x8xf32>
    %c0_255 = arith.constant 0 : index
    %c2_256 = arith.constant 2 : index
    %c0_257 = arith.constant 0 : index
    %c0_258 = arith.constant 0 : index
    %333 = vector.load %arg7[%c0_255, %c2_256, %c0_257, %c0_258] : memref<2x4x1x8xf32, #tpu.memory_space<vmem>>, vector<1x1x1x8xf32>
    %334 = vector.shape_cast %333 : vector<1x1x1x8xf32> to vector<1x8xf32>
    %335 = vector.broadcast %334 : vector<1x8xf32> to vector<9x8xf32>
    %336 = arith.addf %332, %335 : vector<9x8xf32>
    %c0_259 = arith.constant 0 : index
    %c2_260 = arith.constant 2 : index
    %c0_261 = arith.constant 0 : index
    %c0_262 = arith.constant 0 : index
    %337 = vector.load %arg5[%c0_259, %c2_260, %c0_261, %c0_262] : memref<2x4x32x8xbf16, #tpu.memory_space<vmem>>, vector<1x1x32x8xbf16>
    %338 = vector.shape_cast %337 : vector<1x1x32x8xbf16> to vector<32x8xbf16>
    %cst_263 = arith.constant dense<0.000000e+00> : vector<9x8xf32>
    %339 = tpu.matmul %244, %338, %cst_263 {dimension_numbers = #tpu.dot_dimension_numbers<[1], [0], [0], [1], [0, 0, 1, 1], [], []>} : vector<9x32xbf16>, vector<32x8xbf16>, vector<9x8xf32> -> vector<9x8xf32>
    %c0_264 = arith.constant 0 : index
    %c2_265 = arith.constant 2 : index
    %c0_266 = arith.constant 0 : index
    %c0_267 = arith.constant 0 : index
    %340 = vector.load %arg8[%c0_264, %c2_265, %c0_266, %c0_267] : memref<2x4x1x8xf32, #tpu.memory_space<vmem>>, vector<1x1x1x8xf32>
    %341 = vector.shape_cast %340 : vector<1x1x1x8xf32> to vector<1x8xf32>
    %342 = vector.broadcast %341 : vector<1x8xf32> to vector<9x8xf32>
    %343 = arith.addf %339, %342 : vector<9x8xf32>
    %344 = arith.truncf %329 : vector<9x8xf32> to vector<9x8xbf16>
    %345 = arith.truncf %336 : vector<9x8xf32> to vector<9x8xbf16>
    %cst_268 = arith.constant dense<0.000000e+00> : vector<9x9xf32>
    %346 = tpu.matmul %344, %345, %cst_268 {dimension_numbers = #tpu.dot_dimension_numbers<[1], [1], [0], [0], [0, 0, 1, 0], [], []>} : vector<9x8xbf16>, vector<9x8xbf16>, vector<9x9xf32> -> vector<9x9xf32>
    %cst_269 = arith.constant 0.353553385 : f32
    %347 = vector.broadcast %cst_269 : f32 to vector<9x9xf32>
    %348 = arith.mulf %346, %347 : vector<9x9xf32>
    %cst_270 = arith.constant dense<0xFF800000> : vector<9xf32>
    %349 = vector.multi_reduction <maximumf>, %348, %cst_270 [1] : vector<9x9xf32> to vector<9xf32>
    %350 = vector.shape_cast %349 : vector<9xf32> to vector<9x1xf32>
    %351 = vector.broadcast %350 : vector<9x1xf32> to vector<9x9xf32>
    %352 = arith.subf %348, %351 : vector<9x9xf32>
    %353 = math.exp %352 : vector<9x9xf32>
    %cst_271 = arith.constant dense<0.000000e+00> : vector<9xf32>
    %354 = vector.multi_reduction <add>, %353, %cst_271 [1] : vector<9x9xf32> to vector<9xf32>
    %355 = vector.shape_cast %354 : vector<9xf32> to vector<9x1xf32>
    %356 = tpu.reciprocal %355 {approx = true} : vector<9x1xf32> -> vector<9x1xf32>
    %357 = vector.broadcast %356 : vector<9x1xf32> to vector<9x9xf32>
    %358 = arith.mulf %353, %357 : vector<9x9xf32>
    %359 = arith.truncf %358 : vector<9x9xf32> to vector<9x9xbf16>
    %360 = arith.truncf %343 : vector<9x8xf32> to vector<9x8xbf16>
    %cst_272 = arith.constant dense<0.000000e+00> : vector<9x8xf32>
    %361 = tpu.matmul %359, %360, %cst_272 {dimension_numbers = #tpu.dot_dimension_numbers<[1], [0], [0], [1], [0, 0, 1, 1], [], []>} : vector<9x9xbf16>, vector<9x8xbf16>, vector<9x8xf32> -> vector<9x8xf32>
    %c0_273 = arith.constant 0 : index
    %c3_274 = arith.constant 3 : index
    %c0_275 = arith.constant 0 : index
    %c0_276 = arith.constant 0 : index
    %362 = vector.load %arg3[%c0_273, %c3_274, %c0_275, %c0_276] : memref<2x4x32x8xbf16, #tpu.memory_space<vmem>>, vector<1x1x32x8xbf16>
    %363 = vector.shape_cast %362 : vector<1x1x32x8xbf16> to vector<32x8xbf16>
    %cst_277 = arith.constant dense<0.000000e+00> : vector<9x8xf32>
    %364 = tpu.matmul %244, %363, %cst_277 {dimension_numbers = #tpu.dot_dimension_numbers<[1], [0], [0], [1], [0, 0, 1, 1], [], []>} : vector<9x32xbf16>, vector<32x8xbf16>, vector<9x8xf32> -> vector<9x8xf32>
    %c0_278 = arith.constant 0 : index
    %c3_279 = arith.constant 3 : index
    %c0_280 = arith.constant 0 : index
    %c0_281 = arith.constant 0 : index
    %365 = vector.load %arg6[%c0_278, %c3_279, %c0_280, %c0_281] : memref<2x4x1x8xf32, #tpu.memory_space<vmem>>, vector<1x1x1x8xf32>
    %366 = vector.shape_cast %365 : vector<1x1x1x8xf32> to vector<1x8xf32>
    %367 = vector.broadcast %366 : vector<1x8xf32> to vector<9x8xf32>
    %368 = arith.addf %364, %367 : vector<9x8xf32>
    %c0_282 = arith.constant 0 : index
    %c3_283 = arith.constant 3 : index
    %c0_284 = arith.constant 0 : index
    %c0_285 = arith.constant 0 : index
    %369 = vector.load %arg4[%c0_282, %c3_283, %c0_284, %c0_285] : memref<2x4x32x8xbf16, #tpu.memory_space<vmem>>, vector<1x1x32x8xbf16>
    %370 = vector.shape_cast %369 : vector<1x1x32x8xbf16> to vector<32x8xbf16>
    %cst_286 = arith.constant dense<0.000000e+00> : vector<9x8xf32>
    %371 = tpu.matmul %244, %370, %cst_286 {dimension_numbers = #tpu.dot_dimension_numbers<[1], [0], [0], [1], [0, 0, 1, 1], [], []>} : vector<9x32xbf16>, vector<32x8xbf16>, vector<9x8xf32> -> vector<9x8xf32>
    %c0_287 = arith.constant 0 : index
    %c3_288 = arith.constant 3 : index
    %c0_289 = arith.constant 0 : index
    %c0_290 = arith.constant 0 : index
    %372 = vector.load %arg7[%c0_287, %c3_288, %c0_289, %c0_290] : memref<2x4x1x8xf32, #tpu.memory_space<vmem>>, vector<1x1x1x8xf32>
    %373 = vector.shape_cast %372 : vector<1x1x1x8xf32> to vector<1x8xf32>
    %374 = vector.broadcast %373 : vector<1x8xf32> to vector<9x8xf32>
    %375 = arith.addf %371, %374 : vector<9x8xf32>
    %c0_291 = arith.constant 0 : index
    %c3_292 = arith.constant 3 : index
    %c0_293 = arith.constant 0 : index
    %c0_294 = arith.constant 0 : index
    %376 = vector.load %arg5[%c0_291, %c3_292, %c0_293, %c0_294] : memref<2x4x32x8xbf16, #tpu.memory_space<vmem>>, vector<1x1x32x8xbf16>
    %377 = vector.shape_cast %376 : vector<1x1x32x8xbf16> to vector<32x8xbf16>
    %cst_295 = arith.constant dense<0.000000e+00> : vector<9x8xf32>
    %378 = tpu.matmul %244, %377, %cst_295 {dimension_numbers = #tpu.dot_dimension_numbers<[1], [0], [0], [1], [0, 0, 1, 1], [], []>} : vector<9x32xbf16>, vector<32x8xbf16>, vector<9x8xf32> -> vector<9x8xf32>
    %c0_296 = arith.constant 0 : index
    %c3_297 = arith.constant 3 : index
    %c0_298 = arith.constant 0 : index
    %c0_299 = arith.constant 0 : index
    %379 = vector.load %arg8[%c0_296, %c3_297, %c0_298, %c0_299] : memref<2x4x1x8xf32, #tpu.memory_space<vmem>>, vector<1x1x1x8xf32>
    %380 = vector.shape_cast %379 : vector<1x1x1x8xf32> to vector<1x8xf32>
    %381 = vector.broadcast %380 : vector<1x8xf32> to vector<9x8xf32>
    %382 = arith.addf %378, %381 : vector<9x8xf32>
    %383 = arith.truncf %368 : vector<9x8xf32> to vector<9x8xbf16>
    %384 = arith.truncf %375 : vector<9x8xf32> to vector<9x8xbf16>
    %cst_300 = arith.constant dense<0.000000e+00> : vector<9x9xf32>
    %385 = tpu.matmul %383, %384, %cst_300 {dimension_numbers = #tpu.dot_dimension_numbers<[1], [1], [0], [0], [0, 0, 1, 0], [], []>} : vector<9x8xbf16>, vector<9x8xbf16>, vector<9x9xf32> -> vector<9x9xf32>
    %cst_301 = arith.constant 0.353553385 : f32
    %386 = vector.broadcast %cst_301 : f32 to vector<9x9xf32>
    %387 = arith.mulf %385, %386 : vector<9x9xf32>
    %cst_302 = arith.constant dense<0xFF800000> : vector<9xf32>
    %388 = vector.multi_reduction <maximumf>, %387, %cst_302 [1] : vector<9x9xf32> to vector<9xf32>
    %389 = vector.shape_cast %388 : vector<9xf32> to vector<9x1xf32>
    %390 = vector.broadcast %389 : vector<9x1xf32> to vector<9x9xf32>
    %391 = arith.subf %387, %390 : vector<9x9xf32>
    %392 = math.exp %391 : vector<9x9xf32>
    %cst_303 = arith.constant dense<0.000000e+00> : vector<9xf32>
    %393 = vector.multi_reduction <add>, %392, %cst_303 [1] : vector<9x9xf32> to vector<9xf32>
    %394 = vector.shape_cast %393 : vector<9xf32> to vector<9x1xf32>
    %395 = tpu.reciprocal %394 {approx = true} : vector<9x1xf32> -> vector<9x1xf32>
    %396 = vector.broadcast %395 : vector<9x1xf32> to vector<9x9xf32>
    %397 = arith.mulf %392, %396 : vector<9x9xf32>
    %398 = arith.truncf %397 : vector<9x9xf32> to vector<9x9xbf16>
    %399 = arith.truncf %382 : vector<9x8xf32> to vector<9x8xbf16>
    %cst_304 = arith.constant dense<0.000000e+00> : vector<9x8xf32>
    %400 = tpu.matmul %398, %399, %cst_304 {dimension_numbers = #tpu.dot_dimension_numbers<[1], [0], [0], [1], [0, 0, 1, 1], [], []>} : vector<9x9xbf16>, vector<9x8xbf16>, vector<9x8xf32> -> vector<9x8xf32>
    %401 = tpu.concatenate %283, %322, %361, %400 in 1 : vector<9x8xf32>, vector<9x8xf32>, vector<9x8xf32>, vector<9x8xf32> -> vector<9x32xf32>
    %402 = arith.truncf %401 : vector<9x32xf32> to vector<9x32xbf16>
    %cst_305 = arith.constant dense<0.000000e+00> : vector<9x32xf32>
    %403 = tpu.matmul %402, %11, %cst_305 {dimension_numbers = #tpu.dot_dimension_numbers<[1], [0], [0], [1], [0, 0, 1, 1], [], []>} : vector<9x32xbf16>, vector<32x32xbf16>, vector<9x32xf32> -> vector<9x32xf32>
    %c0_306 = arith.constant 0 : index
    %c0_307 = arith.constant 0 : index
    %c0_308 = arith.constant 0 : index
    %404 = vector.load %arg10[%c0_306, %c0_307, %c0_308] : memref<2x1x32xf32, #tpu.memory_space<vmem>>, vector<1x1x32xf32>
    %405 = vector.shape_cast %404 : vector<1x1x32xf32> to vector<1x32xf32>
    %406 = vector.broadcast %405 : vector<1x32xf32> to vector<9x32xf32>
    %407 = arith.addf %403, %406 : vector<9x32xf32>
    %408 = arith.addf %9, %407 : vector<9x32xf32>
    %c0_309 = arith.constant 0 : index
    %c0_310 = arith.constant 0 : index
    %c0_311 = arith.constant 0 : index
    %409 = vector.load %arg11[%c0_309, %c0_310, %c0_311] : memref<2x1x32xf32, #tpu.memory_space<vmem>>, vector<1x1x32xf32>
    %410 = vector.shape_cast %409 : vector<1x1x32xf32> to vector<1x32xf32>
    %c0_312 = arith.constant 0 : index
    %c0_313 = arith.constant 0 : index
    %c0_314 = arith.constant 0 : index
    %411 = vector.load %arg12[%c0_312, %c0_313, %c0_314] : memref<2x1x32xf32, #tpu.memory_space<vmem>>, vector<1x1x32xf32>
    %412 = vector.shape_cast %411 : vector<1x1x32xf32> to vector<1x32xf32>
    %cst_315 = arith.constant dense<0.000000e+00> : vector<9xf32>
    %413 = vector.multi_reduction <add>, %408, %cst_315 [1] : vector<9x32xf32> to vector<9xf32>
    %414 = vector.shape_cast %413 : vector<9xf32> to vector<9x1xf32>
    %cst_316 = arith.constant 3.200000e+01 : f32
    %415 = vector.broadcast %cst_316 : f32 to vector<9x1xf32>
    %416 = arith.divf %414, %415 : vector<9x1xf32>
    %417 = vector.broadcast %416 : vector<9x1xf32> to vector<9x32xf32>
    %418 = arith.subf %408, %417 : vector<9x32xf32>
    %419 = arith.mulf %418, %418 : vector<9x32xf32>
    %cst_317 = arith.constant dense<0.000000e+00> : vector<9xf32>
    %420 = vector.multi_reduction <add>, %419, %cst_317 [1] : vector<9x32xf32> to vector<9xf32>
    %421 = vector.shape_cast %420 : vector<9xf32> to vector<9x1xf32>
    %cst_318 = arith.constant 3.200000e+01 : f32
    %422 = vector.broadcast %cst_318 : f32 to vector<9x1xf32>
    %423 = arith.divf %421, %422 : vector<9x1xf32>
    %cst_319 = arith.constant 9.99999974E-6 : f32
    %424 = vector.broadcast %cst_319 : f32 to vector<9x1xf32>
    %425 = arith.addf %423, %424 : vector<9x1xf32>
    %426 = math.rsqrt %425 : vector<9x1xf32>
    %427 = vector.broadcast %426 : vector<9x1xf32> to vector<9x32xf32>
    %428 = arith.mulf %418, %427 : vector<9x32xf32>
    %429 = vector.broadcast %410 : vector<1x32xf32> to vector<9x32xf32>
    %430 = arith.mulf %428, %429 : vector<9x32xf32>
    %431 = vector.broadcast %412 : vector<1x32xf32> to vector<9x32xf32>
    %432 = arith.addf %430, %431 : vector<9x32xf32>
    %433 = arith.truncf %432 : vector<9x32xf32> to vector<9x32xbf16>
    %c0_320 = arith.constant 0 : index
    %c0_321 = arith.constant 0 : index
    %c0_322 = arith.constant 0 : index
    %434 = vector.load %arg13[%c0_320, %c0_321, %c0_322] : memref<2x32x64xbf16, #tpu.memory_space<vmem>>, vector<1x32x64xbf16>
    %435 = vector.shape_cast %434 : vector<1x32x64xbf16> to vector<32x64xbf16>
    %cst_323 = arith.constant dense<0.000000e+00> : vector<9x64xf32>
    %436 = tpu.matmul %433, %435, %cst_323 {dimension_numbers = #tpu.dot_dimension_numbers<[1], [0], [0], [1], [0, 0, 1, 1], [], []>} : vector<9x32xbf16>, vector<32x64xbf16>, vector<9x64xf32> -> vector<9x64xf32>
    %c0_324 = arith.constant 0 : index
    %c0_325 = arith.constant 0 : index
    %c0_326 = arith.constant 0 : index
    %437 = vector.load %arg14[%c0_324, %c0_325, %c0_326] : memref<2x1x64xf32, #tpu.memory_space<vmem>>, vector<1x1x64xf32>
    %438 = vector.shape_cast %437 : vector<1x1x64xf32> to vector<1x64xf32>
    %439 = vector.broadcast %438 : vector<1x64xf32> to vector<9x64xf32>
    %440 = arith.addf %436, %439 : vector<9x64xf32>
    %cst_327 = arith.constant 0.000000e+00 : f32
    %441 = vector.broadcast %cst_327 : f32 to vector<9x64xf32>
    %442 = arith.maximumf %440, %441 : vector<9x64xf32>
    %443 = arith.truncf %442 : vector<9x64xf32> to vector<9x64xbf16>
    %c0_328 = arith.constant 0 : index
    %c0_329 = arith.constant 0 : index
    %c0_330 = arith.constant 0 : index
    %444 = vector.load %arg15[%c0_328, %c0_329, %c0_330] : memref<2x64x32xbf16, #tpu.memory_space<vmem>>, vector<1x64x32xbf16>
    %445 = vector.shape_cast %444 : vector<1x64x32xbf16> to vector<64x32xbf16>
    %cst_331 = arith.constant dense<0.000000e+00> : vector<9x32xf32>
    %446 = tpu.matmul %443, %445, %cst_331 {dimension_numbers = #tpu.dot_dimension_numbers<[1], [0], [0], [1], [0, 0, 1, 1], [], []>} : vector<9x64xbf16>, vector<64x32xbf16>, vector<9x32xf32> -> vector<9x32xf32>
    %c0_332 = arith.constant 0 : index
    %c0_333 = arith.constant 0 : index
    %c0_334 = arith.constant 0 : index
    %447 = vector.load %arg16[%c0_332, %c0_333, %c0_334] : memref<2x1x32xf32, #tpu.memory_space<vmem>>, vector<1x1x32xf32>
    %448 = vector.shape_cast %447 : vector<1x1x32xf32> to vector<1x32xf32>
    %449 = vector.broadcast %448 : vector<1x32xf32> to vector<9x32xf32>
    %450 = arith.addf %446, %449 : vector<9x32xf32>
    %451 = arith.addf %432, %450 : vector<9x32xf32>
    %c0_335 = arith.constant 0 : index
    %c0_336 = arith.constant 0 : index
    %c0_337 = arith.constant 0 : index
    %452 = vector.load %arg17[%c0_335, %c0_336, %c0_337] : memref<2x1x32xf32, #tpu.memory_space<vmem>>, vector<1x1x32xf32>
    %453 = vector.shape_cast %452 : vector<1x1x32xf32> to vector<1x32xf32>
    %c0_338 = arith.constant 0 : index
    %c0_339 = arith.constant 0 : index
    %c0_340 = arith.constant 0 : index
    %454 = vector.load %arg18[%c0_338, %c0_339, %c0_340] : memref<2x1x32xf32, #tpu.memory_space<vmem>>, vector<1x1x32xf32>
    %455 = vector.shape_cast %454 : vector<1x1x32xf32> to vector<1x32xf32>
    %cst_341 = arith.constant dense<0.000000e+00> : vector<9xf32>
    %456 = vector.multi_reduction <add>, %451, %cst_341 [1] : vector<9x32xf32> to vector<9xf32>
    %457 = vector.shape_cast %456 : vector<9xf32> to vector<9x1xf32>
    %cst_342 = arith.constant 3.200000e+01 : f32
    %458 = vector.broadcast %cst_342 : f32 to vector<9x1xf32>
    %459 = arith.divf %457, %458 : vector<9x1xf32>
    %460 = vector.broadcast %459 : vector<9x1xf32> to vector<9x32xf32>
    %461 = arith.subf %451, %460 : vector<9x32xf32>
    %462 = arith.mulf %461, %461 : vector<9x32xf32>
    %cst_343 = arith.constant dense<0.000000e+00> : vector<9xf32>
    %463 = vector.multi_reduction <add>, %462, %cst_343 [1] : vector<9x32xf32> to vector<9xf32>
    %464 = vector.shape_cast %463 : vector<9xf32> to vector<9x1xf32>
    %cst_344 = arith.constant 3.200000e+01 : f32
    %465 = vector.broadcast %cst_344 : f32 to vector<9x1xf32>
    %466 = arith.divf %464, %465 : vector<9x1xf32>
    %cst_345 = arith.constant 9.99999974E-6 : f32
    %467 = vector.broadcast %cst_345 : f32 to vector<9x1xf32>
    %468 = arith.addf %466, %467 : vector<9x1xf32>
    %469 = math.rsqrt %468 : vector<9x1xf32>
    %470 = vector.broadcast %469 : vector<9x1xf32> to vector<9x32xf32>
    %471 = arith.mulf %461, %470 : vector<9x32xf32>
    %472 = vector.broadcast %453 : vector<1x32xf32> to vector<9x32xf32>
    %473 = arith.mulf %471, %472 : vector<9x32xf32>
    %474 = vector.broadcast %455 : vector<1x32xf32> to vector<9x32xf32>
    %475 = arith.addf %473, %474 : vector<9x32xf32>
    %c1_346 = arith.constant 1 : index
    %c0_347 = arith.constant 0 : index
    %c0_348 = arith.constant 0 : index
    %476 = vector.load %arg9[%c1_346, %c0_347, %c0_348] : memref<2x32x32xbf16, #tpu.memory_space<vmem>>, vector<1x32x32xbf16>
    %477 = vector.shape_cast %476 : vector<1x32x32xbf16> to vector<32x32xbf16>
    %478 = arith.truncf %243 : vector<9x32xf32> to vector<9x32xbf16>
    %c1_349 = arith.constant 1 : index
    %c0_350 = arith.constant 0 : index
    %c0_351 = arith.constant 0 : index
    %c0_352 = arith.constant 0 : index
    %479 = vector.load %arg3[%c1_349, %c0_350, %c0_351, %c0_352] : memref<2x4x32x8xbf16, #tpu.memory_space<vmem>>, vector<1x1x32x8xbf16>
    %480 = vector.shape_cast %479 : vector<1x1x32x8xbf16> to vector<32x8xbf16>
    %cst_353 = arith.constant dense<0.000000e+00> : vector<9x8xf32>
    %481 = tpu.matmul %478, %480, %cst_353 {dimension_numbers = #tpu.dot_dimension_numbers<[1], [0], [0], [1], [0, 0, 1, 1], [], []>} : vector<9x32xbf16>, vector<32x8xbf16>, vector<9x8xf32> -> vector<9x8xf32>
    %c1_354 = arith.constant 1 : index
    %c0_355 = arith.constant 0 : index
    %c0_356 = arith.constant 0 : index
    %c0_357 = arith.constant 0 : index
    %482 = vector.load %arg6[%c1_354, %c0_355, %c0_356, %c0_357] : memref<2x4x1x8xf32, #tpu.memory_space<vmem>>, vector<1x1x1x8xf32>
    %483 = vector.shape_cast %482 : vector<1x1x1x8xf32> to vector<1x8xf32>
    %484 = vector.broadcast %483 : vector<1x8xf32> to vector<9x8xf32>
    %485 = arith.addf %481, %484 : vector<9x8xf32>
    %c1_358 = arith.constant 1 : index
    %c0_359 = arith.constant 0 : index
    %c0_360 = arith.constant 0 : index
    %c0_361 = arith.constant 0 : index
    %486 = vector.load %arg4[%c1_358, %c0_359, %c0_360, %c0_361] : memref<2x4x32x8xbf16, #tpu.memory_space<vmem>>, vector<1x1x32x8xbf16>
    %487 = vector.shape_cast %486 : vector<1x1x32x8xbf16> to vector<32x8xbf16>
    %cst_362 = arith.constant dense<0.000000e+00> : vector<9x8xf32>
    %488 = tpu.matmul %478, %487, %cst_362 {dimension_numbers = #tpu.dot_dimension_numbers<[1], [0], [0], [1], [0, 0, 1, 1], [], []>} : vector<9x32xbf16>, vector<32x8xbf16>, vector<9x8xf32> -> vector<9x8xf32>
    %c1_363 = arith.constant 1 : index
    %c0_364 = arith.constant 0 : index
    %c0_365 = arith.constant 0 : index
    %c0_366 = arith.constant 0 : index
    %489 = vector.load %arg7[%c1_363, %c0_364, %c0_365, %c0_366] : memref<2x4x1x8xf32, #tpu.memory_space<vmem>>, vector<1x1x1x8xf32>
    %490 = vector.shape_cast %489 : vector<1x1x1x8xf32> to vector<1x8xf32>
    %491 = vector.broadcast %490 : vector<1x8xf32> to vector<9x8xf32>
    %492 = arith.addf %488, %491 : vector<9x8xf32>
    %c1_367 = arith.constant 1 : index
    %c0_368 = arith.constant 0 : index
    %c0_369 = arith.constant 0 : index
    %c0_370 = arith.constant 0 : index
    %493 = vector.load %arg5[%c1_367, %c0_368, %c0_369, %c0_370] : memref<2x4x32x8xbf16, #tpu.memory_space<vmem>>, vector<1x1x32x8xbf16>
    %494 = vector.shape_cast %493 : vector<1x1x32x8xbf16> to vector<32x8xbf16>
    %cst_371 = arith.constant dense<0.000000e+00> : vector<9x8xf32>
    %495 = tpu.matmul %478, %494, %cst_371 {dimension_numbers = #tpu.dot_dimension_numbers<[1], [0], [0], [1], [0, 0, 1, 1], [], []>} : vector<9x32xbf16>, vector<32x8xbf16>, vector<9x8xf32> -> vector<9x8xf32>
    %c1_372 = arith.constant 1 : index
    %c0_373 = arith.constant 0 : index
    %c0_374 = arith.constant 0 : index
    %c0_375 = arith.constant 0 : index
    %496 = vector.load %arg8[%c1_372, %c0_373, %c0_374, %c0_375] : memref<2x4x1x8xf32, #tpu.memory_space<vmem>>, vector<1x1x1x8xf32>
    %497 = vector.shape_cast %496 : vector<1x1x1x8xf32> to vector<1x8xf32>
    %498 = vector.broadcast %497 : vector<1x8xf32> to vector<9x8xf32>
    %499 = arith.addf %495, %498 : vector<9x8xf32>
    %500 = arith.truncf %485 : vector<9x8xf32> to vector<9x8xbf16>
    %501 = arith.truncf %492 : vector<9x8xf32> to vector<9x8xbf16>
    %cst_376 = arith.constant dense<0.000000e+00> : vector<9x9xf32>
    %502 = tpu.matmul %500, %501, %cst_376 {dimension_numbers = #tpu.dot_dimension_numbers<[1], [1], [0], [0], [0, 0, 1, 0], [], []>} : vector<9x8xbf16>, vector<9x8xbf16>, vector<9x9xf32> -> vector<9x9xf32>
    %cst_377 = arith.constant 0.353553385 : f32
    %503 = vector.broadcast %cst_377 : f32 to vector<9x9xf32>
    %504 = arith.mulf %502, %503 : vector<9x9xf32>
    %cst_378 = arith.constant dense<0xFF800000> : vector<9xf32>
    %505 = vector.multi_reduction <maximumf>, %504, %cst_378 [1] : vector<9x9xf32> to vector<9xf32>
    %506 = vector.shape_cast %505 : vector<9xf32> to vector<9x1xf32>
    %507 = vector.broadcast %506 : vector<9x1xf32> to vector<9x9xf32>
    %508 = arith.subf %504, %507 : vector<9x9xf32>
    %509 = math.exp %508 : vector<9x9xf32>
    %cst_379 = arith.constant dense<0.000000e+00> : vector<9xf32>
    %510 = vector.multi_reduction <add>, %509, %cst_379 [1] : vector<9x9xf32> to vector<9xf32>
    %511 = vector.shape_cast %510 : vector<9xf32> to vector<9x1xf32>
    %512 = tpu.reciprocal %511 {approx = true} : vector<9x1xf32> -> vector<9x1xf32>
    %513 = vector.broadcast %512 : vector<9x1xf32> to vector<9x9xf32>
    %514 = arith.mulf %509, %513 : vector<9x9xf32>
    %515 = arith.truncf %514 : vector<9x9xf32> to vector<9x9xbf16>
    %516 = arith.truncf %499 : vector<9x8xf32> to vector<9x8xbf16>
    %cst_380 = arith.constant dense<0.000000e+00> : vector<9x8xf32>
    %517 = tpu.matmul %515, %516, %cst_380 {dimension_numbers = #tpu.dot_dimension_numbers<[1], [0], [0], [1], [0, 0, 1, 1], [], []>} : vector<9x9xbf16>, vector<9x8xbf16>, vector<9x8xf32> -> vector<9x8xf32>
    %c1_381 = arith.constant 1 : index
    %c1_382 = arith.constant 1 : index
    %c0_383 = arith.constant 0 : index
    %c0_384 = arith.constant 0 : index
    %518 = vector.load %arg3[%c1_381, %c1_382, %c0_383, %c0_384] : memref<2x4x32x8xbf16, #tpu.memory_space<vmem>>, vector<1x1x32x8xbf16>
    %519 = vector.shape_cast %518 : vector<1x1x32x8xbf16> to vector<32x8xbf16>
    %cst_385 = arith.constant dense<0.000000e+00> : vector<9x8xf32>
    %520 = tpu.matmul %478, %519, %cst_385 {dimension_numbers = #tpu.dot_dimension_numbers<[1], [0], [0], [1], [0, 0, 1, 1], [], []>} : vector<9x32xbf16>, vector<32x8xbf16>, vector<9x8xf32> -> vector<9x8xf32>
    %c1_386 = arith.constant 1 : index
    %c1_387 = arith.constant 1 : index
    %c0_388 = arith.constant 0 : index
    %c0_389 = arith.constant 0 : index
    %521 = vector.load %arg6[%c1_386, %c1_387, %c0_388, %c0_389] : memref<2x4x1x8xf32, #tpu.memory_space<vmem>>, vector<1x1x1x8xf32>
    %522 = vector.shape_cast %521 : vector<1x1x1x8xf32> to vector<1x8xf32>
    %523 = vector.broadcast %522 : vector<1x8xf32> to vector<9x8xf32>
    %524 = arith.addf %520, %523 : vector<9x8xf32>
    %c1_390 = arith.constant 1 : index
    %c1_391 = arith.constant 1 : index
    %c0_392 = arith.constant 0 : index
    %c0_393 = arith.constant 0 : index
    %525 = vector.load %arg4[%c1_390, %c1_391, %c0_392, %c0_393] : memref<2x4x32x8xbf16, #tpu.memory_space<vmem>>, vector<1x1x32x8xbf16>
    %526 = vector.shape_cast %525 : vector<1x1x32x8xbf16> to vector<32x8xbf16>
    %cst_394 = arith.constant dense<0.000000e+00> : vector<9x8xf32>
    %527 = tpu.matmul %478, %526, %cst_394 {dimension_numbers = #tpu.dot_dimension_numbers<[1], [0], [0], [1], [0, 0, 1, 1], [], []>} : vector<9x32xbf16>, vector<32x8xbf16>, vector<9x8xf32> -> vector<9x8xf32>
    %c1_395 = arith.constant 1 : index
    %c1_396 = arith.constant 1 : index
    %c0_397 = arith.constant 0 : index
    %c0_398 = arith.constant 0 : index
    %528 = vector.load %arg7[%c1_395, %c1_396, %c0_397, %c0_398] : memref<2x4x1x8xf32, #tpu.memory_space<vmem>>, vector<1x1x1x8xf32>
    %529 = vector.shape_cast %528 : vector<1x1x1x8xf32> to vector<1x8xf32>
    %530 = vector.broadcast %529 : vector<1x8xf32> to vector<9x8xf32>
    %531 = arith.addf %527, %530 : vector<9x8xf32>
    %c1_399 = arith.constant 1 : index
    %c1_400 = arith.constant 1 : index
    %c0_401 = arith.constant 0 : index
    %c0_402 = arith.constant 0 : index
    %532 = vector.load %arg5[%c1_399, %c1_400, %c0_401, %c0_402] : memref<2x4x32x8xbf16, #tpu.memory_space<vmem>>, vector<1x1x32x8xbf16>
    %533 = vector.shape_cast %532 : vector<1x1x32x8xbf16> to vector<32x8xbf16>
    %cst_403 = arith.constant dense<0.000000e+00> : vector<9x8xf32>
    %534 = tpu.matmul %478, %533, %cst_403 {dimension_numbers = #tpu.dot_dimension_numbers<[1], [0], [0], [1], [0, 0, 1, 1], [], []>} : vector<9x32xbf16>, vector<32x8xbf16>, vector<9x8xf32> -> vector<9x8xf32>
    %c1_404 = arith.constant 1 : index
    %c1_405 = arith.constant 1 : index
    %c0_406 = arith.constant 0 : index
    %c0_407 = arith.constant 0 : index
    %535 = vector.load %arg8[%c1_404, %c1_405, %c0_406, %c0_407] : memref<2x4x1x8xf32, #tpu.memory_space<vmem>>, vector<1x1x1x8xf32>
    %536 = vector.shape_cast %535 : vector<1x1x1x8xf32> to vector<1x8xf32>
    %537 = vector.broadcast %536 : vector<1x8xf32> to vector<9x8xf32>
    %538 = arith.addf %534, %537 : vector<9x8xf32>
    %539 = arith.truncf %524 : vector<9x8xf32> to vector<9x8xbf16>
    %540 = arith.truncf %531 : vector<9x8xf32> to vector<9x8xbf16>
    %cst_408 = arith.constant dense<0.000000e+00> : vector<9x9xf32>
    %541 = tpu.matmul %539, %540, %cst_408 {dimension_numbers = #tpu.dot_dimension_numbers<[1], [1], [0], [0], [0, 0, 1, 0], [], []>} : vector<9x8xbf16>, vector<9x8xbf16>, vector<9x9xf32> -> vector<9x9xf32>
    %cst_409 = arith.constant 0.353553385 : f32
    %542 = vector.broadcast %cst_409 : f32 to vector<9x9xf32>
    %543 = arith.mulf %541, %542 : vector<9x9xf32>
    %cst_410 = arith.constant dense<0xFF800000> : vector<9xf32>
    %544 = vector.multi_reduction <maximumf>, %543, %cst_410 [1] : vector<9x9xf32> to vector<9xf32>
    %545 = vector.shape_cast %544 : vector<9xf32> to vector<9x1xf32>
    %546 = vector.broadcast %545 : vector<9x1xf32> to vector<9x9xf32>
    %547 = arith.subf %543, %546 : vector<9x9xf32>
    %548 = math.exp %547 : vector<9x9xf32>
    %cst_411 = arith.constant dense<0.000000e+00> : vector<9xf32>
    %549 = vector.multi_reduction <add>, %548, %cst_411 [1] : vector<9x9xf32> to vector<9xf32>
    %550 = vector.shape_cast %549 : vector<9xf32> to vector<9x1xf32>
    %551 = tpu.reciprocal %550 {approx = true} : vector<9x1xf32> -> vector<9x1xf32>
    %552 = vector.broadcast %551 : vector<9x1xf32> to vector<9x9xf32>
    %553 = arith.mulf %548, %552 : vector<9x9xf32>
    %554 = arith.truncf %553 : vector<9x9xf32> to vector<9x9xbf16>
    %555 = arith.truncf %538 : vector<9x8xf32> to vector<9x8xbf16>
    %cst_412 = arith.constant dense<0.000000e+00> : vector<9x8xf32>
    %556 = tpu.matmul %554, %555, %cst_412 {dimension_numbers = #tpu.dot_dimension_numbers<[1], [0], [0], [1], [0, 0, 1, 1], [], []>} : vector<9x9xbf16>, vector<9x8xbf16>, vector<9x8xf32> -> vector<9x8xf32>
    %c1_413 = arith.constant 1 : index
    %c2_414 = arith.constant 2 : index
    %c0_415 = arith.constant 0 : index
    %c0_416 = arith.constant 0 : index
    %557 = vector.load %arg3[%c1_413, %c2_414, %c0_415, %c0_416] : memref<2x4x32x8xbf16, #tpu.memory_space<vmem>>, vector<1x1x32x8xbf16>
    %558 = vector.shape_cast %557 : vector<1x1x32x8xbf16> to vector<32x8xbf16>
    %cst_417 = arith.constant dense<0.000000e+00> : vector<9x8xf32>
    %559 = tpu.matmul %478, %558, %cst_417 {dimension_numbers = #tpu.dot_dimension_numbers<[1], [0], [0], [1], [0, 0, 1, 1], [], []>} : vector<9x32xbf16>, vector<32x8xbf16>, vector<9x8xf32> -> vector<9x8xf32>
    %c1_418 = arith.constant 1 : index
    %c2_419 = arith.constant 2 : index
    %c0_420 = arith.constant 0 : index
    %c0_421 = arith.constant 0 : index
    %560 = vector.load %arg6[%c1_418, %c2_419, %c0_420, %c0_421] : memref<2x4x1x8xf32, #tpu.memory_space<vmem>>, vector<1x1x1x8xf32>
    %561 = vector.shape_cast %560 : vector<1x1x1x8xf32> to vector<1x8xf32>
    %562 = vector.broadcast %561 : vector<1x8xf32> to vector<9x8xf32>
    %563 = arith.addf %559, %562 : vector<9x8xf32>
    %c1_422 = arith.constant 1 : index
    %c2_423 = arith.constant 2 : index
    %c0_424 = arith.constant 0 : index
    %c0_425 = arith.constant 0 : index
    %564 = vector.load %arg4[%c1_422, %c2_423, %c0_424, %c0_425] : memref<2x4x32x8xbf16, #tpu.memory_space<vmem>>, vector<1x1x32x8xbf16>
    %565 = vector.shape_cast %564 : vector<1x1x32x8xbf16> to vector<32x8xbf16>
    %cst_426 = arith.constant dense<0.000000e+00> : vector<9x8xf32>
    %566 = tpu.matmul %478, %565, %cst_426 {dimension_numbers = #tpu.dot_dimension_numbers<[1], [0], [0], [1], [0, 0, 1, 1], [], []>} : vector<9x32xbf16>, vector<32x8xbf16>, vector<9x8xf32> -> vector<9x8xf32>
    %c1_427 = arith.constant 1 : index
    %c2_428 = arith.constant 2 : index
    %c0_429 = arith.constant 0 : index
    %c0_430 = arith.constant 0 : index
    %567 = vector.load %arg7[%c1_427, %c2_428, %c0_429, %c0_430] : memref<2x4x1x8xf32, #tpu.memory_space<vmem>>, vector<1x1x1x8xf32>
    %568 = vector.shape_cast %567 : vector<1x1x1x8xf32> to vector<1x8xf32>
    %569 = vector.broadcast %568 : vector<1x8xf32> to vector<9x8xf32>
    %570 = arith.addf %566, %569 : vector<9x8xf32>
    %c1_431 = arith.constant 1 : index
    %c2_432 = arith.constant 2 : index
    %c0_433 = arith.constant 0 : index
    %c0_434 = arith.constant 0 : index
    %571 = vector.load %arg5[%c1_431, %c2_432, %c0_433, %c0_434] : memref<2x4x32x8xbf16, #tpu.memory_space<vmem>>, vector<1x1x32x8xbf16>
    %572 = vector.shape_cast %571 : vector<1x1x32x8xbf16> to vector<32x8xbf16>
    %cst_435 = arith.constant dense<0.000000e+00> : vector<9x8xf32>
    %573 = tpu.matmul %478, %572, %cst_435 {dimension_numbers = #tpu.dot_dimension_numbers<[1], [0], [0], [1], [0, 0, 1, 1], [], []>} : vector<9x32xbf16>, vector<32x8xbf16>, vector<9x8xf32> -> vector<9x8xf32>
    %c1_436 = arith.constant 1 : index
    %c2_437 = arith.constant 2 : index
    %c0_438 = arith.constant 0 : index
    %c0_439 = arith.constant 0 : index
    %574 = vector.load %arg8[%c1_436, %c2_437, %c0_438, %c0_439] : memref<2x4x1x8xf32, #tpu.memory_space<vmem>>, vector<1x1x1x8xf32>
    %575 = vector.shape_cast %574 : vector<1x1x1x8xf32> to vector<1x8xf32>
    %576 = vector.broadcast %575 : vector<1x8xf32> to vector<9x8xf32>
    %577 = arith.addf %573, %576 : vector<9x8xf32>
    %578 = arith.truncf %563 : vector<9x8xf32> to vector<9x8xbf16>
    %579 = arith.truncf %570 : vector<9x8xf32> to vector<9x8xbf16>
    %cst_440 = arith.constant dense<0.000000e+00> : vector<9x9xf32>
    %580 = tpu.matmul %578, %579, %cst_440 {dimension_numbers = #tpu.dot_dimension_numbers<[1], [1], [0], [0], [0, 0, 1, 0], [], []>} : vector<9x8xbf16>, vector<9x8xbf16>, vector<9x9xf32> -> vector<9x9xf32>
    %cst_441 = arith.constant 0.353553385 : f32
    %581 = vector.broadcast %cst_441 : f32 to vector<9x9xf32>
    %582 = arith.mulf %580, %581 : vector<9x9xf32>
    %cst_442 = arith.constant dense<0xFF800000> : vector<9xf32>
    %583 = vector.multi_reduction <maximumf>, %582, %cst_442 [1] : vector<9x9xf32> to vector<9xf32>
    %584 = vector.shape_cast %583 : vector<9xf32> to vector<9x1xf32>
    %585 = vector.broadcast %584 : vector<9x1xf32> to vector<9x9xf32>
    %586 = arith.subf %582, %585 : vector<9x9xf32>
    %587 = math.exp %586 : vector<9x9xf32>
    %cst_443 = arith.constant dense<0.000000e+00> : vector<9xf32>
    %588 = vector.multi_reduction <add>, %587, %cst_443 [1] : vector<9x9xf32> to vector<9xf32>
    %589 = vector.shape_cast %588 : vector<9xf32> to vector<9x1xf32>
    %590 = tpu.reciprocal %589 {approx = true} : vector<9x1xf32> -> vector<9x1xf32>
    %591 = vector.broadcast %590 : vector<9x1xf32> to vector<9x9xf32>
    %592 = arith.mulf %587, %591 : vector<9x9xf32>
    %593 = arith.truncf %592 : vector<9x9xf32> to vector<9x9xbf16>
    %594 = arith.truncf %577 : vector<9x8xf32> to vector<9x8xbf16>
    %cst_444 = arith.constant dense<0.000000e+00> : vector<9x8xf32>
    %595 = tpu.matmul %593, %594, %cst_444 {dimension_numbers = #tpu.dot_dimension_numbers<[1], [0], [0], [1], [0, 0, 1, 1], [], []>} : vector<9x9xbf16>, vector<9x8xbf16>, vector<9x8xf32> -> vector<9x8xf32>
    %c1_445 = arith.constant 1 : index
    %c3_446 = arith.constant 3 : index
    %c0_447 = arith.constant 0 : index
    %c0_448 = arith.constant 0 : index
    %596 = vector.load %arg3[%c1_445, %c3_446, %c0_447, %c0_448] : memref<2x4x32x8xbf16, #tpu.memory_space<vmem>>, vector<1x1x32x8xbf16>
    %597 = vector.shape_cast %596 : vector<1x1x32x8xbf16> to vector<32x8xbf16>
    %cst_449 = arith.constant dense<0.000000e+00> : vector<9x8xf32>
    %598 = tpu.matmul %478, %597, %cst_449 {dimension_numbers = #tpu.dot_dimension_numbers<[1], [0], [0], [1], [0, 0, 1, 1], [], []>} : vector<9x32xbf16>, vector<32x8xbf16>, vector<9x8xf32> -> vector<9x8xf32>
    %c1_450 = arith.constant 1 : index
    %c3_451 = arith.constant 3 : index
    %c0_452 = arith.constant 0 : index
    %c0_453 = arith.constant 0 : index
    %599 = vector.load %arg6[%c1_450, %c3_451, %c0_452, %c0_453] : memref<2x4x1x8xf32, #tpu.memory_space<vmem>>, vector<1x1x1x8xf32>
    %600 = vector.shape_cast %599 : vector<1x1x1x8xf32> to vector<1x8xf32>
    %601 = vector.broadcast %600 : vector<1x8xf32> to vector<9x8xf32>
    %602 = arith.addf %598, %601 : vector<9x8xf32>
    %c1_454 = arith.constant 1 : index
    %c3_455 = arith.constant 3 : index
    %c0_456 = arith.constant 0 : index
    %c0_457 = arith.constant 0 : index
    %603 = vector.load %arg4[%c1_454, %c3_455, %c0_456, %c0_457] : memref<2x4x32x8xbf16, #tpu.memory_space<vmem>>, vector<1x1x32x8xbf16>
    %604 = vector.shape_cast %603 : vector<1x1x32x8xbf16> to vector<32x8xbf16>
    %cst_458 = arith.constant dense<0.000000e+00> : vector<9x8xf32>
    %605 = tpu.matmul %478, %604, %cst_458 {dimension_numbers = #tpu.dot_dimension_numbers<[1], [0], [0], [1], [0, 0, 1, 1], [], []>} : vector<9x32xbf16>, vector<32x8xbf16>, vector<9x8xf32> -> vector<9x8xf32>
    %c1_459 = arith.constant 1 : index
    %c3_460 = arith.constant 3 : index
    %c0_461 = arith.constant 0 : index
    %c0_462 = arith.constant 0 : index
    %606 = vector.load %arg7[%c1_459, %c3_460, %c0_461, %c0_462] : memref<2x4x1x8xf32, #tpu.memory_space<vmem>>, vector<1x1x1x8xf32>
    %607 = vector.shape_cast %606 : vector<1x1x1x8xf32> to vector<1x8xf32>
    %608 = vector.broadcast %607 : vector<1x8xf32> to vector<9x8xf32>
    %609 = arith.addf %605, %608 : vector<9x8xf32>
    %c1_463 = arith.constant 1 : index
    %c3_464 = arith.constant 3 : index
    %c0_465 = arith.constant 0 : index
    %c0_466 = arith.constant 0 : index
    %610 = vector.load %arg5[%c1_463, %c3_464, %c0_465, %c0_466] : memref<2x4x32x8xbf16, #tpu.memory_space<vmem>>, vector<1x1x32x8xbf16>
    %611 = vector.shape_cast %610 : vector<1x1x32x8xbf16> to vector<32x8xbf16>
    %cst_467 = arith.constant dense<0.000000e+00> : vector<9x8xf32>
    %612 = tpu.matmul %478, %611, %cst_467 {dimension_numbers = #tpu.dot_dimension_numbers<[1], [0], [0], [1], [0, 0, 1, 1], [], []>} : vector<9x32xbf16>, vector<32x8xbf16>, vector<9x8xf32> -> vector<9x8xf32>
    %c1_468 = arith.constant 1 : index
    %c3_469 = arith.constant 3 : index
    %c0_470 = arith.constant 0 : index
    %c0_471 = arith.constant 0 : index
    %613 = vector.load %arg8[%c1_468, %c3_469, %c0_470, %c0_471] : memref<2x4x1x8xf32, #tpu.memory_space<vmem>>, vector<1x1x1x8xf32>
    %614 = vector.shape_cast %613 : vector<1x1x1x8xf32> to vector<1x8xf32>
    %615 = vector.broadcast %614 : vector<1x8xf32> to vector<9x8xf32>
    %616 = arith.addf %612, %615 : vector<9x8xf32>
    %617 = arith.truncf %602 : vector<9x8xf32> to vector<9x8xbf16>
    %618 = arith.truncf %609 : vector<9x8xf32> to vector<9x8xbf16>
    %cst_472 = arith.constant dense<0.000000e+00> : vector<9x9xf32>
    %619 = tpu.matmul %617, %618, %cst_472 {dimension_numbers = #tpu.dot_dimension_numbers<[1], [1], [0], [0], [0, 0, 1, 0], [], []>} : vector<9x8xbf16>, vector<9x8xbf16>, vector<9x9xf32> -> vector<9x9xf32>
    %cst_473 = arith.constant 0.353553385 : f32
    %620 = vector.broadcast %cst_473 : f32 to vector<9x9xf32>
    %621 = arith.mulf %619, %620 : vector<9x9xf32>
    %cst_474 = arith.constant dense<0xFF800000> : vector<9xf32>
    %622 = vector.multi_reduction <maximumf>, %621, %cst_474 [1] : vector<9x9xf32> to vector<9xf32>
    %623 = vector.shape_cast %622 : vector<9xf32> to vector<9x1xf32>
    %624 = vector.broadcast %623 : vector<9x1xf32> to vector<9x9xf32>
    %625 = arith.subf %621, %624 : vector<9x9xf32>
    %626 = math.exp %625 : vector<9x9xf32>
    %cst_475 = arith.constant dense<0.000000e+00> : vector<9xf32>
    %627 = vector.multi_reduction <add>, %626, %cst_475 [1] : vector<9x9xf32> to vector<9xf32>
    %628 = vector.shape_cast %627 : vector<9xf32> to vector<9x1xf32>
    %629 = tpu.reciprocal %628 {approx = true} : vector<9x1xf32> -> vector<9x1xf32>
    %630 = vector.broadcast %629 : vector<9x1xf32> to vector<9x9xf32>
    %631 = arith.mulf %626, %630 : vector<9x9xf32>
    %632 = arith.truncf %631 : vector<9x9xf32> to vector<9x9xbf16>
    %633 = arith.truncf %616 : vector<9x8xf32> to vector<9x8xbf16>
    %cst_476 = arith.constant dense<0.000000e+00> : vector<9x8xf32>
    %634 = tpu.matmul %632, %633, %cst_476 {dimension_numbers = #tpu.dot_dimension_numbers<[1], [0], [0], [1], [0, 0, 1, 1], [], []>} : vector<9x9xbf16>, vector<9x8xbf16>, vector<9x8xf32> -> vector<9x8xf32>
    %635 = tpu.concatenate %517, %556, %595, %634 in 1 : vector<9x8xf32>, vector<9x8xf32>, vector<9x8xf32>, vector<9x8xf32> -> vector<9x32xf32>
    %636 = arith.truncf %635 : vector<9x32xf32> to vector<9x32xbf16>
    %cst_477 = arith.constant dense<0.000000e+00> : vector<9x32xf32>
    %637 = tpu.matmul %636, %477, %cst_477 {dimension_numbers = #tpu.dot_dimension_numbers<[1], [0], [0], [1], [0, 0, 1, 1], [], []>} : vector<9x32xbf16>, vector<32x32xbf16>, vector<9x32xf32> -> vector<9x32xf32>
    %c1_478 = arith.constant 1 : index
    %c0_479 = arith.constant 0 : index
    %c0_480 = arith.constant 0 : index
    %638 = vector.load %arg10[%c1_478, %c0_479, %c0_480] : memref<2x1x32xf32, #tpu.memory_space<vmem>>, vector<1x1x32xf32>
    %639 = vector.shape_cast %638 : vector<1x1x32xf32> to vector<1x32xf32>
    %640 = vector.broadcast %639 : vector<1x32xf32> to vector<9x32xf32>
    %641 = arith.addf %637, %640 : vector<9x32xf32>
    %642 = arith.addf %243, %641 : vector<9x32xf32>
    %c1_481 = arith.constant 1 : index
    %c0_482 = arith.constant 0 : index
    %c0_483 = arith.constant 0 : index
    %643 = vector.load %arg11[%c1_481, %c0_482, %c0_483] : memref<2x1x32xf32, #tpu.memory_space<vmem>>, vector<1x1x32xf32>
    %644 = vector.shape_cast %643 : vector<1x1x32xf32> to vector<1x32xf32>
    %c1_484 = arith.constant 1 : index
    %c0_485 = arith.constant 0 : index
    %c0_486 = arith.constant 0 : index
    %645 = vector.load %arg12[%c1_484, %c0_485, %c0_486] : memref<2x1x32xf32, #tpu.memory_space<vmem>>, vector<1x1x32xf32>
    %646 = vector.shape_cast %645 : vector<1x1x32xf32> to vector<1x32xf32>
    %cst_487 = arith.constant dense<0.000000e+00> : vector<9xf32>
    %647 = vector.multi_reduction <add>, %642, %cst_487 [1] : vector<9x32xf32> to vector<9xf32>
    %648 = vector.shape_cast %647 : vector<9xf32> to vector<9x1xf32>
    %cst_488 = arith.constant 3.200000e+01 : f32
    %649 = vector.broadcast %cst_488 : f32 to vector<9x1xf32>
    %650 = arith.divf %648, %649 : vector<9x1xf32>
    %651 = vector.broadcast %650 : vector<9x1xf32> to vector<9x32xf32>
    %652 = arith.subf %642, %651 : vector<9x32xf32>
    %653 = arith.mulf %652, %652 : vector<9x32xf32>
    %cst_489 = arith.constant dense<0.000000e+00> : vector<9xf32>
    %654 = vector.multi_reduction <add>, %653, %cst_489 [1] : vector<9x32xf32> to vector<9xf32>
    %655 = vector.shape_cast %654 : vector<9xf32> to vector<9x1xf32>
    %cst_490 = arith.constant 3.200000e+01 : f32
    %656 = vector.broadcast %cst_490 : f32 to vector<9x1xf32>
    %657 = arith.divf %655, %656 : vector<9x1xf32>
    %cst_491 = arith.constant 9.99999974E-6 : f32
    %658 = vector.broadcast %cst_491 : f32 to vector<9x1xf32>
    %659 = arith.addf %657, %658 : vector<9x1xf32>
    %660 = math.rsqrt %659 : vector<9x1xf32>
    %661 = vector.broadcast %660 : vector<9x1xf32> to vector<9x32xf32>
    %662 = arith.mulf %652, %661 : vector<9x32xf32>
    %663 = vector.broadcast %644 : vector<1x32xf32> to vector<9x32xf32>
    %664 = arith.mulf %662, %663 : vector<9x32xf32>
    %665 = vector.broadcast %646 : vector<1x32xf32> to vector<9x32xf32>
    %666 = arith.addf %664, %665 : vector<9x32xf32>
    %667 = arith.truncf %666 : vector<9x32xf32> to vector<9x32xbf16>
    %c1_492 = arith.constant 1 : index
    %c0_493 = arith.constant 0 : index
    %c0_494 = arith.constant 0 : index
    %668 = vector.load %arg13[%c1_492, %c0_493, %c0_494] : memref<2x32x64xbf16, #tpu.memory_space<vmem>>, vector<1x32x64xbf16>
    %669 = vector.shape_cast %668 : vector<1x32x64xbf16> to vector<32x64xbf16>
    %cst_495 = arith.constant dense<0.000000e+00> : vector<9x64xf32>
    %670 = tpu.matmul %667, %669, %cst_495 {dimension_numbers = #tpu.dot_dimension_numbers<[1], [0], [0], [1], [0, 0, 1, 1], [], []>} : vector<9x32xbf16>, vector<32x64xbf16>, vector<9x64xf32> -> vector<9x64xf32>
    %c1_496 = arith.constant 1 : index
    %c0_497 = arith.constant 0 : index
    %c0_498 = arith.constant 0 : index
    %671 = vector.load %arg14[%c1_496, %c0_497, %c0_498] : memref<2x1x64xf32, #tpu.memory_space<vmem>>, vector<1x1x64xf32>
    %672 = vector.shape_cast %671 : vector<1x1x64xf32> to vector<1x64xf32>
    %673 = vector.broadcast %672 : vector<1x64xf32> to vector<9x64xf32>
    %674 = arith.addf %670, %673 : vector<9x64xf32>
    %cst_499 = arith.constant 0.000000e+00 : f32
    %675 = vector.broadcast %cst_499 : f32 to vector<9x64xf32>
    %676 = arith.maximumf %674, %675 : vector<9x64xf32>
    %677 = arith.truncf %676 : vector<9x64xf32> to vector<9x64xbf16>
    %c1_500 = arith.constant 1 : index
    %c0_501 = arith.constant 0 : index
    %c0_502 = arith.constant 0 : index
    %678 = vector.load %arg15[%c1_500, %c0_501, %c0_502] : memref<2x64x32xbf16, #tpu.memory_space<vmem>>, vector<1x64x32xbf16>
    %679 = vector.shape_cast %678 : vector<1x64x32xbf16> to vector<64x32xbf16>
    %cst_503 = arith.constant dense<0.000000e+00> : vector<9x32xf32>
    %680 = tpu.matmul %677, %679, %cst_503 {dimension_numbers = #tpu.dot_dimension_numbers<[1], [0], [0], [1], [0, 0, 1, 1], [], []>} : vector<9x64xbf16>, vector<64x32xbf16>, vector<9x32xf32> -> vector<9x32xf32>
    %c1_504 = arith.constant 1 : index
    %c0_505 = arith.constant 0 : index
    %c0_506 = arith.constant 0 : index
    %681 = vector.load %arg16[%c1_504, %c0_505, %c0_506] : memref<2x1x32xf32, #tpu.memory_space<vmem>>, vector<1x1x32xf32>
    %682 = vector.shape_cast %681 : vector<1x1x32xf32> to vector<1x32xf32>
    %683 = vector.broadcast %682 : vector<1x32xf32> to vector<9x32xf32>
    %684 = arith.addf %680, %683 : vector<9x32xf32>
    %685 = arith.addf %666, %684 : vector<9x32xf32>
    %c1_507 = arith.constant 1 : index
    %c0_508 = arith.constant 0 : index
    %c0_509 = arith.constant 0 : index
    %686 = vector.load %arg17[%c1_507, %c0_508, %c0_509] : memref<2x1x32xf32, #tpu.memory_space<vmem>>, vector<1x1x32xf32>
    %687 = vector.shape_cast %686 : vector<1x1x32xf32> to vector<1x32xf32>
    %c1_510 = arith.constant 1 : index
    %c0_511 = arith.constant 0 : index
    %c0_512 = arith.constant 0 : index
    %688 = vector.load %arg18[%c1_510, %c0_511, %c0_512] : memref<2x1x32xf32, #tpu.memory_space<vmem>>, vector<1x1x32xf32>
    %689 = vector.shape_cast %688 : vector<1x1x32xf32> to vector<1x32xf32>
    %cst_513 = arith.constant dense<0.000000e+00> : vector<9xf32>
    %690 = vector.multi_reduction <add>, %685, %cst_513 [1] : vector<9x32xf32> to vector<9xf32>
    %691 = vector.shape_cast %690 : vector<9xf32> to vector<9x1xf32>
    %cst_514 = arith.constant 3.200000e+01 : f32
    %692 = vector.broadcast %cst_514 : f32 to vector<9x1xf32>
    %693 = arith.divf %691, %692 : vector<9x1xf32>
    %694 = vector.broadcast %693 : vector<9x1xf32> to vector<9x32xf32>
    %695 = arith.subf %685, %694 : vector<9x32xf32>
    %696 = arith.mulf %695, %695 : vector<9x32xf32>
    %cst_515 = arith.constant dense<0.000000e+00> : vector<9xf32>
    %697 = vector.multi_reduction <add>, %696, %cst_515 [1] : vector<9x32xf32> to vector<9xf32>
    %698 = vector.shape_cast %697 : vector<9xf32> to vector<9x1xf32>
    %cst_516 = arith.constant 3.200000e+01 : f32
    %699 = vector.broadcast %cst_516 : f32 to vector<9x1xf32>
    %700 = arith.divf %698, %699 : vector<9x1xf32>
    %cst_517 = arith.constant 9.99999974E-6 : f32
    %701 = vector.broadcast %cst_517 : f32 to vector<9x1xf32>
    %702 = arith.addf %700, %701 : vector<9x1xf32>
    %703 = math.rsqrt %702 : vector<9x1xf32>
    %704 = vector.broadcast %703 : vector<9x1xf32> to vector<9x32xf32>
    %705 = arith.mulf %695, %704 : vector<9x32xf32>
    %706 = vector.broadcast %687 : vector<1x32xf32> to vector<9x32xf32>
    %707 = arith.mulf %705, %706 : vector<9x32xf32>
    %708 = vector.broadcast %689 : vector<1x32xf32> to vector<9x32xf32>
    %709 = arith.addf %707, %708 : vector<9x32xf32>
    %710 = arith.truncf %475 : vector<9x32xf32> to vector<9x32xbf16>
    %c1_518 = arith.constant 1 : index
    %c0_519 = arith.constant 0 : index
    %c0_520 = arith.constant 0 : index
    %c0_521 = arith.constant 0 : index
    %711 = vector.load %arg3[%c1_518, %c0_519, %c0_520, %c0_521] : memref<2x4x32x8xbf16, #tpu.memory_space<vmem>>, vector<1x1x32x8xbf16>
    %712 = vector.shape_cast %711 : vector<1x1x32x8xbf16> to vector<32x8xbf16>
    %cst_522 = arith.constant dense<0.000000e+00> : vector<9x8xf32>
    %713 = tpu.matmul %710, %712, %cst_522 {dimension_numbers = #tpu.dot_dimension_numbers<[1], [0], [0], [1], [0, 0, 1, 1], [], []>} : vector<9x32xbf16>, vector<32x8xbf16>, vector<9x8xf32> -> vector<9x8xf32>
    %c1_523 = arith.constant 1 : index
    %c0_524 = arith.constant 0 : index
    %c0_525 = arith.constant 0 : index
    %c0_526 = arith.constant 0 : index
    %714 = vector.load %arg6[%c1_523, %c0_524, %c0_525, %c0_526] : memref<2x4x1x8xf32, #tpu.memory_space<vmem>>, vector<1x1x1x8xf32>
    %715 = vector.shape_cast %714 : vector<1x1x1x8xf32> to vector<1x8xf32>
    %716 = vector.broadcast %715 : vector<1x8xf32> to vector<9x8xf32>
    %717 = arith.addf %713, %716 : vector<9x8xf32>
    %c1_527 = arith.constant 1 : index
    %c0_528 = arith.constant 0 : index
    %c0_529 = arith.constant 0 : index
    %c0_530 = arith.constant 0 : index
    %718 = vector.load %arg4[%c1_527, %c0_528, %c0_529, %c0_530] : memref<2x4x32x8xbf16, #tpu.memory_space<vmem>>, vector<1x1x32x8xbf16>
    %719 = vector.shape_cast %718 : vector<1x1x32x8xbf16> to vector<32x8xbf16>
    %cst_531 = arith.constant dense<0.000000e+00> : vector<9x8xf32>
    %720 = tpu.matmul %710, %719, %cst_531 {dimension_numbers = #tpu.dot_dimension_numbers<[1], [0], [0], [1], [0, 0, 1, 1], [], []>} : vector<9x32xbf16>, vector<32x8xbf16>, vector<9x8xf32> -> vector<9x8xf32>
    %c1_532 = arith.constant 1 : index
    %c0_533 = arith.constant 0 : index
    %c0_534 = arith.constant 0 : index
    %c0_535 = arith.constant 0 : index
    %721 = vector.load %arg7[%c1_532, %c0_533, %c0_534, %c0_535] : memref<2x4x1x8xf32, #tpu.memory_space<vmem>>, vector<1x1x1x8xf32>
    %722 = vector.shape_cast %721 : vector<1x1x1x8xf32> to vector<1x8xf32>
    %723 = vector.broadcast %722 : vector<1x8xf32> to vector<9x8xf32>
    %724 = arith.addf %720, %723 : vector<9x8xf32>
    %c1_536 = arith.constant 1 : index
    %c0_537 = arith.constant 0 : index
    %c0_538 = arith.constant 0 : index
    %c0_539 = arith.constant 0 : index
    %725 = vector.load %arg5[%c1_536, %c0_537, %c0_538, %c0_539] : memref<2x4x32x8xbf16, #tpu.memory_space<vmem>>, vector<1x1x32x8xbf16>
    %726 = vector.shape_cast %725 : vector<1x1x32x8xbf16> to vector<32x8xbf16>
    %cst_540 = arith.constant dense<0.000000e+00> : vector<9x8xf32>
    %727 = tpu.matmul %710, %726, %cst_540 {dimension_numbers = #tpu.dot_dimension_numbers<[1], [0], [0], [1], [0, 0, 1, 1], [], []>} : vector<9x32xbf16>, vector<32x8xbf16>, vector<9x8xf32> -> vector<9x8xf32>
    %c1_541 = arith.constant 1 : index
    %c0_542 = arith.constant 0 : index
    %c0_543 = arith.constant 0 : index
    %c0_544 = arith.constant 0 : index
    %728 = vector.load %arg8[%c1_541, %c0_542, %c0_543, %c0_544] : memref<2x4x1x8xf32, #tpu.memory_space<vmem>>, vector<1x1x1x8xf32>
    %729 = vector.shape_cast %728 : vector<1x1x1x8xf32> to vector<1x8xf32>
    %730 = vector.broadcast %729 : vector<1x8xf32> to vector<9x8xf32>
    %731 = arith.addf %727, %730 : vector<9x8xf32>
    %732 = arith.truncf %717 : vector<9x8xf32> to vector<9x8xbf16>
    %733 = arith.truncf %724 : vector<9x8xf32> to vector<9x8xbf16>
    %cst_545 = arith.constant dense<0.000000e+00> : vector<9x9xf32>
    %734 = tpu.matmul %732, %733, %cst_545 {dimension_numbers = #tpu.dot_dimension_numbers<[1], [1], [0], [0], [0, 0, 1, 0], [], []>} : vector<9x8xbf16>, vector<9x8xbf16>, vector<9x9xf32> -> vector<9x9xf32>
    %cst_546 = arith.constant 0.353553385 : f32
    %735 = vector.broadcast %cst_546 : f32 to vector<9x9xf32>
    %736 = arith.mulf %734, %735 : vector<9x9xf32>
    %cst_547 = arith.constant dense<0xFF800000> : vector<9xf32>
    %737 = vector.multi_reduction <maximumf>, %736, %cst_547 [1] : vector<9x9xf32> to vector<9xf32>
    %738 = vector.shape_cast %737 : vector<9xf32> to vector<9x1xf32>
    %739 = vector.broadcast %738 : vector<9x1xf32> to vector<9x9xf32>
    %740 = arith.subf %736, %739 : vector<9x9xf32>
    %741 = math.exp %740 : vector<9x9xf32>
    %cst_548 = arith.constant dense<0.000000e+00> : vector<9xf32>
    %742 = vector.multi_reduction <add>, %741, %cst_548 [1] : vector<9x9xf32> to vector<9xf32>
    %743 = vector.shape_cast %742 : vector<9xf32> to vector<9x1xf32>
    %744 = tpu.reciprocal %743 {approx = true} : vector<9x1xf32> -> vector<9x1xf32>
    %745 = vector.broadcast %744 : vector<9x1xf32> to vector<9x9xf32>
    %746 = arith.mulf %741, %745 : vector<9x9xf32>
    %747 = arith.truncf %746 : vector<9x9xf32> to vector<9x9xbf16>
    %748 = arith.truncf %731 : vector<9x8xf32> to vector<9x8xbf16>
    %cst_549 = arith.constant dense<0.000000e+00> : vector<9x8xf32>
    %749 = tpu.matmul %747, %748, %cst_549 {dimension_numbers = #tpu.dot_dimension_numbers<[1], [0], [0], [1], [0, 0, 1, 1], [], []>} : vector<9x9xbf16>, vector<9x8xbf16>, vector<9x8xf32> -> vector<9x8xf32>
    %c1_550 = arith.constant 1 : index
    %c1_551 = arith.constant 1 : index
    %c0_552 = arith.constant 0 : index
    %c0_553 = arith.constant 0 : index
    %750 = vector.load %arg3[%c1_550, %c1_551, %c0_552, %c0_553] : memref<2x4x32x8xbf16, #tpu.memory_space<vmem>>, vector<1x1x32x8xbf16>
    %751 = vector.shape_cast %750 : vector<1x1x32x8xbf16> to vector<32x8xbf16>
    %cst_554 = arith.constant dense<0.000000e+00> : vector<9x8xf32>
    %752 = tpu.matmul %710, %751, %cst_554 {dimension_numbers = #tpu.dot_dimension_numbers<[1], [0], [0], [1], [0, 0, 1, 1], [], []>} : vector<9x32xbf16>, vector<32x8xbf16>, vector<9x8xf32> -> vector<9x8xf32>
    %c1_555 = arith.constant 1 : index
    %c1_556 = arith.constant 1 : index
    %c0_557 = arith.constant 0 : index
    %c0_558 = arith.constant 0 : index
    %753 = vector.load %arg6[%c1_555, %c1_556, %c0_557, %c0_558] : memref<2x4x1x8xf32, #tpu.memory_space<vmem>>, vector<1x1x1x8xf32>
    %754 = vector.shape_cast %753 : vector<1x1x1x8xf32> to vector<1x8xf32>
    %755 = vector.broadcast %754 : vector<1x8xf32> to vector<9x8xf32>
    %756 = arith.addf %752, %755 : vector<9x8xf32>
    %c1_559 = arith.constant 1 : index
    %c1_560 = arith.constant 1 : index
    %c0_561 = arith.constant 0 : index
    %c0_562 = arith.constant 0 : index
    %757 = vector.load %arg4[%c1_559, %c1_560, %c0_561, %c0_562] : memref<2x4x32x8xbf16, #tpu.memory_space<vmem>>, vector<1x1x32x8xbf16>
    %758 = vector.shape_cast %757 : vector<1x1x32x8xbf16> to vector<32x8xbf16>
    %cst_563 = arith.constant dense<0.000000e+00> : vector<9x8xf32>
    %759 = tpu.matmul %710, %758, %cst_563 {dimension_numbers = #tpu.dot_dimension_numbers<[1], [0], [0], [1], [0, 0, 1, 1], [], []>} : vector<9x32xbf16>, vector<32x8xbf16>, vector<9x8xf32> -> vector<9x8xf32>
    %c1_564 = arith.constant 1 : index
    %c1_565 = arith.constant 1 : index
    %c0_566 = arith.constant 0 : index
    %c0_567 = arith.constant 0 : index
    %760 = vector.load %arg7[%c1_564, %c1_565, %c0_566, %c0_567] : memref<2x4x1x8xf32, #tpu.memory_space<vmem>>, vector<1x1x1x8xf32>
    %761 = vector.shape_cast %760 : vector<1x1x1x8xf32> to vector<1x8xf32>
    %762 = vector.broadcast %761 : vector<1x8xf32> to vector<9x8xf32>
    %763 = arith.addf %759, %762 : vector<9x8xf32>
    %c1_568 = arith.constant 1 : index
    %c1_569 = arith.constant 1 : index
    %c0_570 = arith.constant 0 : index
    %c0_571 = arith.constant 0 : index
    %764 = vector.load %arg5[%c1_568, %c1_569, %c0_570, %c0_571] : memref<2x4x32x8xbf16, #tpu.memory_space<vmem>>, vector<1x1x32x8xbf16>
    %765 = vector.shape_cast %764 : vector<1x1x32x8xbf16> to vector<32x8xbf16>
    %cst_572 = arith.constant dense<0.000000e+00> : vector<9x8xf32>
    %766 = tpu.matmul %710, %765, %cst_572 {dimension_numbers = #tpu.dot_dimension_numbers<[1], [0], [0], [1], [0, 0, 1, 1], [], []>} : vector<9x32xbf16>, vector<32x8xbf16>, vector<9x8xf32> -> vector<9x8xf32>
    %c1_573 = arith.constant 1 : index
    %c1_574 = arith.constant 1 : index
    %c0_575 = arith.constant 0 : index
    %c0_576 = arith.constant 0 : index
    %767 = vector.load %arg8[%c1_573, %c1_574, %c0_575, %c0_576] : memref<2x4x1x8xf32, #tpu.memory_space<vmem>>, vector<1x1x1x8xf32>
    %768 = vector.shape_cast %767 : vector<1x1x1x8xf32> to vector<1x8xf32>
    %769 = vector.broadcast %768 : vector<1x8xf32> to vector<9x8xf32>
    %770 = arith.addf %766, %769 : vector<9x8xf32>
    %771 = arith.truncf %756 : vector<9x8xf32> to vector<9x8xbf16>
    %772 = arith.truncf %763 : vector<9x8xf32> to vector<9x8xbf16>
    %cst_577 = arith.constant dense<0.000000e+00> : vector<9x9xf32>
    %773 = tpu.matmul %771, %772, %cst_577 {dimension_numbers = #tpu.dot_dimension_numbers<[1], [1], [0], [0], [0, 0, 1, 0], [], []>} : vector<9x8xbf16>, vector<9x8xbf16>, vector<9x9xf32> -> vector<9x9xf32>
    %cst_578 = arith.constant 0.353553385 : f32
    %774 = vector.broadcast %cst_578 : f32 to vector<9x9xf32>
    %775 = arith.mulf %773, %774 : vector<9x9xf32>
    %cst_579 = arith.constant dense<0xFF800000> : vector<9xf32>
    %776 = vector.multi_reduction <maximumf>, %775, %cst_579 [1] : vector<9x9xf32> to vector<9xf32>
    %777 = vector.shape_cast %776 : vector<9xf32> to vector<9x1xf32>
    %778 = vector.broadcast %777 : vector<9x1xf32> to vector<9x9xf32>
    %779 = arith.subf %775, %778 : vector<9x9xf32>
    %780 = math.exp %779 : vector<9x9xf32>
    %cst_580 = arith.constant dense<0.000000e+00> : vector<9xf32>
    %781 = vector.multi_reduction <add>, %780, %cst_580 [1] : vector<9x9xf32> to vector<9xf32>
    %782 = vector.shape_cast %781 : vector<9xf32> to vector<9x1xf32>
    %783 = tpu.reciprocal %782 {approx = true} : vector<9x1xf32> -> vector<9x1xf32>
    %784 = vector.broadcast %783 : vector<9x1xf32> to vector<9x9xf32>
    %785 = arith.mulf %780, %784 : vector<9x9xf32>
    %786 = arith.truncf %785 : vector<9x9xf32> to vector<9x9xbf16>
    %787 = arith.truncf %770 : vector<9x8xf32> to vector<9x8xbf16>
    %cst_581 = arith.constant dense<0.000000e+00> : vector<9x8xf32>
    %788 = tpu.matmul %786, %787, %cst_581 {dimension_numbers = #tpu.dot_dimension_numbers<[1], [0], [0], [1], [0, 0, 1, 1], [], []>} : vector<9x9xbf16>, vector<9x8xbf16>, vector<9x8xf32> -> vector<9x8xf32>
    %c1_582 = arith.constant 1 : index
    %c2_583 = arith.constant 2 : index
    %c0_584 = arith.constant 0 : index
    %c0_585 = arith.constant 0 : index
    %789 = vector.load %arg3[%c1_582, %c2_583, %c0_584, %c0_585] : memref<2x4x32x8xbf16, #tpu.memory_space<vmem>>, vector<1x1x32x8xbf16>
    %790 = vector.shape_cast %789 : vector<1x1x32x8xbf16> to vector<32x8xbf16>
    %cst_586 = arith.constant dense<0.000000e+00> : vector<9x8xf32>
    %791 = tpu.matmul %710, %790, %cst_586 {dimension_numbers = #tpu.dot_dimension_numbers<[1], [0], [0], [1], [0, 0, 1, 1], [], []>} : vector<9x32xbf16>, vector<32x8xbf16>, vector<9x8xf32> -> vector<9x8xf32>
    %c1_587 = arith.constant 1 : index
    %c2_588 = arith.constant 2 : index
    %c0_589 = arith.constant 0 : index
    %c0_590 = arith.constant 0 : index
    %792 = vector.load %arg6[%c1_587, %c2_588, %c0_589, %c0_590] : memref<2x4x1x8xf32, #tpu.memory_space<vmem>>, vector<1x1x1x8xf32>
    %793 = vector.shape_cast %792 : vector<1x1x1x8xf32> to vector<1x8xf32>
    %794 = vector.broadcast %793 : vector<1x8xf32> to vector<9x8xf32>
    %795 = arith.addf %791, %794 : vector<9x8xf32>
    %c1_591 = arith.constant 1 : index
    %c2_592 = arith.constant 2 : index
    %c0_593 = arith.constant 0 : index
    %c0_594 = arith.constant 0 : index
    %796 = vector.load %arg4[%c1_591, %c2_592, %c0_593, %c0_594] : memref<2x4x32x8xbf16, #tpu.memory_space<vmem>>, vector<1x1x32x8xbf16>
    %797 = vector.shape_cast %796 : vector<1x1x32x8xbf16> to vector<32x8xbf16>
    %cst_595 = arith.constant dense<0.000000e+00> : vector<9x8xf32>
    %798 = tpu.matmul %710, %797, %cst_595 {dimension_numbers = #tpu.dot_dimension_numbers<[1], [0], [0], [1], [0, 0, 1, 1], [], []>} : vector<9x32xbf16>, vector<32x8xbf16>, vector<9x8xf32> -> vector<9x8xf32>
    %c1_596 = arith.constant 1 : index
    %c2_597 = arith.constant 2 : index
    %c0_598 = arith.constant 0 : index
    %c0_599 = arith.constant 0 : index
    %799 = vector.load %arg7[%c1_596, %c2_597, %c0_598, %c0_599] : memref<2x4x1x8xf32, #tpu.memory_space<vmem>>, vector<1x1x1x8xf32>
    %800 = vector.shape_cast %799 : vector<1x1x1x8xf32> to vector<1x8xf32>
    %801 = vector.broadcast %800 : vector<1x8xf32> to vector<9x8xf32>
    %802 = arith.addf %798, %801 : vector<9x8xf32>
    %c1_600 = arith.constant 1 : index
    %c2_601 = arith.constant 2 : index
    %c0_602 = arith.constant 0 : index
    %c0_603 = arith.constant 0 : index
    %803 = vector.load %arg5[%c1_600, %c2_601, %c0_602, %c0_603] : memref<2x4x32x8xbf16, #tpu.memory_space<vmem>>, vector<1x1x32x8xbf16>
    %804 = vector.shape_cast %803 : vector<1x1x32x8xbf16> to vector<32x8xbf16>
    %cst_604 = arith.constant dense<0.000000e+00> : vector<9x8xf32>
    %805 = tpu.matmul %710, %804, %cst_604 {dimension_numbers = #tpu.dot_dimension_numbers<[1], [0], [0], [1], [0, 0, 1, 1], [], []>} : vector<9x32xbf16>, vector<32x8xbf16>, vector<9x8xf32> -> vector<9x8xf32>
    %c1_605 = arith.constant 1 : index
    %c2_606 = arith.constant 2 : index
    %c0_607 = arith.constant 0 : index
    %c0_608 = arith.constant 0 : index
    %806 = vector.load %arg8[%c1_605, %c2_606, %c0_607, %c0_608] : memref<2x4x1x8xf32, #tpu.memory_space<vmem>>, vector<1x1x1x8xf32>
    %807 = vector.shape_cast %806 : vector<1x1x1x8xf32> to vector<1x8xf32>
    %808 = vector.broadcast %807 : vector<1x8xf32> to vector<9x8xf32>
    %809 = arith.addf %805, %808 : vector<9x8xf32>
    %810 = arith.truncf %795 : vector<9x8xf32> to vector<9x8xbf16>
    %811 = arith.truncf %802 : vector<9x8xf32> to vector<9x8xbf16>
    %cst_609 = arith.constant dense<0.000000e+00> : vector<9x9xf32>
    %812 = tpu.matmul %810, %811, %cst_609 {dimension_numbers = #tpu.dot_dimension_numbers<[1], [1], [0], [0], [0, 0, 1, 0], [], []>} : vector<9x8xbf16>, vector<9x8xbf16>, vector<9x9xf32> -> vector<9x9xf32>
    %cst_610 = arith.constant 0.353553385 : f32
    %813 = vector.broadcast %cst_610 : f32 to vector<9x9xf32>
    %814 = arith.mulf %812, %813 : vector<9x9xf32>
    %cst_611 = arith.constant dense<0xFF800000> : vector<9xf32>
    %815 = vector.multi_reduction <maximumf>, %814, %cst_611 [1] : vector<9x9xf32> to vector<9xf32>
    %816 = vector.shape_cast %815 : vector<9xf32> to vector<9x1xf32>
    %817 = vector.broadcast %816 : vector<9x1xf32> to vector<9x9xf32>
    %818 = arith.subf %814, %817 : vector<9x9xf32>
    %819 = math.exp %818 : vector<9x9xf32>
    %cst_612 = arith.constant dense<0.000000e+00> : vector<9xf32>
    %820 = vector.multi_reduction <add>, %819, %cst_612 [1] : vector<9x9xf32> to vector<9xf32>
    %821 = vector.shape_cast %820 : vector<9xf32> to vector<9x1xf32>
    %822 = tpu.reciprocal %821 {approx = true} : vector<9x1xf32> -> vector<9x1xf32>
    %823 = vector.broadcast %822 : vector<9x1xf32> to vector<9x9xf32>
    %824 = arith.mulf %819, %823 : vector<9x9xf32>
    %825 = arith.truncf %824 : vector<9x9xf32> to vector<9x9xbf16>
    %826 = arith.truncf %809 : vector<9x8xf32> to vector<9x8xbf16>
    %cst_613 = arith.constant dense<0.000000e+00> : vector<9x8xf32>
    %827 = tpu.matmul %825, %826, %cst_613 {dimension_numbers = #tpu.dot_dimension_numbers<[1], [0], [0], [1], [0, 0, 1, 1], [], []>} : vector<9x9xbf16>, vector<9x8xbf16>, vector<9x8xf32> -> vector<9x8xf32>
    %c1_614 = arith.constant 1 : index
    %c3_615 = arith.constant 3 : index
    %c0_616 = arith.constant 0 : index
    %c0_617 = arith.constant 0 : index
    %828 = vector.load %arg3[%c1_614, %c3_615, %c0_616, %c0_617] : memref<2x4x32x8xbf16, #tpu.memory_space<vmem>>, vector<1x1x32x8xbf16>
    %829 = vector.shape_cast %828 : vector<1x1x32x8xbf16> to vector<32x8xbf16>
    %cst_618 = arith.constant dense<0.000000e+00> : vector<9x8xf32>
    %830 = tpu.matmul %710, %829, %cst_618 {dimension_numbers = #tpu.dot_dimension_numbers<[1], [0], [0], [1], [0, 0, 1, 1], [], []>} : vector<9x32xbf16>, vector<32x8xbf16>, vector<9x8xf32> -> vector<9x8xf32>
    %c1_619 = arith.constant 1 : index
    %c3_620 = arith.constant 3 : index
    %c0_621 = arith.constant 0 : index
    %c0_622 = arith.constant 0 : index
    %831 = vector.load %arg6[%c1_619, %c3_620, %c0_621, %c0_622] : memref<2x4x1x8xf32, #tpu.memory_space<vmem>>, vector<1x1x1x8xf32>
    %832 = vector.shape_cast %831 : vector<1x1x1x8xf32> to vector<1x8xf32>
    %833 = vector.broadcast %832 : vector<1x8xf32> to vector<9x8xf32>
    %834 = arith.addf %830, %833 : vector<9x8xf32>
    %c1_623 = arith.constant 1 : index
    %c3_624 = arith.constant 3 : index
    %c0_625 = arith.constant 0 : index
    %c0_626 = arith.constant 0 : index
    %835 = vector.load %arg4[%c1_623, %c3_624, %c0_625, %c0_626] : memref<2x4x32x8xbf16, #tpu.memory_space<vmem>>, vector<1x1x32x8xbf16>
    %836 = vector.shape_cast %835 : vector<1x1x32x8xbf16> to vector<32x8xbf16>
    %cst_627 = arith.constant dense<0.000000e+00> : vector<9x8xf32>
    %837 = tpu.matmul %710, %836, %cst_627 {dimension_numbers = #tpu.dot_dimension_numbers<[1], [0], [0], [1], [0, 0, 1, 1], [], []>} : vector<9x32xbf16>, vector<32x8xbf16>, vector<9x8xf32> -> vector<9x8xf32>
    %c1_628 = arith.constant 1 : index
    %c3_629 = arith.constant 3 : index
    %c0_630 = arith.constant 0 : index
    %c0_631 = arith.constant 0 : index
    %838 = vector.load %arg7[%c1_628, %c3_629, %c0_630, %c0_631] : memref<2x4x1x8xf32, #tpu.memory_space<vmem>>, vector<1x1x1x8xf32>
    %839 = vector.shape_cast %838 : vector<1x1x1x8xf32> to vector<1x8xf32>
    %840 = vector.broadcast %839 : vector<1x8xf32> to vector<9x8xf32>
    %841 = arith.addf %837, %840 : vector<9x8xf32>
    %c1_632 = arith.constant 1 : index
    %c3_633 = arith.constant 3 : index
    %c0_634 = arith.constant 0 : index
    %c0_635 = arith.constant 0 : index
    %842 = vector.load %arg5[%c1_632, %c3_633, %c0_634, %c0_635] : memref<2x4x32x8xbf16, #tpu.memory_space<vmem>>, vector<1x1x32x8xbf16>
    %843 = vector.shape_cast %842 : vector<1x1x32x8xbf16> to vector<32x8xbf16>
    %cst_636 = arith.constant dense<0.000000e+00> : vector<9x8xf32>
    %844 = tpu.matmul %710, %843, %cst_636 {dimension_numbers = #tpu.dot_dimension_numbers<[1], [0], [0], [1], [0, 0, 1, 1], [], []>} : vector<9x32xbf16>, vector<32x8xbf16>, vector<9x8xf32> -> vector<9x8xf32>
    %c1_637 = arith.constant 1 : index
    %c3_638 = arith.constant 3 : index
    %c0_639 = arith.constant 0 : index
    %c0_640 = arith.constant 0 : index
    %845 = vector.load %arg8[%c1_637, %c3_638, %c0_639, %c0_640] : memref<2x4x1x8xf32, #tpu.memory_space<vmem>>, vector<1x1x1x8xf32>
    %846 = vector.shape_cast %845 : vector<1x1x1x8xf32> to vector<1x8xf32>
    %847 = vector.broadcast %846 : vector<1x8xf32> to vector<9x8xf32>
    %848 = arith.addf %844, %847 : vector<9x8xf32>
    %849 = arith.truncf %834 : vector<9x8xf32> to vector<9x8xbf16>
    %850 = arith.truncf %841 : vector<9x8xf32> to vector<9x8xbf16>
    %cst_641 = arith.constant dense<0.000000e+00> : vector<9x9xf32>
    %851 = tpu.matmul %849, %850, %cst_641 {dimension_numbers = #tpu.dot_dimension_numbers<[1], [1], [0], [0], [0, 0, 1, 0], [], []>} : vector<9x8xbf16>, vector<9x8xbf16>, vector<9x9xf32> -> vector<9x9xf32>
    %cst_642 = arith.constant 0.353553385 : f32
    %852 = vector.broadcast %cst_642 : f32 to vector<9x9xf32>
    %853 = arith.mulf %851, %852 : vector<9x9xf32>
    %cst_643 = arith.constant dense<0xFF800000> : vector<9xf32>
    %854 = vector.multi_reduction <maximumf>, %853, %cst_643 [1] : vector<9x9xf32> to vector<9xf32>
    %855 = vector.shape_cast %854 : vector<9xf32> to vector<9x1xf32>
    %856 = vector.broadcast %855 : vector<9x1xf32> to vector<9x9xf32>
    %857 = arith.subf %853, %856 : vector<9x9xf32>
    %858 = math.exp %857 : vector<9x9xf32>
    %cst_644 = arith.constant dense<0.000000e+00> : vector<9xf32>
    %859 = vector.multi_reduction <add>, %858, %cst_644 [1] : vector<9x9xf32> to vector<9xf32>
    %860 = vector.shape_cast %859 : vector<9xf32> to vector<9x1xf32>
    %861 = tpu.reciprocal %860 {approx = true} : vector<9x1xf32> -> vector<9x1xf32>
    %862 = vector.broadcast %861 : vector<9x1xf32> to vector<9x9xf32>
    %863 = arith.mulf %858, %862 : vector<9x9xf32>
    %864 = arith.truncf %863 : vector<9x9xf32> to vector<9x9xbf16>
    %865 = arith.truncf %848 : vector<9x8xf32> to vector<9x8xbf16>
    %cst_645 = arith.constant dense<0.000000e+00> : vector<9x8xf32>
    %866 = tpu.matmul %864, %865, %cst_645 {dimension_numbers = #tpu.dot_dimension_numbers<[1], [0], [0], [1], [0, 0, 1, 1], [], []>} : vector<9x9xbf16>, vector<9x8xbf16>, vector<9x8xf32> -> vector<9x8xf32>
    %867 = tpu.concatenate %749, %788, %827, %866 in 1 : vector<9x8xf32>, vector<9x8xf32>, vector<9x8xf32>, vector<9x8xf32> -> vector<9x32xf32>
    %868 = arith.truncf %867 : vector<9x32xf32> to vector<9x32xbf16>
    %cst_646 = arith.constant dense<0.000000e+00> : vector<9x32xf32>
    %869 = tpu.matmul %868, %477, %cst_646 {dimension_numbers = #tpu.dot_dimension_numbers<[1], [0], [0], [1], [0, 0, 1, 1], [], []>} : vector<9x32xbf16>, vector<32x32xbf16>, vector<9x32xf32> -> vector<9x32xf32>
    %c1_647 = arith.constant 1 : index
    %c0_648 = arith.constant 0 : index
    %c0_649 = arith.constant 0 : index
    %870 = vector.load %arg10[%c1_647, %c0_648, %c0_649] : memref<2x1x32xf32, #tpu.memory_space<vmem>>, vector<1x1x32xf32>
    %871 = vector.shape_cast %870 : vector<1x1x32xf32> to vector<1x32xf32>
    %872 = vector.broadcast %871 : vector<1x32xf32> to vector<9x32xf32>
    %873 = arith.addf %869, %872 : vector<9x32xf32>
    %874 = arith.addf %475, %873 : vector<9x32xf32>
    %c1_650 = arith.constant 1 : index
    %c0_651 = arith.constant 0 : index
    %c0_652 = arith.constant 0 : index
    %875 = vector.load %arg11[%c1_650, %c0_651, %c0_652] : memref<2x1x32xf32, #tpu.memory_space<vmem>>, vector<1x1x32xf32>
    %876 = vector.shape_cast %875 : vector<1x1x32xf32> to vector<1x32xf32>
    %c1_653 = arith.constant 1 : index
    %c0_654 = arith.constant 0 : index
    %c0_655 = arith.constant 0 : index
    %877 = vector.load %arg12[%c1_653, %c0_654, %c0_655] : memref<2x1x32xf32, #tpu.memory_space<vmem>>, vector<1x1x32xf32>
    %878 = vector.shape_cast %877 : vector<1x1x32xf32> to vector<1x32xf32>
    %cst_656 = arith.constant dense<0.000000e+00> : vector<9xf32>
    %879 = vector.multi_reduction <add>, %874, %cst_656 [1] : vector<9x32xf32> to vector<9xf32>
    %880 = vector.shape_cast %879 : vector<9xf32> to vector<9x1xf32>
    %cst_657 = arith.constant 3.200000e+01 : f32
    %881 = vector.broadcast %cst_657 : f32 to vector<9x1xf32>
    %882 = arith.divf %880, %881 : vector<9x1xf32>
    %883 = vector.broadcast %882 : vector<9x1xf32> to vector<9x32xf32>
    %884 = arith.subf %874, %883 : vector<9x32xf32>
    %885 = arith.mulf %884, %884 : vector<9x32xf32>
    %cst_658 = arith.constant dense<0.000000e+00> : vector<9xf32>
    %886 = vector.multi_reduction <add>, %885, %cst_658 [1] : vector<9x32xf32> to vector<9xf32>
    %887 = vector.shape_cast %886 : vector<9xf32> to vector<9x1xf32>
    %cst_659 = arith.constant 3.200000e+01 : f32
    %888 = vector.broadcast %cst_659 : f32 to vector<9x1xf32>
    %889 = arith.divf %887, %888 : vector<9x1xf32>
    %cst_660 = arith.constant 9.99999974E-6 : f32
    %890 = vector.broadcast %cst_660 : f32 to vector<9x1xf32>
    %891 = arith.addf %889, %890 : vector<9x1xf32>
    %892 = math.rsqrt %891 : vector<9x1xf32>
    %893 = vector.broadcast %892 : vector<9x1xf32> to vector<9x32xf32>
    %894 = arith.mulf %884, %893 : vector<9x32xf32>
    %895 = vector.broadcast %876 : vector<1x32xf32> to vector<9x32xf32>
    %896 = arith.mulf %894, %895 : vector<9x32xf32>
    %897 = vector.broadcast %878 : vector<1x32xf32> to vector<9x32xf32>
    %898 = arith.addf %896, %897 : vector<9x32xf32>
    %899 = arith.truncf %898 : vector<9x32xf32> to vector<9x32xbf16>
    %c1_661 = arith.constant 1 : index
    %c0_662 = arith.constant 0 : index
    %c0_663 = arith.constant 0 : index
    %900 = vector.load %arg13[%c1_661, %c0_662, %c0_663] : memref<2x32x64xbf16, #tpu.memory_space<vmem>>, vector<1x32x64xbf16>
    %901 = vector.shape_cast %900 : vector<1x32x64xbf16> to vector<32x64xbf16>
    %cst_664 = arith.constant dense<0.000000e+00> : vector<9x64xf32>
    %902 = tpu.matmul %899, %901, %cst_664 {dimension_numbers = #tpu.dot_dimension_numbers<[1], [0], [0], [1], [0, 0, 1, 1], [], []>} : vector<9x32xbf16>, vector<32x64xbf16>, vector<9x64xf32> -> vector<9x64xf32>
    %c1_665 = arith.constant 1 : index
    %c0_666 = arith.constant 0 : index
    %c0_667 = arith.constant 0 : index
    %903 = vector.load %arg14[%c1_665, %c0_666, %c0_667] : memref<2x1x64xf32, #tpu.memory_space<vmem>>, vector<1x1x64xf32>
    %904 = vector.shape_cast %903 : vector<1x1x64xf32> to vector<1x64xf32>
    %905 = vector.broadcast %904 : vector<1x64xf32> to vector<9x64xf32>
    %906 = arith.addf %902, %905 : vector<9x64xf32>
    %cst_668 = arith.constant 0.000000e+00 : f32
    %907 = vector.broadcast %cst_668 : f32 to vector<9x64xf32>
    %908 = arith.maximumf %906, %907 : vector<9x64xf32>
    %909 = arith.truncf %908 : vector<9x64xf32> to vector<9x64xbf16>
    %c1_669 = arith.constant 1 : index
    %c0_670 = arith.constant 0 : index
    %c0_671 = arith.constant 0 : index
    %910 = vector.load %arg15[%c1_669, %c0_670, %c0_671] : memref<2x64x32xbf16, #tpu.memory_space<vmem>>, vector<1x64x32xbf16>
    %911 = vector.shape_cast %910 : vector<1x64x32xbf16> to vector<64x32xbf16>
    %cst_672 = arith.constant dense<0.000000e+00> : vector<9x32xf32>
    %912 = tpu.matmul %909, %911, %cst_672 {dimension_numbers = #tpu.dot_dimension_numbers<[1], [0], [0], [1], [0, 0, 1, 1], [], []>} : vector<9x64xbf16>, vector<64x32xbf16>, vector<9x32xf32> -> vector<9x32xf32>
    %c1_673 = arith.constant 1 : index
    %c0_674 = arith.constant 0 : index
    %c0_675 = arith.constant 0 : index
    %913 = vector.load %arg16[%c1_673, %c0_674, %c0_675] : memref<2x1x32xf32, #tpu.memory_space<vmem>>, vector<1x1x32xf32>
    %914 = vector.shape_cast %913 : vector<1x1x32xf32> to vector<1x32xf32>
    %915 = vector.broadcast %914 : vector<1x32xf32> to vector<9x32xf32>
    %916 = arith.addf %912, %915 : vector<9x32xf32>
    %917 = arith.addf %898, %916 : vector<9x32xf32>
    %c1_676 = arith.constant 1 : index
    %c0_677 = arith.constant 0 : index
    %c0_678 = arith.constant 0 : index
    %918 = vector.load %arg17[%c1_676, %c0_677, %c0_678] : memref<2x1x32xf32, #tpu.memory_space<vmem>>, vector<1x1x32xf32>
    %919 = vector.shape_cast %918 : vector<1x1x32xf32> to vector<1x32xf32>
    %c1_679 = arith.constant 1 : index
    %c0_680 = arith.constant 0 : index
    %c0_681 = arith.constant 0 : index
    %920 = vector.load %arg18[%c1_679, %c0_680, %c0_681] : memref<2x1x32xf32, #tpu.memory_space<vmem>>, vector<1x1x32xf32>
    %921 = vector.shape_cast %920 : vector<1x1x32xf32> to vector<1x32xf32>
    %cst_682 = arith.constant dense<0.000000e+00> : vector<9xf32>
    %922 = vector.multi_reduction <add>, %917, %cst_682 [1] : vector<9x32xf32> to vector<9xf32>
    %923 = vector.shape_cast %922 : vector<9xf32> to vector<9x1xf32>
    %cst_683 = arith.constant 3.200000e+01 : f32
    %924 = vector.broadcast %cst_683 : f32 to vector<9x1xf32>
    %925 = arith.divf %923, %924 : vector<9x1xf32>
    %926 = vector.broadcast %925 : vector<9x1xf32> to vector<9x32xf32>
    %927 = arith.subf %917, %926 : vector<9x32xf32>
    %928 = arith.mulf %927, %927 : vector<9x32xf32>
    %cst_684 = arith.constant dense<0.000000e+00> : vector<9xf32>
    %929 = vector.multi_reduction <add>, %928, %cst_684 [1] : vector<9x32xf32> to vector<9xf32>
    %930 = vector.shape_cast %929 : vector<9xf32> to vector<9x1xf32>
    %cst_685 = arith.constant 3.200000e+01 : f32
    %931 = vector.broadcast %cst_685 : f32 to vector<9x1xf32>
    %932 = arith.divf %930, %931 : vector<9x1xf32>
    %cst_686 = arith.constant 9.99999974E-6 : f32
    %933 = vector.broadcast %cst_686 : f32 to vector<9x1xf32>
    %934 = arith.addf %932, %933 : vector<9x1xf32>
    %935 = math.rsqrt %934 : vector<9x1xf32>
    %936 = vector.broadcast %935 : vector<9x1xf32> to vector<9x32xf32>
    %937 = arith.mulf %927, %936 : vector<9x32xf32>
    %938 = vector.broadcast %919 : vector<1x32xf32> to vector<9x32xf32>
    %939 = arith.mulf %937, %938 : vector<9x32xf32>
    %940 = vector.broadcast %921 : vector<1x32xf32> to vector<9x32xf32>
    %941 = arith.addf %939, %940 : vector<9x32xf32>
    %942 = vector.extract_strided_slice %709 {offsets = [0, 0], sizes = [1, 32], strides = [1, 1]} : vector<9x32xf32> to vector<1x32xf32>
    %943 = vector.extract_strided_slice %941 {offsets = [0, 0], sizes = [1, 32], strides = [1, 1]} : vector<9x32xf32> to vector<1x32xf32>
    %944 = tpu.concatenate %942, %943 in 0 : vector<1x32xf32>, vector<1x32xf32> -> vector<2x32xf32>
    %c0_687 = arith.constant 0 : index
    %c0_688 = arith.constant 0 : index
    %945 = vector.load %arg19[%c0_687, %c0_688] : memref<1x32xf32, #tpu.memory_space<vmem>>, vector<1x32xf32>
    %c0_689 = arith.constant 0 : index
    %c0_690 = arith.constant 0 : index
    %946 = vector.load %arg20[%c0_689, %c0_690] : memref<1x32xf32, #tpu.memory_space<vmem>>, vector<1x32xf32>
    %cst_691 = arith.constant dense<0.000000e+00> : vector<2xf32>
    %947 = vector.multi_reduction <add>, %944, %cst_691 [1] : vector<2x32xf32> to vector<2xf32>
    %948 = vector.shape_cast %947 : vector<2xf32> to vector<2x1xf32>
    %cst_692 = arith.constant 3.200000e+01 : f32
    %949 = vector.broadcast %cst_692 : f32 to vector<2x1xf32>
    %950 = arith.divf %948, %949 : vector<2x1xf32>
    %951 = vector.broadcast %950 : vector<2x1xf32> to vector<2x32xf32>
    %952 = arith.subf %944, %951 : vector<2x32xf32>
    %953 = arith.mulf %952, %952 : vector<2x32xf32>
    %cst_693 = arith.constant dense<0.000000e+00> : vector<2xf32>
    %954 = vector.multi_reduction <add>, %953, %cst_693 [1] : vector<2x32xf32> to vector<2xf32>
    %955 = vector.shape_cast %954 : vector<2xf32> to vector<2x1xf32>
    %cst_694 = arith.constant 3.200000e+01 : f32
    %956 = vector.broadcast %cst_694 : f32 to vector<2x1xf32>
    %957 = arith.divf %955, %956 : vector<2x1xf32>
    %cst_695 = arith.constant 9.99999974E-6 : f32
    %958 = vector.broadcast %cst_695 : f32 to vector<2x1xf32>
    %959 = arith.addf %957, %958 : vector<2x1xf32>
    %960 = math.rsqrt %959 : vector<2x1xf32>
    %961 = vector.broadcast %960 : vector<2x1xf32> to vector<2x32xf32>
    %962 = arith.mulf %952, %961 : vector<2x32xf32>
    %963 = vector.broadcast %945 : vector<1x32xf32> to vector<2x32xf32>
    %964 = arith.mulf %962, %963 : vector<2x32xf32>
    %965 = vector.broadcast %946 : vector<1x32xf32> to vector<2x32xf32>
    %966 = arith.addf %964, %965 : vector<2x32xf32>
    %967 = arith.truncf %966 : vector<2x32xf32> to vector<2x32xbf16>
    %c0_696 = arith.constant 0 : index
    %c0_697 = arith.constant 0 : index
    %968 = vector.load %arg21[%c0_696, %c0_697] : memref<32x64xbf16, #tpu.memory_space<vmem>>, vector<32x64xbf16>
    %cst_698 = arith.constant dense<0.000000e+00> : vector<2x64xf32>
    %969 = tpu.matmul %967, %968, %cst_698 {dimension_numbers = #tpu.dot_dimension_numbers<[1], [0], [0], [1], [0, 0, 1, 1], [], []>} : vector<2x32xbf16>, vector<32x64xbf16>, vector<2x64xf32> -> vector<2x64xf32>
    %c0_699 = arith.constant 0 : index
    %c0_700 = arith.constant 0 : index
    %970 = vector.load %arg22[%c0_699, %c0_700] : memref<1x64xf32, #tpu.memory_space<vmem>>, vector<1x64xf32>
    %971 = vector.broadcast %970 : vector<1x64xf32> to vector<2x64xf32>
    %972 = arith.addf %969, %971 : vector<2x64xf32>
    %cst_701 = arith.constant 0.000000e+00 : f32
    %973 = vector.broadcast %cst_701 : f32 to vector<2x64xf32>
    %974 = arith.maximumf %972, %973 : vector<2x64xf32>
    %975 = arith.truncf %974 : vector<2x64xf32> to vector<2x64xbf16>
    %c0_702 = arith.constant 0 : index
    %c0_703 = arith.constant 0 : index
    %976 = vector.load %arg23[%c0_702, %c0_703] : memref<64x4xbf16, #tpu.memory_space<vmem>>, vector<64x4xbf16>
    %cst_704 = arith.constant dense<0.000000e+00> : vector<2x4xf32>
    %977 = tpu.matmul %975, %976, %cst_704 {dimension_numbers = #tpu.dot_dimension_numbers<[1], [0], [0], [1], [0, 0, 1, 1], [], []>} : vector<2x64xbf16>, vector<64x4xbf16>, vector<2x4xf32> -> vector<2x4xf32>
    %c0_705 = arith.constant 0 : index
    %c0_706 = arith.constant 0 : index
    %978 = vector.load %arg24[%c0_705, %c0_706] : memref<1x4xf32, #tpu.memory_space<vmem>>, vector<1x4xf32>
    %979 = vector.broadcast %978 : vector<1x4xf32> to vector<2x4xf32>
    %980 = arith.addf %977, %979 : vector<2x4xf32>
    %c0_707 = arith.constant 0 : index
    %c0_708 = arith.constant 0 : index
    %981 = vector.load %arg25[%c0_707, %c0_708] : memref<2x4xf32, #tpu.memory_space<vmem>>, vector<2x4xf32>
    tpu.vector_store %arg25[%c0_707, %c0_708], %980 {strides = array<i32>} : memref<2x4xf32, #tpu.memory_space<vmem>>, vector<2x4xf32>,
    return
  }
}

</mosaic_0001>

<bundles_post_ra>
// kernel: tpu_custom_call.1
= control target key start
LH: loop header
LB: loop body
LE: loop exit
PB: predicated region body
PF: predicated region fallthrough
CT: control target
= control target key end

     0   :  { %s9366_s0 = inlined_call_operand.vmem [shape: f32[2,8,32], index: 0, kind: input, shape index: {}]   ;;  %s9367_s1 = inlined_call_operand.vmem [shape: f32[1,32], index: 1, kind: input, shape index: {}]   ;;  %s9368_s2 = inlined_call_operand.vmem [shape: f32[8,32], index: 2, kind: input, shape index: {}]   ;;  %s9369_s3 = inlined_call_operand.vmem [shape: bf16[2,4,32,8], index: 3, kind: input, shape index: {}]   ;;  %s9370_s4 = inlined_call_operand.vmem [shape: bf16[2,4,32,8], index: 4, kind: input, shape index: {}]   ;;  %s9371_s5 = inlined_call_operand.vmem [shape: bf16[2,4,32,8], index: 5, kind: input, shape index: {}]   ;;  %s9372_s6 = inlined_call_operand.vmem [shape: f32[2,4,1,8], index: 6, kind: input, shape index: {}]   ;;  %s9373_s7 = inlined_call_operand.vmem [shape: f32[2,4,1,8], index: 7, kind: input, shape index: {}]   ;;  %s9374_s8 = inlined_call_operand.vmem [shape: f32[2,4,1,8], index: 8, kind: input, shape index: {}]   ;;  %s9375_s9 = inlined_call_operand.vmem [shape: bf16[2,32,32], index: 9, kind: input, shape index: {}]   ;;  %s9376_s10 = inlined_call_operand.vmem [shape: f32[2,1,32], index: 10, kind: input, shape index: {}]   ;;  %s9377_s11 = inlined_call_operand.vmem [shape: f32[2,1,32], index: 11, kind: input, shape index: {}]   ;;  %s9378_s12 = inlined_call_operand.vmem [shape: f32[2,1,32], index: 12, kind: input, shape index: {}]   ;;  %s9379_s13 = inlined_call_operand.vmem [shape: bf16[2,32,64], index: 13, kind: input, shape index: {}]   ;;  %s9380_s14 = inlined_call_operand.vmem [shape: f32[2,1,64], index: 14, kind: input, shape index: {}]   ;;  %s9381_s15 = inlined_call_operand.vmem [shape: bf16[2,64,32], index: 15, kind: input, shape index: {}]   ;;  %s9382_s16 = inlined_call_operand.vmem [shape: f32[2,1,32], index: 16, kind: input, shape index: {}]   ;;  %s9383_s17 = inlined_call_operand.vmem [shape: f32[2,1,32], index: 17, kind: input, shape index: {}]   ;;  %s9384_s18 = inlined_call_operand.vmem [shape: f32[2,1,32], index: 18, kind: input, shape index: {}]   ;;  %s9385_s19 = inlined_call_operand.vmem [shape: f32[1,32], index: 19, kind: input, shape index: {}]   ;;  %s9386_s20 = inlined_call_operand.vmem [shape: f32[1,32], index: 20, kind: input, shape index: {}]   ;;  %s9387_s21 = inlined_call_operand.vmem [shape: bf16[32,64], index: 21, kind: input, shape index: {}]   ;;  %s9388_s22 = inlined_call_operand.vmem [shape: f32[1,64], index: 22, kind: input, shape index: {}]   ;;  %s9389_s23 = inlined_call_operand.vmem [shape: bf16[64,4], index: 23, kind: input, shape index: {}]   ;;  %s9390_s24 = inlined_call_operand.vmem [shape: f32[1,4], index: 24, kind: input, shape index: {}]   ;;  %s9391_s25 = inlined_call_operand.hbm [shape: f32[2,4], index: 25, kind: output, shape index: {}]  }
   0x1   :  { %9409 = sst [smem:[#allocation5_spill]] %s9366_s0 }
   0x2   :  { %9410 = sst [smem:[#allocation6_spill]] %s9367_s1 }
   0x3   :  { %9411 = sst [smem:[#allocation7_spill]] %s9368_s2 }
   0x4   :  { %9412 = sst [smem:[#allocation8_spill]] %s9369_s3 }
   0x5   :  { %9413 = sst [smem:[#allocation9_spill]] %s9370_s4 }
   0x6   :  { %9414 = sst [smem:[#allocation10_spill]] %s9371_s5 }
   0x7   :  { %9415 = sst [smem:[#allocation11_spill]] %s9372_s6 }
   0x8   :  { %9416 = sst [smem:[#allocation12_spill]] %s9373_s7 }
   0x9   :  { %9417 = sst [smem:[#allocation13_spill]] %s9374_s8 }
   0xa   :  { %9418 = sst [smem:[#allocation14_spill]] %s9375_s9 }
   0xb   :  { %9419 = sst [smem:[#allocation15_spill]] %s9388_s22 }
   0xc   :  { %9420 = sst [smem:[#allocation16_spill]] %s9390_s24 }
   0xd   :  { %9421 = sst [smem:[#allocation17_spill]] %s9391_s25 }
   0xe   :  { %s9422_s6 = sld [smem:[#allocation9_spill]]  ;;  %v7619_v1 = vmov 0.0   ;;  %s9423_s1 = sld [smem:[#allocation8_spill]]  ;;  %vm7620_vm0 = vmmov 0   ;;  %vm89_vm1 = vcmask 1040384   ;;  %vm126_vm2 = vcmask 261120  }
   0xf   :  { %6571 = vmatprep.subr.bf16.mxu1 %v7619_v1  ;;  %6563 = vmatprep.subr.bf16.mxu0 %v7619_v1  ;;  %s9424_s4 = sld [smem:[#allocation7_spill]]  ;;  %s9425_s5 = sld [smem:[#allocation5_spill]] }
  0x10   :  { %6575 = vmatprep.mubr.msk.bf16.mxu1 %vm7620_vm0, %v7619_v1  ;;  %6567 = vmatprep.mubr.msk.bf16.mxu0 %vm7620_vm0, %v7619_v1  ;;  %s9426_s7 = sld [smem:[#allocation6_spill]] }
  0x14   :  { %v7338_v0 = vld [vmem:[%s9422_s6] sm:$0xff]   ;;  %v7339_v2 = vld [vmem:[%s9422_s6 + $0x8] sm:$0xff]  }
  0x15   :  { %6572 = vmatpush3.bf16.msra.mxu1 %v7338_v0  ;;  %v7340_v3 = vld [vmem:[%s9423_s1] sm:$0xff]   ;;  %v7341_v7 = vld [vmem:[%s9423_s1 + $0x8] sm:$0xff]  }
  0x16   :  { %6573 = vmatprep.subr.bf16.mxu1 %v7619_v1  ;;  %v83_v4 = vld [vmem:[%s9424_s4] sm:$0xff]  ;;  %6564 = vmatpush3.bf16.msra.mxu0 %v7340_v3 }
  0x17   :  { %v84_v5 = vld [vmem:[%s9425_s5] sm:$0xff]  ;;  %6565 = vmatprep.subr.bf16.mxu0 %v7619_v1 }
  0x18   :  { %v85_v6 = vadd.f32 %v84_v5, %v83_v4  ;;  %v82_v8 = vld [vmem:[%s9426_s7] sm:$0x1] }
  0x19   :  { %6574 = vmatpush3.bf16.msra.mxu1 %v7339_v2 }
  0x1a   :  { %v7785_v9 = vrot.slane %v85_v6, 7  ;;  %6587 = vmatprep.subr.bf16.mxu1 %v7619_v1  ;;  %6566 = vmatpush3.bf16.msra.mxu0 %v7341_v7 }
  0x1b   :  { %6579 = vmatprep.subr.bf16.mxu0 %v7619_v1 }
  0x1c   :  { %v7790_v10 = vsel %vm89_vm1, %v82_v8, %v7785_v9 }
  0x1d   :  { %v7794_v11 = vpack.c.bf16 %v7785_v9, %v7790_v10 }
  0x1f   :  { %6576 = vmatmul.mubr.msk.bf16.vlgmr.msra.gmra.mrb[0].mxu1 %vm126_vm2, %v7794_v11  ;;  %6568 = vmatmul.mubr.msk.bf16.vlgmr.msra.gmra.mrb[0].mxu0 %vm126_vm2, %v7794_v11 }
  0x20   :  { %6589 = vmatprep.mubr.msk.bf16.mxu1 %vm7620_vm0, %v7619_v1  ;;  %6583 = vmatprep.mubr.msk.bf16.mxu0 %vm7620_vm0, %v7619_v1 }
  0x21   :  { %30 = vsyncpa [#allocation3], 0  ;;  %s9427_s8 = sld [smem:[#allocation11_spill]]  ;;  %s9428_s9 = sld [smem:[#allocation12_spill]]  ;;  %vm301_vm3 = vcmask 64512   ;;  %vm351_vm4 = vcmask 72704  }
  0x22   :  { %s9429_s2 = sld [smem:[#allocation10_spill]]  ;;  %vm355_vm5 = vcmask 65536   ;;  %s9430_s28 = sld [smem:[#allocation13_spill]]  ;;  %vm380_vm6 = vcmask 1043456   ;;  %vm381_vm7 = vcmask 1044480   ;;  %v7621_v57 = vmov 65535  }
  0x23   :  { %v382_v58 = vsel %vm380_vm6, 4294967295, %v7621_v57  ;;  %v7856_v61 = vld [vmem:[%s9423_s1 + $0x10] sm:$0xff]   ;;  %v7863_v62 = vld [vmem:[%s9423_s1 + $0x18] sm:$0xff]   ;;  %s9402_s0 = smov 16   ;;  %s9406_s29 = smov 8   ;;  %vm1414_vm8 = vcmask 130048  }
  0x24   :  { %v7849_v59 = vsel %vm381_vm7, %v382_v58, 0  ;;  %v7874_v6 = vld [vmem:[%s9422_s6 + $0x10] sm:$0xff]   ;;  %v7881_v8 = vld [vmem:[%s9422_s6 + $0x18] sm:$0xff]   ;;  %s9431_s26 = sld [smem:[#allocation14_spill]]  ;;  %s9404_s30 = smov 24   ;;  %vm1417_vm9 = vcmask 195584  }
  0x25   :  { %vm1491_vm10 = vcmask 253952   ;;  %vm1642_vm11 = vcmask 523264   ;;  %s9432_s27 = smov 8   ;;  %vm5773_vm12 = vcmask 254976   ;;  %vm5952_vm13 = vcmask 25600  }
  0x27   :  { %v7808_v12 = vld [vmem:[%s9427_s8] ss:$0 sm:$0xff] }
  0x28   :  { %v5973_v13 = vld [vmem:[%s9428_s9] ss:$0 sm:$0xff]  ;;  %v7829_v30 = vld [vmem:[%s9429_s2 + $0x8] sm:$0xff]  }
  0x29   :  { %v7823_v29 = vld [vmem:[%s9429_s2] sm:$0xff]  }
  0x2a   :  { %6580 = vmatpush3.bf16.msra.mxu0 %v7823_v29  ;;  %v7845_v52 = vld [vmem:[%s9430_s28] ss:$0 sm:$0xff] }
  0x2b   :  { %6581 = vmatprep.subr.bf16.mxu0 %v7619_v1 }
  0x2e   :  { %6582 = vmatpush3.bf16.msra.mxu0 %v7829_v30 }
  0x2f   :  { %6593 = vmatprep.subr.bf16.mxu0 %v7619_v1 }
  0x31   :  { %6584 = vmatmul.mubr.msk.bf16.vlgmr.msra.gmra.mrb[4].mxu0 %vm126_vm2, %v7794_v11 }
  0x32   :  { %6595 = vmatprep.mubr.msk.bf16.mxu0 %vm7620_vm0, %v7619_v1 }
  0xf2   :  { %v228_v14 = vpop.f32.mrb[0].mxu1  ;;  %v164_v15 = vpop.f32.mrb[0].mxu0 }
  0xf3   :  { %v6577_v16 = vpop.f32.mrb[1].mxu1  ;;  %v165_v17 = vadd.f32 %v7808_v12, %v164_v15  ;;  %v6569_v18 = vpop.f32.mrb[1].mxu0  ;;  %v229_v21 = vadd.f32 %v5973_v13, %v228_v14 }
  0xf4   :  { %v231_v19 = vpop.f32.mrb[2].mxu1  ;;  %v167_v20 = vpop.f32.mrb[2].mxu0 }
  0xf5   :  { %v232_v22 = vadd.f32 %v5973_v13, %v231_v19  ;;  %v6578_v23 = vpop.f32.mrb[3].mxu1  ;;  %v168_v24 = vadd.f32 %v7808_v12, %v167_v20  ;;  %v6570_v25 = vpop.f32.mrb[3].mxu0  ;;  %v7895_v13 = vld [vmem:[%s9427_s8 + $0x1] ss:$0 sm:$0xff] }
  0xf6   :  { %v7906_v25 = vld [vmem:[%s9428_s9 + $0x1] ss:$0 sm:$0xff] }
  0xf7   :  { %v300_v26 = vpack.c.bf16 %v232_v22, %v229_v21  ;;  %v299_v27 = vpack.c.bf16 %v168_v24, %v165_v17 }
  0xf9   :  { %v306_v28 = vsel %vm301_vm3, %v300_v26, 0 }
  0xfa   :  { %6588 = vmatpush3.bf16.xpose.msra.mxu1 %v306_v28 }
  0xfb   :  { %6599 = vmatprep.subr.bf16.mxu1 %v7619_v1 }
 0x101   :  { %6590 = vmatmul.mubr.msk.bf16.vlgmr.msra.gmra.mrb[4].mxu1 %vm301_vm3, %v299_v27 }
 0x102   :  { %6603 = vmatprep.mubr.msk.bf16.mxu1 %vm7620_vm0, %v7619_v1  ;;  %6600 = vmatpush3.bf16.msra.mxu1 %v7856_v61 }
 0x103   :  { %6601 = vmatprep.subr.bf16.mxu1 %v7619_v1 }
 0x104   :  { %v292_v49 = vpop.f32.mrb[4].mxu0 }
 0x105   :  { %v6585_v50 = vpop.f32.mrb[5].mxu0  ;;  %v293_v54 = vadd.f32 %v7845_v52, %v292_v49 }
 0x106   :  { %v295_v51 = vpop.f32.mrb[6].mxu0  ;;  %6602 = vmatpush3.bf16.msra.mxu1 %v7863_v62 }
 0x107   :  { %v6586_v53 = vpop.f32.mrb[7].mxu0  ;;  %v296_v55 = vadd.f32 %v7845_v52, %v295_v51  ;;  %6615 = vmatprep.subr.bf16.mxu1 %v7619_v1 }
 0x109   :  { %v376_v56 = vpack.c.bf16 %v296_v55, %v293_v54  ;;  %6604 = vmatmul.mubr.msk.bf16.vlgmr.msra.gmra.mrb[8].mxu1 %vm126_vm2, %v7794_v11 }
 0x10a   :  { %6619 = vmatprep.mubr.msk.bf16.mxu1 %vm7620_vm0, %v7619_v1 }
 0x10b   :  { %v385_v60 = vand.u32 %v7849_v59, %v376_v56 }
 0x10d   :  { %6594 = vmatpush3.bf16.msra.mxu0 %v385_v60  ;;  %v7940_v60 = vld [vmem:[%s9430_s28 + $0x1] ss:$0 sm:$0xff] }
 0x10e   :  { %6607 = vmatprep.subr.bf16.mxu0 %v7619_v1 }
 0x1d4   :  { %v342_v31 = vpop.f32.mrb[4].mxu1 }
 0x1d5   :  { %v349_v32 = vmul.f32 0.35355338, %v342_v31  ;;  %v6591_v33 = vpop.f32.mrb[5].mxu1 }
 0x1d6   :  { %v345_v34 = vpop.f32.mrb[6].mxu1 }
 0x1d7   :  { %v350_v35 = vmul.f32 0.35355338, %v345_v34  ;;  %v6592_v36 = vpop.f32.mrb[7].mxu1  ;;  %v352_v37 = vsel %vm351_vm4, %v349_v32, -inf }
 0x1d8   :  { %353 = vmax.xlane.f32.xlu0 %v352_v37  ;;  %v7918_v36 = vld [vmem:[%s9429_s2 + $0x10] sm:$0xff]   ;;  %v7924_v37 = vld [vmem:[%s9429_s2 + $0x18] sm:$0xff]  }
 0x1d9   :  { %v356_v38 = vsel %vm355_vm5, %v350_v35, -inf  ;;  %6616 = vmatpush3.bf16.msra.mxu1 %v7918_v36 }
 0x1da   :  { %6617 = vmatprep.subr.bf16.mxu1 %v7619_v1 }
 0x1dc   :  { %357 = vmax.xlane.f32.xlu0 %v356_v38  ;;  %v487_v14 = vpop.f32.mrb[8].mxu1 }
 0x1dd   :  { %v488_v15 = vadd.f32 %v7895_v13, %v487_v14  ;;  %v6605_v16 = vpop.f32.mrb[9].mxu1  ;;  %6618 = vmatpush3.bf16.msra.mxu1 %v7924_v37  ;;  %v7956_v14 = vld [vmem:[%s9423_s1 + $0x28] sm:$0xff]  }
 0x1de   :  { %v490_v17 = vpop.f32.mrb[10].mxu1  ;;  %6629 = vmatprep.subr.bf16.mxu1 %v7619_v1 }
 0x1df   :  { %v491_v18 = vadd.f32 %v7895_v13, %v490_v17  ;;  %v6606_v19 = vpop.f32.mrb[11].mxu1 }
 0x1e0   :  { %6620 = vmatmul.mubr.msk.bf16.vlgmr.msra.gmra.mrb[12].mxu1 %vm126_vm2, %v7794_v11 }
 0x1e1   :  { %v626_v20 = vpack.c.bf16 %v491_v18, %v488_v15  ;;  %6631 = vmatprep.mubr.msk.bf16.mxu1 %vm7620_vm0, %v7619_v1 }
 0x265   :  { %v354_v39 = vpop.xlane.xlu0 %353 }
 0x266   :  { %v359_v40 = vsub.f32 %v349_v32, %v354_v39 }
 0x268   :  { %v361_v41 = vmul.f32 1.442695, %v359_v40 }
 0x269   :  { %v358_v42 = vpop.xlane.xlu0 %357 }
 0x26a   :  { %7408 = vpow2.f32 %v361_v41  ;;  %v360_v43 = vsub.f32 %v350_v35, %v358_v42 }
 0x26c   :  { %v363_v44 = vmul.f32 1.442695, %v360_v43 }
 0x26e   :  { %7410 = vpow2.f32 %v363_v44 }
 0x274   :  { %v7409_v45 = vpop.eup %7408 }
 0x275   :  { %v365_v46 = vsel %vm351_vm4, %v7409_v45, 0.0 }
 0x276   :  { %366 = vadd.xlane.f32.xlu1 %v365_v46 }
 0x278   :  { %v7411_v47 = vpop.eup %7410 }
 0x279   :  { %v368_v48 = vsel %vm355_vm5, %v7411_v47, 0.0 }
 0x27a   :  { %369 = vadd.xlane.f32.xlu1 %v368_v48 }
 0x2b3   :  { %v619_v46 = vpop.f32.mrb[12].mxu1 }
 0x303   :  { %v367_v63 = vpop.xlane.xlu1 %366 }
 0x304   :  { %7412 = vrcp.f32 %v367_v63  ;;  %v620_v63 = vadd.f32 %v7940_v60, %v619_v46 }
 0x307   :  { %v370_v0 = vpop.xlane.xlu1 %369 }
 0x308   :  { %7414 = vrcp.f32 %v370_v0 }
 0x30e   :  { %v7413_v2 = vpop.eup %7412 }
 0x30f   :  { %v373_v4 = vmul.f32 %v7413_v2, %v7409_v45 }
 0x312   :  { %v7415_v3 = vpop.eup %7414 }
 0x313   :  { %v374_v5 = vmul.f32 %v7415_v3, %v7411_v47  ;;  %v6621_v47 = vpop.f32.mrb[13].mxu1 }
 0x314   :  { %v622_v0 = vpop.f32.mrb[14].mxu1 }
 0x315   :  { %v375_v7 = vpack.c.bf16 %v374_v5, %v373_v4  ;;  %v6622_v2 = vpop.f32.mrb[15].mxu1  ;;  %v623_v3 = vadd.f32 %v7940_v60, %v622_v0 }
 0x317   :  { %6596 = vmatmul.mubr.msk.bf16.vlgmr.msra.gmra.mrb[8].mxu0 %vm351_vm4, %v375_v7  ;;  %v700_v4 = vpack.c.bf16 %v623_v3, %v620_v63  ;;  %v7949_v7 = vld [vmem:[%s9423_s1 + $0x20] sm:$0xff]  }
 0x318   :  { %6608 = vmatpush3.bf16.msra.mxu0 %v7874_v6  ;;  %6611 = vmatprep.mubr.msk.bf16.mxu0 %vm7620_vm0, %v7619_v1 }
 0x319   :  { %6609 = vmatprep.subr.bf16.mxu0 %v7619_v1  ;;  %v705_v5 = vand.u32 %v700_v4, %v7849_v59 }
 0x31b   :  { %6630 = vmatpush3.bf16.msra.mxu1 %v705_v5 }
 0x31c   :  { %6610 = vmatpush3.bf16.msra.mxu0 %v7881_v8  ;;  %6643 = vmatprep.subr.bf16.mxu1 %v7619_v1 }
 0x31d   :  { %6623 = vmatprep.subr.bf16.mxu0 %v7619_v1 }
 0x31f   :  { %6612 = vmatmul.mubr.msk.bf16.vlgmr.msra.gmra.mrb[12].mxu0 %vm126_vm2, %v7794_v11 }
 0x320   :  { %6625 = vmatprep.mubr.msk.bf16.mxu0 %vm7620_vm0, %v7619_v1 }
 0x3ea   :  { %v7899_v21 = vpop.f32.mrb[8].mxu0 }
 0x3eb   :  { %v6597_v22 = vpop.f32.mrb[9].mxu0 }
 0x3ec   :  { %v7901_v23 = vpop.f32.mrb[10].mxu0  ;;  %v7967_v22 = vld [vmem:[%s9422_s6 + $0x20] sm:$0xff]  }
 0x3ed   :  { %v6598_v24 = vpop.f32.mrb[11].mxu0 }
 0x3f2   :  { %v553_v26 = vpop.f32.mrb[12].mxu0 }
 0x3f3   :  { %v6613_v27 = vpop.f32.mrb[13].mxu0  ;;  %v554_v31 = vadd.f32 %v7906_v25, %v553_v26  ;;  %v7974_v26 = vld [vmem:[%s9422_s6 + $0x28] sm:$0xff]  }
 0x3f4   :  { %v556_v28 = vpop.f32.mrb[14].mxu0  ;;  %v7988_v27 = vld [vmem:[%s9427_s8 + $0x2] ss:$0 sm:$0xff] }
 0x3f5   :  { %v557_v32 = vadd.f32 %v7906_v25, %v556_v28  ;;  %v6614_v33 = vpop.f32.mrb[15].mxu0 }
 0x3f7   :  { %v627_v34 = vpack.c.bf16 %v557_v32, %v554_v31 }
 0x3f9   :  { %v632_v35 = vsel %vm301_vm3, %v627_v34, 0 }
 0x3fa   :  { %6624 = vmatpush3.bf16.xpose.msra.mxu0 %v632_v35 }
 0x3fb   :  { %6635 = vmatprep.subr.bf16.mxu0 %v7619_v1 }
 0x401   :  { %6626 = vmatmul.mubr.msk.bf16.vlgmr.msra.gmra.mrb[16].mxu0 %vm301_vm3, %v626_v20 }
 0x402   :  { %6639 = vmatprep.mubr.msk.bf16.mxu0 %vm7620_vm0, %v7619_v1  ;;  %6636 = vmatpush3.bf16.msra.mxu0 %v7949_v7 }
 0x403   :  { %6637 = vmatprep.subr.bf16.mxu0 %v7619_v1 }
 0x406   :  { %6638 = vmatpush3.bf16.msra.mxu0 %v7956_v14 }
 0x407   :  { %6651 = vmatprep.subr.bf16.mxu0 %v7619_v1 }
 0x409   :  { %6640 = vmatmul.mubr.msk.bf16.vlgmr.msra.gmra.mrb[20].mxu0 %vm126_vm2, %v7794_v11 }
 0x40a   :  { %6655 = vmatprep.mubr.msk.bf16.mxu0 %vm7620_vm0, %v7619_v1 }
 0x4d4   :  { %v668_v38 = vpop.f32.mrb[16].mxu0 }
 0x4d5   :  { %v675_v39 = vmul.f32 0.35355338, %v668_v38  ;;  %v6627_v40 = vpop.f32.mrb[17].mxu0 }
 0x4d6   :  { %v671_v41 = vpop.f32.mrb[18].mxu0 }
 0x4d7   :  { %v676_v42 = vmul.f32 0.35355338, %v671_v41  ;;  %v6628_v43 = vpop.f32.mrb[19].mxu0  ;;  %v677_v44 = vsel %vm351_vm4, %v675_v39, -inf }
 0x4d8   :  { %678 = vmax.xlane.f32.xlu0 %v677_v44  ;;  %v8001_v44 = vld [vmem:[%s9428_s9 + $0x2] ss:$0 sm:$0xff] }
 0x4d9   :  { %v680_v45 = vsel %vm355_vm5, %v676_v42, -inf }
 0x4da   :  { %681 = vmax.xlane.f32.xlu1 %v680_v45 }
 0x4dc   :  { %v807_v28 = vpop.f32.mrb[20].mxu0 }
 0x4dd   :  { %v808_v31 = vadd.f32 %v7988_v27, %v807_v28  ;;  %v6641_v32 = vpop.f32.mrb[21].mxu0 }
 0x4de   :  { %v810_v33 = vpop.f32.mrb[22].mxu0 }
 0x4df   :  { %v811_v34 = vadd.f32 %v7988_v27, %v810_v33  ;;  %v6642_v35 = vpop.f32.mrb[23].mxu0 }
 0x4e1   :  { %v946_v38 = vpack.c.bf16 %v811_v34, %v808_v31  ;;  %v8035_v34 = vld [vmem:[%s9430_s28 + $0x2] ss:$0 sm:$0xff] }
 0x565   :  { %v679_v48 = vpop.xlane.xlu0 %678 }
 0x566   :  { %v683_v49 = vsub.f32 %v675_v39, %v679_v48 }
 0x567   :  { %v682_v50 = vpop.xlane.xlu1 %681 }
 0x568   :  { %v685_v51 = vmul.f32 1.442695, %v683_v49  ;;  %v684_v53 = vsub.f32 %v676_v42, %v682_v50 }
 0x56a   :  { %7416 = vpow2.f32 %v685_v51  ;;  %v687_v54 = vmul.f32 1.442695, %v684_v53 }
 0x56c   :  { %7418 = vpow2.f32 %v687_v54  ;;  %v8013_v54 = vld [vmem:[%s9429_s2 + $0x20] sm:$0xff]  }
 0x56d   :  { %6652 = vmatpush3.bf16.msra.mxu0 %v8013_v54 }
 0x56e   :  { %6653 = vmatprep.subr.bf16.mxu0 %v7619_v1 }
 0x574   :  { %v7417_v55 = vpop.eup %7416 }
 0x575   :  { %v689_v56 = vsel %vm351_vm4, %v7417_v55, 0.0 }
 0x576   :  { %v7419_v57 = vpop.eup %7418  ;;  %690 = vadd.xlane.f32.xlu0 %v689_v56 }
 0x577   :  { %v692_v58 = vsel %vm355_vm5, %v7419_v57, 0.0 }
 0x578   :  { %693 = vadd.xlane.f32.xlu1 %v692_v58 }
 0x603   :  { %v691_v15 = vpop.xlane.xlu0 %690 }
 0x604   :  { %7420 = vrcp.f32 %v691_v15 }
 0x605   :  { %v694_v16 = vpop.xlane.xlu1 %693 }
 0x606   :  { %7422 = vrcp.f32 %v694_v16 }
 0x60e   :  { %v7421_v17 = vpop.eup %7420 }
 0x60f   :  { %v697_v19 = vmul.f32 %v7421_v17, %v7417_v55  ;;  %v8019_v55 = vld [vmem:[%s9429_s2 + $0x28] sm:$0xff]  }
 0x610   :  { %v7423_v18 = vpop.eup %7422  ;;  %6654 = vmatpush3.bf16.msra.mxu0 %v8019_v55 }
 0x611   :  { %v698_v20 = vmul.f32 %v7423_v18, %v7419_v57  ;;  %6665 = vmatprep.subr.bf16.mxu0 %v7619_v1 }
 0x613   :  { %v699_v24 = vpack.c.bf16 %v698_v20, %v697_v19  ;;  %6656 = vmatmul.mubr.msk.bf16.vlgmr.msra.gmra.mrb[24].mxu0 %vm126_vm2, %v7794_v11 }
 0x614   :  { %6667 = vmatprep.mubr.msk.bf16.mxu0 %vm7620_vm0, %v7619_v1 }
 0x615   :  { %6632 = vmatmul.mubr.msk.bf16.vlgmr.msra.gmra.mrb[16].mxu1 %vm351_vm4, %v699_v24 }
 0x616   :  { %6644 = vmatpush3.bf16.msra.mxu1 %v7967_v22  ;;  %6647 = vmatprep.mubr.msk.bf16.mxu1 %vm7620_vm0, %v7619_v1 }
 0x617   :  { %6645 = vmatprep.subr.bf16.mxu1 %v7619_v1 }
 0x61a   :  { %6646 = vmatpush3.bf16.msra.mxu1 %v7974_v26 }
 0x61b   :  { %6659 = vmatprep.subr.bf16.mxu1 %v7619_v1 }
 0x61d   :  { %6648 = vmatmul.mubr.msk.bf16.vlgmr.msra.gmra.mrb[20].mxu1 %vm126_vm2, %v7794_v11 }
 0x61e   :  { %6661 = vmatprep.mubr.msk.bf16.mxu1 %vm7620_vm0, %v7619_v1 }
 0x6e6   :  { %v939_v5 = vpop.f32.mrb[24].mxu0 }
 0x6e7   :  { %v6657_v15 = vpop.f32.mrb[25].mxu0  ;;  %v940_v35 = vadd.f32 %v8035_v34, %v939_v5 }
 0x6e8   :  { %v7992_v39 = vpop.f32.mrb[16].mxu1 }
 0x6e9   :  { %v6633_v40 = vpop.f32.mrb[17].mxu1 }
 0x6ea   :  { %v7994_v41 = vpop.f32.mrb[18].mxu1 }
 0x6eb   :  { %v7278_v42 = vpack.i.bf16 %v7994_v41, %v7992_v39  ;;  %v6634_v43 = vpop.f32.mrb[19].mxu1  ;;  %v8141_v39 = vld [vmem:[%s9431_s26] sm:$0xff]   ;;  %v8148_v41 = vld [vmem:[%s9431_s26 + $0x8] sm:$0xff]  }
 0x6f0   :  { %v873_v45 = vpop.f32.mrb[20].mxu1 }
 0x6f1   :  { %v6649_v46 = vpop.f32.mrb[21].mxu1  ;;  %v874_v48 = vadd.f32 %v8001_v44, %v873_v45 }
 0x6f2   :  { %v876_v47 = vpop.f32.mrb[22].mxu1 }
 0x6f3   :  { %v877_v49 = vadd.f32 %v8001_v44, %v876_v47  ;;  %v6650_v50 = vpop.f32.mrb[23].mxu1  ;;  %v8044_v47 = vld [vmem:[%s9423_s1 + $0x30] sm:$0xff]  }
 0x6f5   :  { %v947_v51 = vpack.c.bf16 %v877_v49, %v874_v48  ;;  %v8051_v48 = vld [vmem:[%s9423_s1 + $0x38] sm:$0xff]  }
 0x6f7   :  { %v952_v53 = vsel %vm301_vm3, %v947_v51, 0 }
 0x6f8   :  { %6660 = vmatpush3.bf16.xpose.msra.mxu1 %v952_v53 }
 0x6f9   :  { %6671 = vmatprep.subr.bf16.mxu1 %v7619_v1 }
 0x6ff   :  { %6662 = vmatmul.mubr.msk.bf16.vlgmr.msra.gmra.mrb[24].mxu1 %vm301_vm3, %v946_v38  ;;  %v942_v38 = vpop.f32.mrb[26].mxu0 }
 0x700   :  { %6675 = vmatprep.mubr.msk.bf16.mxu1 %vm7620_vm0, %v7619_v1  ;;  %v6658_v40 = vpop.f32.mrb[27].mxu0  ;;  %v943_v43 = vadd.f32 %v8035_v34, %v942_v38  ;;  %6672 = vmatpush3.bf16.msra.mxu1 %v8044_v47 }
 0x701   :  { %6673 = vmatprep.subr.bf16.mxu1 %v7619_v1 }
 0x702   :  { %v1020_v45 = vpack.c.bf16 %v943_v43, %v940_v35 }
 0x704   :  { %v1025_v46 = vand.u32 %v1020_v45, %v7849_v59  ;;  %6674 = vmatpush3.bf16.msra.mxu1 %v8051_v48 }
 0x705   :  { %6687 = vmatprep.subr.bf16.mxu1 %v7619_v1 }
 0x706   :  { %6666 = vmatpush3.bf16.msra.mxu0 %v1025_v46 }
 0x707   :  { %6679 = vmatprep.subr.bf16.mxu0 %v7619_v1  ;;  %6676 = vmatmul.mubr.msk.bf16.vlgmr.msra.gmra.mrb[28].mxu1 %vm126_vm2, %v7794_v11 }
 0x708   :  { %6691 = vmatprep.mubr.msk.bf16.mxu1 %vm7620_vm0, %v7619_v1 }
 0x7d2   :  { %v988_v56 = vpop.f32.mrb[24].mxu1 }
 0x7d3   :  { %v995_v57 = vmul.f32 0.35355338, %v988_v56  ;;  %v6663_v58 = vpop.f32.mrb[25].mxu1 }
 0x7d4   :  { %v991_v63 = vpop.f32.mrb[26].mxu1  ;;  %v8062_v58 = vld [vmem:[%s9422_s6 + $0x30] sm:$0xff]  }
 0x7d5   :  { %v996_v0 = vmul.f32 0.35355338, %v991_v63  ;;  %v6664_v2 = vpop.f32.mrb[27].mxu1  ;;  %v997_v3 = vsel %vm351_vm4, %v995_v57, -inf }
 0x7d6   :  { %998 = vmax.xlane.f32.xlu0 %v997_v3  ;;  %v8083_v2 = vld [vmem:[%s9427_s8 + $0x3] ss:$0 sm:$0xff] }
 0x7d7   :  { %v1000_v4 = vsel %vm355_vm5, %v996_v0, -inf }
 0x7d8   :  { %1001 = vmax.xlane.f32.xlu1 %v1000_v4 }
 0x7da   :  { %v1127_v3 = vpop.f32.mrb[28].mxu1 }
 0x7db   :  { %v1128_v4 = vadd.f32 %v8083_v2, %v1127_v3  ;;  %v6677_v5 = vpop.f32.mrb[29].mxu1 }
 0x7dc   :  { %v1130_v15 = vpop.f32.mrb[30].mxu1 }
 0x863   :  { %v999_v16 = vpop.xlane.xlu0 %998 }
 0x864   :  { %v1003_v17 = vsub.f32 %v995_v57, %v999_v16  ;;  %v1131_v16 = vadd.f32 %v8083_v2, %v1130_v15 }
 0x865   :  { %v1002_v18 = vpop.xlane.xlu1 %1001 }
 0x866   :  { %v1005_v19 = vmul.f32 1.442695, %v1003_v17  ;;  %v1004_v20 = vsub.f32 %v996_v0, %v1002_v18  ;;  %v8069_v0 = vld [vmem:[%s9422_s6 + $0x38] sm:$0xff]   ;;  %v6678_v17 = vpop.f32.mrb[31].mxu1  ;;  %v1266_v18 = vpack.c.bf16 %v1131_v16, %v1128_v4 }
 0x868   :  { %7424 = vpow2.f32 %v1005_v19  ;;  %v1007_v24 = vmul.f32 1.442695, %v1004_v20 }
 0x86a   :  { %7426 = vpow2.f32 %v1007_v24 }
 0x872   :  { %v7425_v28 = vpop.eup %7424 }
 0x873   :  { %v1009_v31 = vsel %vm351_vm4, %v7425_v28, 0.0 }
 0x874   :  { %v7427_v32 = vpop.eup %7426  ;;  %1010 = vadd.xlane.f32.xlu0 %v1009_v31 }
 0x875   :  { %v1012_v33 = vsel %vm355_vm5, %v7427_v32, 0.0 }
 0x876   :  { %1013 = vadd.xlane.f32.xlu1 %v1012_v33 }
 0x901   :  { %v1011_v49 = vpop.xlane.xlu0 %1010 }
 0x902   :  { %7428 = vrcp.f32 %v1011_v49 }
 0x903   :  { %v1014_v50 = vpop.xlane.xlu1 %1013 }
 0x904   :  { %7430 = vrcp.f32 %v1014_v50  ;;  %v8102_v50 = vld [vmem:[%s9429_s2 + $0x30] sm:$0xff]  }
 0x905   :  { %6688 = vmatpush3.bf16.msra.mxu1 %v8102_v50 }
 0x906   :  { %6689 = vmatprep.subr.bf16.mxu1 %v7619_v1 }
 0x90c   :  { %v7429_v51 = vpop.eup %7428 }
 0x90d   :  { %v1017_v56 = vmul.f32 %v7429_v51, %v7425_v28  ;;  %v8108_v51 = vld [vmem:[%s9429_s2 + $0x38] sm:$0xff]  }
 0x90e   :  { %v7431_v53 = vpop.eup %7430  ;;  %6690 = vmatpush3.bf16.msra.mxu1 %v8108_v51 }
 0x90f   :  { %v1018_v57 = vmul.f32 %v7431_v53, %v7427_v32  ;;  %v8090_v32 = vld [vmem:[%s9428_s9 + $0x3] ss:$0 sm:$0xff]  ;;  %6701 = vmatprep.subr.bf16.mxu1 %v7619_v1 }
 0x911   :  { %v1019_v63 = vpack.c.bf16 %v1018_v57, %v1017_v56  ;;  %6692 = vmatmul.mubr.msk.bf16.vlgmr.msra.gmra.mrb[32].mxu1 %vm126_vm2, %v7794_v11 }
 0x912   :  { %6703 = vmatprep.mubr.msk.bf16.mxu1 %vm7620_vm0, %v7619_v1 }
 0x913   :  { %6668 = vmatmul.mubr.msk.bf16.vlgmr.msra.gmra.mrb[28].mxu0 %vm351_vm4, %v1019_v63 }
 0x914   :  { %6680 = vmatpush3.bf16.msra.mxu0 %v8062_v58  ;;  %6683 = vmatprep.mubr.msk.bf16.mxu0 %vm7620_vm0, %v7619_v1 }
 0x915   :  { %6681 = vmatprep.subr.bf16.mxu0 %v7619_v1 }
 0x918   :  { %6682 = vmatpush3.bf16.msra.mxu0 %v8069_v0 }
 0x919   :  { %6695 = vmatprep.subr.bf16.mxu0 %v7619_v1 }
 0x91b   :  { %6684 = vmatmul.mubr.msk.bf16.vlgmr.msra.gmra.mrb[32].mxu0 %vm126_vm2, %v7794_v11 }
 0x91c   :  { %6697 = vmatprep.mubr.msk.bf16.mxu0 %vm7620_vm0, %v7619_v1 }
 0x9e4   :  { %v1259_v16 = vpop.f32.mrb[32].mxu1 }
 0x9e5   :  { %v6693_v17 = vpop.f32.mrb[33].mxu1 }
 0x9e6   :  { %v1061_v19 = vpop.f32.mrb[28].mxu0 }
 0x9e7   :  { %v6669_v20 = vpop.f32.mrb[29].mxu0 }
 0x9e8   :  { %v1064_v24 = vpop.f32.mrb[30].mxu0 }
 0x9e9   :  { %v7283_v28 = vpack.i.bf16 %v1064_v24, %v1061_v19  ;;  %v6670_v31 = vpop.f32.mrb[31].mxu0 }
 0x9ee   :  { %v1193_v33 = vpop.f32.mrb[32].mxu0 }
 0x9ef   :  { %v6685_v35 = vpop.f32.mrb[33].mxu0  ;;  %v1194_v40 = vadd.f32 %v8090_v32, %v1193_v33 }
 0x9f0   :  { %v1196_v38 = vpop.f32.mrb[34].mxu0 }
 0x9f1   :  { %v1197_v43 = vadd.f32 %v8090_v32, %v1196_v38  ;;  %v6686_v45 = vpop.f32.mrb[35].mxu0 }
 0x9f3   :  { %v1267_v46 = vpack.c.bf16 %v1197_v43, %v1194_v40  ;;  %v8124_v43 = vld [vmem:[%s9430_s28 + $0x3] ss:$0 sm:$0xff] }
 0x9f4   :  { %v1260_v45 = vadd.f32 %v8124_v43, %v1259_v16 }
 0x9f5   :  { %v1272_v49 = vsel %vm301_vm3, %v1267_v46, 0  ;;  %v1262_v46 = vpop.f32.mrb[34].mxu1 }
 0x9f6   :  { %6696 = vmatpush3.bf16.xpose.msra.mxu0 %v1272_v49  ;;  %v6694_v49 = vpop.f32.mrb[35].mxu1 }
 0x9f7   :  { %6707 = vmatprep.subr.bf16.mxu0 %v7619_v1 }
 0x9fd   :  { %6698 = vmatmul.mubr.msk.bf16.vlgmr.msra.gmra.mrb[36].mxu0 %vm301_vm3, %v1266_v18 }
 0x9fe   :  { %6711 = vmatprep.mubr.msk.bf16.mxu0 %vm7620_vm0, %v7619_v1  ;;  %6708 = vmatpush3.bf16.msra.mxu0 %v8141_v39 }
 0x9ff   :  { %6709 = vmatprep.subr.bf16.mxu0 %v7619_v1 }
 0xa02   :  { %6710 = vmatpush3.bf16.msra.mxu0 %v8148_v41 }
 0xa03   :  { %6723 = vmatprep.subr.bf16.mxu0 %v7619_v1 }
 0xad0   :  { %v1308_v53 = vpop.f32.mrb[36].mxu0 }
 0xad1   :  { %v1315_v56 = vmul.f32 0.35355338, %v1308_v53  ;;  %v6699_v57 = vpop.f32.mrb[37].mxu0  ;;  %v1263_v53 = vadd.f32 %v8124_v43, %v1262_v46 }
 0xad2   :  { %v1311_v63 = vpop.f32.mrb[38].mxu0 }
 0xad3   :  { %v1316_v3 = vmul.f32 0.35355338, %v1311_v63  ;;  %v6700_v4 = vpop.f32.mrb[39].mxu0  ;;  %v1317_v5 = vsel %vm351_vm4, %v1315_v56, -inf }
 0xad4   :  { %1318 = vmax.xlane.f32.xlu0 %v1317_v5 }
 0xad5   :  { %v1320_v15 = vsel %vm355_vm5, %v1316_v3, -inf }
 0xad6   :  { %1321 = vmax.xlane.f32.xlu1 %v1320_v15 }
 0xb61   :  { %v1319_v18 = vpop.xlane.xlu0 %1318 }
 0xb62   :  { %v1323_v19 = vsub.f32 %v1315_v56, %v1319_v18  ;;  %v1340_v56 = vpack.c.bf16 %v1263_v53, %v1260_v45 }
 0xb63   :  { %v1322_v11 = vpop.xlane.xlu1 %1321 }
 0xb64   :  { %v1325_v20 = vmul.f32 1.442695, %v1323_v19  ;;  %v1324_v24 = vsub.f32 %v1316_v3, %v1322_v11  ;;  %v1345_v57 = vand.u32 %v1340_v56, %v7849_v59 }
 0xb66   :  { %7432 = vpow2.f32 %v1325_v20  ;;  %v1327_v31 = vmul.f32 1.442695, %v1324_v24  ;;  %6702 = vmatpush3.bf16.msra.mxu1 %v1345_v57 }
 0xb67   :  { %6715 = vmatprep.subr.bf16.mxu1 %v7619_v1 }
 0xb68   :  { %7434 = vpow2.f32 %v1327_v31 }
 0xb70   :  { %v7433_v33 = vpop.eup %7432 }
 0xb71   :  { %v1329_v35 = vsel %vm351_vm4, %v7433_v33, 0.0 }
 0xb72   :  { %v7435_v38 = vpop.eup %7434  ;;  %1330 = vadd.xlane.f32.xlu0 %v1329_v35 }
 0xb73   :  { %v1332_v40 = vsel %vm355_vm5, %v7435_v38, 0.0 }
 0xb74   :  { %1333 = vadd.xlane.f32.xlu1 %v1332_v40 }
 0xb85   :  { %7284 = vrot.lane.b32.xlu1 %v7283_v28, %s9402_s0  ;;  %s9433_s0 = smov 16  }
 0xb88   :  { %7279 = vrot.lane.b32.xlu0 %v7278_v42, %s9406_s29 }
 0xbff   :  { %v1331_v63 = vpop.xlane.xlu0 %1330 }
 0xc00   :  { %7436 = vrcp.f32 %v1331_v63 }
 0xc01   :  { %v1334_v3 = vpop.xlane.xlu1 %1333 }
 0xc02   :  { %7438 = vrcp.f32 %v1334_v3 }
 0xc03   :  { %v7280_v20 = vpop.permute.xlu0 %7279 }
 0xc04   :  { %v7282_v24 = vunpack.i.h.bf16 %v7280_v20  ;;  %v7281_v31 = vunpack.i.l.bf16 %v7280_v20 }
 0xc06   :  { %v1413_v40 = vsel %vm301_vm3, %v7901_v23, %v7282_v24  ;;  %v1412_v45 = vsel %vm301_vm3, %v7899_v21, %v7281_v31  ;;  %v8167_v21 = vld [vmem:[%s9376_s10] ss:$0 sm:$0xff] }
 0xc0a   :  { %v7437_v28 = vpop.eup %7436 }
 0xc0b   :  { %v1337_v5 = vmul.f32 %v7437_v28, %v7433_v33  ;;  %v7285_v33 = vpop.permute.xlu1 %7284 }
 0xc0c   :  { %v7439_v4 = vpop.eup %7438  ;;  %v7287_v35 = vunpack.i.h.bf16 %v7285_v33 }
 0xc0d   :  { %v1338_v15 = vmul.f32 %v7439_v4, %v7435_v38  ;;  %v7286_v38 = vunpack.i.l.bf16 %v7285_v33 }
 0xc0e   :  { %v1416_v56 = vsel %vm1414_vm8, %v1413_v40, %v7287_v35 }
 0xc0f   :  { %v1339_v16 = vpack.c.bf16 %v1338_v15, %v1337_v5  ;;  %v1415_v57 = vsel %vm1414_vm8, %v1412_v45, %v7286_v38 }
 0xc11   :  { %6704 = vmatmul.mubr.msk.bf16.vlgmr.msra.gmra.mrb[36].mxu1 %vm351_vm4, %v1339_v16 }
 0xc12   :  { %6719 = vmatprep.mubr.msk.bf16.mxu1 %vm7620_vm0, %v7619_v1 }
 0xce4   :  { %v1381_v42 = vpop.f32.mrb[36].mxu1 }
 0xce5   :  { %v6705_v17 = vpop.f32.mrb[37].mxu1 }
 0xce6   :  { %v1384_v18 = vpop.f32.mrb[38].mxu1 }
 0xce7   :  { %v7288_v19 = vpack.i.bf16 %v1384_v18, %v1381_v42  ;;  %v6706_v11 = vpop.f32.mrb[39].mxu1 }
 0xce9   :  { %7289 = vrot.lane.b32.xlu1 %v7288_v19, %s9404_s30 }
 0xd5b   :  { %v7290_v46 = vpop.permute.xlu1 %7289 }
 0xd5c   :  { %v7292_v49 = vunpack.i.h.bf16 %v7290_v46  ;;  %v7291_v53 = vunpack.i.l.bf16 %v7290_v46 }
 0xd5e   :  { %v1418_v63 = vsel %vm1417_vm9, %v1415_v57, %v7291_v53  ;;  %v1419_v3 = vsel %vm1417_vm9, %v1416_v56, %v7292_v49  ;;  %v8187_v49 = vld [vmem:[%s9379_s13 + $0x8] sm:$0xff]   ;;  %v8194_v53 = vld [vmem:[%s9381_s15] sm:$0xff]  }
 0xd5f   :  { %v1420_v28 = vpack.c.bf16 %v1419_v3, %v1418_v63  ;;  %v8200_v56 = vld [vmem:[%s9381_s15 + $0x8] sm:$0xff]  }
 0xd61   :  { %6712 = vmatmul.mubr.msk.bf16.vlgmr.msra.gmra.mrb[40].mxu0 %vm126_vm2, %v1420_v28 }
 0xd62   :  { %6731 = vmatprep.mubr.msk.bf16.mxu0 %vm7620_vm0, %v7619_v1  ;;  %6724 = vmatpush3.bf16.msra.mxu0 %v8194_v53 }
 0xd63   :  { %6725 = vmatprep.subr.bf16.mxu0 %v7619_v1 }
 0xd66   :  { %6726 = vmatpush3.bf16.msra.mxu0 %v8200_v56 }
 0xd67   :  { %6727 = vmatprep.subr.bf16.mxu0 %v7619_v1 }
 0xe34   :  { %v1477_v23 = vpop.f32.mrb[40].mxu0 }
 0xe35   :  { %v1478_v4 = vadd.f32 %v8167_v21, %v1477_v23  ;;  %v6713_v5 = vpop.f32.mrb[41].mxu0 }
 0xe36   :  { %v1480_v15 = vpop.f32.mrb[42].mxu0 }
 0xe37   :  { %v1481_v16 = vadd.f32 %v8167_v21, %v1480_v15  ;;  %v6714_v42 = vpop.f32.mrb[43].mxu0  ;;  %v1484_v17 = vadd.f32 %v1478_v4, %v7790_v10 }
 0xe38   :  { %v5968_v42 = vld [vmem:[%s9425_s5 + $0x8] sm:$0xff]  ;;  %s9434_s5 = smov 24  }
 0xe39   :  { %v1488_v18 = vsel %vm126_vm2, %v1484_v17, 0.0  ;;  %v1485_v19 = vadd.f32 %v1481_v16, %v7785_v9  ;;  %v8180_v9 = vld [vmem:[%s9379_s13] sm:$0xff]  }
 0xe3a   :  { %1489 = vadd.xlane.f32.xlu1 %v1488_v18  ;;  %6716 = vmatpush3.bf16.msra.mxu1 %v8180_v9  ;;  %v8208_v16 = vld [vmem:[%s9377_s11] ss:$0 sm:$0xff] }
 0xe3b   :  { %v1492_v11 = vsel %vm1491_vm10, %v1485_v19, 0.0  ;;  %6717 = vmatprep.subr.bf16.mxu1 %v7619_v1 }
 0xe3c   :  { %1493 = vadd.xlane.f32.xlu0 %v1492_v11  ;;  %v8217_v11 = vld [vmem:[%s9378_s12] ss:$0 sm:$0xff] }
 0xe3e   :  { %6718 = vmatpush3.bf16.msra.mxu1 %v8187_v49 }
 0xe3f   :  { %6735 = vmatprep.subr.bf16.mxu1 %v7619_v1 }
 0xec7   :  { %v1490_v20 = vpop.xlane.xlu1 %1489 }
 0xec8   :  { %v1496_v24 = vmul.f32 0.03125, %v1490_v20  ;;  %v7566_v20 = vld [vmem:[%s9424_s4] sm:$0xff]  ;;  %s7625_s4 = smov [#allocation2]  }
 0xec9   :  { %v1494_v31 = vpop.xlane.xlu0 %1493 }
 0xeca   :  { %v1498_v33 = vsub.f32 %v1484_v17, %v1496_v24  ;;  %v1497_v35 = vmul.f32 0.03125, %v1494_v31  ;;  %v93_v24 = vadd.f32 %v7566_v20, %v5968_v42 }
 0xecc   :  { %v1499_v38 = vsub.f32 %v1485_v19, %v1497_v35  ;;  %v1500_v40 = vmul.f32 %v1498_v33, %v1498_v33 }
 0xece   :  { %v1502_v45 = vsel %vm126_vm2, %v1500_v40, 0.0  ;;  %v1501_v46 = vmul.f32 %v1499_v38, %v1499_v38  ;;  %v8229_v40 = vrot.slane %v93_v24, 7 }
 0xecf   :  { %1503 = vadd.xlane.f32.xlu0 %v1502_v45  ;;  %v7567_v45 = vld [vmem:[%s9423_s1] sm:$0xff]  }
 0xed0   :  { %v1505_v10 = vsel %vm1491_vm10, %v1501_v46, 0.0  ;;  %v7568_v46 = vld [vmem:[%s9426_s7] sm:$0x1] }
 0xed3   :  { %1506 = vadd.xlane.f32.xlu0 %v1505_v10  ;;  %v8244_v10 = vsel %vm89_vm1, %v7568_v46, %v8229_v40 }
 0xf5c   :  { %v1504_v57 = vpop.xlane.xlu0 %1503 }
 0xf5d   :  { %v1508_v63 = vmul.f32 0.03125, %v1504_v57  ;;  %v8249_v57 = vpack.c.bf16 %v8229_v40, %v8244_v10 }
 0xf5f   :  { %v1510_v3 = vadd.f32 1e-05, %v1508_v63  ;;  %v7569_v63 = vld [vmem:[%s9423_s1 + $0x8] sm:$0xff]  }
 0xf60   :  { %v1507_v28 = vpop.xlane.xlu0 %1506 }
 0xf61   :  { %7440 = vrsqrt.f32 %v1510_v3  ;;  %v1509_v23 = vmul.f32 0.03125, %v1507_v28  ;;  %v7570_v3 = vld [vmem:[%s9422_s6] sm:$0xff]   ;;  %v7571_v28 = vld [vmem:[%s9422_s6 + $0x8] sm:$0xff]  }
 0xf63   :  { %v1511_v4 = vadd.f32 1e-05, %v1509_v23  ;;  %v8274_v23 = vld [vmem:[%s9381_s15 + $0x10] sm:$0xff]  }
 0xf64   :  { %6728 = vmatpush3.bf16.msra.mxu0 %v8274_v23 }
 0xf65   :  { %7442 = vrsqrt.f32 %v1511_v4  ;;  %6729 = vmatprep.subr.bf16.mxu0 %v7619_v1  ;;  %v8281_v4 = vld [vmem:[%s9381_s15 + $0x18] sm:$0xff]  }
 0xf68   :  { %6730 = vmatpush3.bf16.msra.mxu0 %v8281_v4 }
 0xf69   :  { %6751 = vmatprep.subr.bf16.mxu0 %v7619_v1 }
 0xf6b   :  { %v7441_v5 = vpop.eup %7440 }
 0xf6c   :  { %v1514_v15 = vmul.f32 %v7441_v5, %v1498_v33  ;;  %v8288_v5 = vld [vmem:[%s9380_s14] ss:$0 sm:$0xff] }
 0xf6e   :  { %v1522_v18 = vmul.f32 %v8208_v16, %v1514_v15 }
 0xf6f   :  { %v7443_v17 = vpop.eup %7442 }
 0xf70   :  { %v1515_v19 = vmul.f32 %v7443_v17, %v1499_v38  ;;  %v8224_v33 = vadd.f32 %v8217_v11, %v1522_v18 }
 0xf72   :  { %v1523_v31 = vmul.f32 %v8208_v16, %v1515_v19 }
 0xf74   :  { %v8227_v35 = vadd.f32 %v8217_v11, %v1523_v31 }
 0xf76   :  { %v1532_v38 = vpack.c.bf16 %v8227_v35, %v8224_v33 }
 0xf78   :  { %6720 = vmatmul.mubr.msk.bf16.vlgmr.msra.gmra.mrb[40].mxu1 %vm126_vm2, %v1532_v38 }
 0xf79   :  { %6736 = vmatpush3.bf16.msra.mxu1 %v7567_v45  ;;  %6739 = vmatprep.mubr.msk.bf16.mxu1 %vm7620_vm0, %v7619_v1 }
 0xf7a   :  { %6737 = vmatprep.subr.bf16.mxu1 %v7619_v1 }
 0xf7d   :  { %6738 = vmatpush3.bf16.msra.mxu1 %v7569_v63 }
 0xf7e   :  { %6743 = vmatprep.subr.bf16.mxu1 %v7619_v1 }
 0xf80   :  { %6740 = vmatmul.mubr.msk.bf16.vlgmr.msra.gmra.mrb[44].mxu1 %vm126_vm2, %v8249_v57 }
 0xf81   :  { %6744 = vmatpush3.bf16.msra.mxu1 %v7570_v3  ;;  %6747 = vmatprep.mubr.msk.bf16.mxu1 %vm7620_vm0, %v7619_v1 }
 0xf82   :  { %6745 = vmatprep.subr.bf16.mxu1 %v7619_v1 }
 0xf85   :  { %6746 = vmatpush3.bf16.msra.mxu1 %v7571_v28 }
 0xf86   :  { %6759 = vmatprep.subr.bf16.mxu1 %v7619_v1 }
 0xf88   :  { %6748 = vmatmul.mubr.msk.bf16.vlgmr.msra.gmra.mrb[48].mxu1 %vm126_vm2, %v8249_v57 }
 0xf89   :  { %6761 = vmatprep.mubr.msk.bf16.mxu1 %vm7620_vm0, %v7619_v1 }
0x104b   :  { %v1593_v15 = vpop.f32.mrb[40].mxu1 }
0x104c   :  { %v1594_v42 = vadd.f32 %v8288_v5, %v1593_v15  ;;  %v6721_v17 = vpop.f32.mrb[41].mxu1 }
0x104d   :  { %v1596_v18 = vpop.f32.mrb[42].mxu1 }
0x104e   :  { %v1597_v19 = vadd.f32 %v8288_v5, %v1596_v18  ;;  %v6722_v20 = vpop.f32.mrb[43].mxu1  ;;  %v1600_v24 = vmax.f32 %v1594_v42, 0.0 }
0x1050   :  { %v1601_v31 = vmax.f32 %v1597_v19, 0.0 }
0x1052   :  { %v1602_v38 = vpack.c.bf16 %v1601_v31, %v1600_v24 }
0x1053   :  { %v1771_v45 = vpop.f32.mrb[44].mxu1 }
0x1054   :  { %6732 = vmatmul.mubr.msk.bf16.vlgmr.msra.gmra.mrb[44].mxu0 %vm1642_vm11, %v1602_v38  ;;  %v6741_v46 = vpop.f32.mrb[45].mxu1  ;;  %v1772_v3 = vadd.f32 %v7808_v12, %v1771_v45 }
0x1055   :  { %v1774_v63 = vpop.f32.mrb[46].mxu1  ;;  %6752 = vmatpush3.bf16.msra.mxu0 %v7823_v29  ;;  %6755 = vmatprep.mubr.msk.bf16.mxu0 %vm7620_vm0, %v7619_v1 }
0x1056   :  { %v1775_v28 = vadd.f32 %v7808_v12, %v1774_v63  ;;  %v6742_v15 = vpop.f32.mrb[47].mxu1  ;;  %6753 = vmatprep.subr.bf16.mxu0 %v7619_v1  ;;  %v7572_v12 = vld [vmem:[%s9428_s9] ss:$0 sm:$0xff] }
0x1058   :  { %v1860_v42 = vpack.c.bf16 %v1775_v28, %v1772_v3 }
0x1059   :  { %6754 = vmatpush3.bf16.msra.mxu0 %v7829_v30 }
0x105a   :  { %6765 = vmatprep.subr.bf16.mxu0 %v7619_v1 }
0x105b   :  { %v1812_v17 = vpop.f32.mrb[48].mxu1 }
0x105c   :  { %v6749_v18 = vpop.f32.mrb[49].mxu1  ;;  %6756 = vmatmul.mubr.msk.bf16.vlgmr.msra.gmra.mrb[48].mxu0 %vm126_vm2, %v8249_v57  ;;  %v1813_v19 = vadd.f32 %v7572_v12, %v1812_v17 }
0x105d   :  { %v1815_v29 = vpop.f32.mrb[50].mxu1  ;;  %6767 = vmatprep.mubr.msk.bf16.mxu0 %vm7620_vm0, %v7619_v1 }
0x105e   :  { %v1816_v20 = vadd.f32 %v7572_v12, %v1815_v29  ;;  %v6750_v24 = vpop.f32.mrb[51].mxu1 }
0x1060   :  { %v1861_v31 = vpack.c.bf16 %v1816_v20, %v1813_v19 }
0x1062   :  { %v1866_v30 = vsel %vm301_vm3, %v1861_v31, 0 }
0x1063   :  { %6760 = vmatpush3.bf16.xpose.msra.mxu1 %v1866_v30 }
0x1064   :  { %6771 = vmatprep.subr.bf16.mxu1 %v7619_v1 }
0x106a   :  { %6762 = vmatmul.mubr.msk.bf16.vlgmr.msra.gmra.mrb[52].mxu1 %vm301_vm3, %v1860_v42 }
0x106b   :  { %6772 = vmatpush3.bf16.msra.mxu1 %v7856_v61  ;;  %6775 = vmatprep.mubr.msk.bf16.mxu1 %vm7620_vm0, %v7619_v1 }
0x106c   :  { %6773 = vmatprep.subr.bf16.mxu1 %v7619_v1 }
0x106f   :  { %6774 = vmatpush3.bf16.msra.mxu1 %v7863_v62 }
0x1070   :  { %6787 = vmatprep.subr.bf16.mxu1 %v7619_v1 }
0x1072   :  { %6776 = vmatmul.mubr.msk.bf16.vlgmr.msra.gmra.mrb[56].mxu1 %vm126_vm2, %v8249_v57 }
0x1073   :  { %6788 = vmatpush3.bf16.msra.mxu1 %v7918_v36  ;;  %6791 = vmatprep.mubr.msk.bf16.mxu1 %vm7620_vm0, %v7619_v1 }
0x1074   :  { %6789 = vmatprep.subr.bf16.mxu1 %v7619_v1 }
0x1077   :  { %6790 = vmatpush3.bf16.msra.mxu1 %v7924_v37 }
0x1078   :  { %6801 = vmatprep.subr.bf16.mxu1 %v7619_v1 }
0x107a   :  { %6792 = vmatmul.mubr.msk.bf16.vlgmr.msra.gmra.mrb[60].mxu1 %vm126_vm2, %v8249_v57 }
0x107b   :  { %6803 = vmatprep.mubr.msk.bf16.mxu1 %vm7620_vm0, %v7619_v1 }
0x1127   :  { %v8329_v61 = vpop.f32.mrb[44].mxu0 }
0x1128   :  { %v6733_v62 = vpop.f32.mrb[45].mxu0 }
0x1129   :  { %v8331_v38 = vpop.f32.mrb[46].mxu0 }
0x112a   :  { %v6734_v36 = vpop.f32.mrb[47].mxu0 }
0x112f   :  { %v1853_v17 = vpop.f32.mrb[48].mxu0 }
0x1130   :  { %v6757_v18 = vpop.f32.mrb[49].mxu0 }
0x113d   :  { %v1902_v45 = vpop.f32.mrb[52].mxu1 }
0x113e   :  { %v1909_v46 = vmul.f32 0.35355338, %v1902_v45  ;;  %v6763_v63 = vpop.f32.mrb[53].mxu1 }
0x113f   :  { %v1905_v3 = vpop.f32.mrb[54].mxu1  ;;  %v1854_v63 = vadd.f32 %v7845_v52, %v1853_v17 }
0x1140   :  { %v1910_v28 = vmul.f32 0.35355338, %v1905_v3  ;;  %v6764_v37 = vpop.f32.mrb[55].mxu1  ;;  %v1911_v15 = vsel %vm351_vm4, %v1909_v46, -inf  ;;  %v1856_v3 = vpop.f32.mrb[50].mxu0 }
0x1141   :  { %1912 = vmax.xlane.f32.xlu1 %v1911_v15  ;;  %v6758_v37 = vpop.f32.mrb[51].mxu0 }
0x1142   :  { %v1914_v42 = vsel %vm355_vm5, %v1910_v28, -inf }
0x1143   :  { %1915 = vmax.xlane.f32.xlu0 %v1914_v42 }
0x11ce   :  { %v1913_v29 = vpop.xlane.xlu1 %1912 }
0x11cf   :  { %v1917_v12 = vsub.f32 %v1909_v46, %v1913_v29  ;;  %v7573_v46 = vld [vmem:[%s9430_s28] ss:$0 sm:$0xff] }
0x11d0   :  { %v1916_v19 = vpop.xlane.xlu0 %1915 }
0x11d1   :  { %v1919_v20 = vmul.f32 1.442695, %v1917_v12  ;;  %v1918_v24 = vsub.f32 %v1910_v28, %v1916_v19  ;;  %v1857_v28 = vadd.f32 %v7573_v46, %v1856_v3 }
0x11d3   :  { %7444 = vpow2.f32 %v1919_v20  ;;  %v1921_v31 = vmul.f32 1.442695, %v1918_v24  ;;  %v1934_v15 = vpack.c.bf16 %v1857_v28, %v1854_v63  ;;  %v2016_v24 = vpop.f32.mrb[56].mxu1 }
0x11d5   :  { %7446 = vpow2.f32 %v1921_v31  ;;  %v1939_v42 = vand.u32 %v1934_v15, %v7849_v59  ;;  %v2017_v31 = vadd.f32 %v7895_v13, %v2016_v24 }
0x11d7   :  { %6766 = vmatpush3.bf16.msra.mxu0 %v1939_v42 }
0x11d8   :  { %6779 = vmatprep.subr.bf16.mxu0 %v7619_v1 }
0x11dd   :  { %v7445_v30 = vpop.eup %7444 }
0x11de   :  { %v1923_v62 = vsel %vm351_vm4, %v7445_v30, 0.0 }
0x11df   :  { %v7447_v36 = vpop.eup %7446  ;;  %1924 = vadd.xlane.f32.xlu1 %v1923_v62 }
0x11e0   :  { %v1926_v45 = vsel %vm355_vm5, %v7447_v36, 0.0 }
0x11e1   :  { %1927 = vadd.xlane.f32.xlu0 %v1926_v45 }
0x126c   :  { %v1925_v18 = vpop.xlane.xlu1 %1924 }
0x126d   :  { %7448 = vrcp.f32 %v1925_v18 }
0x126e   :  { %v1928_v29 = vpop.xlane.xlu0 %1927 }
0x126f   :  { %7450 = vrcp.f32 %v1928_v29 }
0x1277   :  { %v7449_v12 = vpop.eup %7448 }
0x1278   :  { %v1931_v52 = vmul.f32 %v7449_v12, %v7445_v30  ;;  %v6777_v30 = vpop.f32.mrb[57].mxu1 }
0x1279   :  { %v7451_v19 = vpop.eup %7450 }
0x127a   :  { %v1932_v17 = vmul.f32 %v7451_v19, %v7447_v36 }
0x127c   :  { %v1933_v20 = vpack.c.bf16 %v1932_v17, %v1931_v52 }
0x127e   :  { %6768 = vmatmul.mubr.msk.bf16.vlgmr.msra.gmra.mrb[52].mxu0 %vm351_vm4, %v1933_v20 }
0x127f   :  { %6780 = vmatpush3.bf16.msra.mxu0 %v7874_v6  ;;  %6783 = vmatprep.mubr.msk.bf16.mxu0 %vm7620_vm0, %v7619_v1  ;;  %v2019_v6 = vpop.f32.mrb[58].mxu1 }
0x1280   :  { %6781 = vmatprep.subr.bf16.mxu0 %v7619_v1  ;;  %v2020_v62 = vadd.f32 %v7895_v13, %v2019_v6  ;;  %v6778_v36 = vpop.f32.mrb[59].mxu1 }
0x1282   :  { %v2105_v45 = vpack.c.bf16 %v2020_v62, %v2017_v31 }
0x1283   :  { %6782 = vmatpush3.bf16.msra.mxu0 %v7881_v8 }
0x1284   :  { %6795 = vmatprep.subr.bf16.mxu0 %v7619_v1 }
0x1286   :  { %6784 = vmatmul.mubr.msk.bf16.vlgmr.msra.gmra.mrb[56].mxu0 %vm126_vm2, %v8249_v57 }
0x1287   :  { %6797 = vmatprep.mubr.msk.bf16.mxu0 %vm7620_vm0, %v7619_v1 }
0x1351   :  { %v8356_v63 = vpop.f32.mrb[52].mxu0 }
0x1352   :  { %v6769_v8 = vpop.f32.mrb[53].mxu0 }
0x1353   :  { %v8358_v3 = vpop.f32.mrb[54].mxu0 }
0x1354   :  { %v6770_v37 = vpop.f32.mrb[55].mxu0 }
0x1359   :  { %v2057_v46 = vpop.f32.mrb[56].mxu0 }
0x135a   :  { %v6785_v28 = vpop.f32.mrb[57].mxu0  ;;  %v2058_v42 = vadd.f32 %v7906_v25, %v2057_v46 }
0x135b   :  { %v2060_v15 = vpop.f32.mrb[58].mxu0 }
0x135c   :  { %v2061_v18 = vadd.f32 %v7906_v25, %v2060_v15  ;;  %v6786_v29 = vpop.f32.mrb[59].mxu0 }
0x135e   :  { %v2106_v12 = vpack.c.bf16 %v2061_v18, %v2058_v42 }
0x1360   :  { %v2111_v19 = vsel %vm301_vm3, %v2106_v12, 0 }
0x1361   :  { %6796 = vmatpush3.bf16.xpose.msra.mxu0 %v2111_v19 }
0x1362   :  { %6807 = vmatprep.subr.bf16.mxu0 %v7619_v1 }
0x1368   :  { %6798 = vmatmul.mubr.msk.bf16.vlgmr.msra.gmra.mrb[60].mxu0 %vm301_vm3, %v2105_v45 }
0x1369   :  { %6808 = vmatpush3.bf16.msra.mxu0 %v7949_v7  ;;  %6811 = vmatprep.mubr.msk.bf16.mxu0 %vm7620_vm0, %v7619_v1 }
0x136a   :  { %6809 = vmatprep.subr.bf16.mxu0 %v7619_v1 }
0x136d   :  { %6810 = vmatpush3.bf16.msra.mxu0 %v7956_v14 }
0x136e   :  { %6823 = vmatprep.subr.bf16.mxu0 %v7619_v1 }
0x1370   :  { %6812 = vmatmul.mubr.msk.bf16.vlgmr.msra.gmra.mrb[64].mxu0 %vm126_vm2, %v8249_v57 }
0x1371   :  { %6824 = vmatpush3.bf16.msra.mxu0 %v8013_v54  ;;  %6827 = vmatprep.mubr.msk.bf16.mxu0 %vm7620_vm0, %v7619_v1 }
0x1372   :  { %6825 = vmatprep.subr.bf16.mxu0 %v7619_v1 }
0x1375   :  { %6826 = vmatpush3.bf16.msra.mxu0 %v8019_v55  ;;  %v2098_v55 = vpop.f32.mrb[60].mxu1 }
0x1376   :  { %6837 = vmatprep.subr.bf16.mxu0 %v7619_v1  ;;  %v6793_v24 = vpop.f32.mrb[61].mxu1  ;;  %v2099_v15 = vadd.f32 %v7940_v60, %v2098_v55 }
0x1377   :  { %v2101_v42 = vpop.f32.mrb[62].mxu1 }
0x1378   :  { %6828 = vmatmul.mubr.msk.bf16.vlgmr.msra.gmra.mrb[68].mxu0 %vm126_vm2, %v8249_v57  ;;  %v6794_v18 = vpop.f32.mrb[63].mxu1  ;;  %v2102_v29 = vadd.f32 %v7940_v60, %v2101_v42 }
0x1379   :  { %6839 = vmatprep.mubr.msk.bf16.mxu0 %vm7620_vm0, %v7619_v1 }
0x137a   :  { %v2179_v12 = vpack.c.bf16 %v2102_v29, %v2099_v15 }
0x137c   :  { %v2184_v19 = vand.u32 %v2179_v12, %v7849_v59 }
0x137e   :  { %6802 = vmatpush3.bf16.msra.mxu1 %v2184_v19 }
0x137f   :  { %6815 = vmatprep.subr.bf16.mxu1 %v7619_v1 }
0x143b   :  { %v2147_v13 = vpop.f32.mrb[60].mxu0 }
0x143c   :  { %v2154_v25 = vmul.f32 0.35355338, %v2147_v13  ;;  %v6799_v7 = vpop.f32.mrb[61].mxu0 }
0x143d   :  { %v2150_v14 = vpop.f32.mrb[62].mxu0 }
0x143e   :  { %v2155_v54 = vmul.f32 0.35355338, %v2150_v14  ;;  %v6800_v52 = vpop.f32.mrb[63].mxu0  ;;  %v2156_v17 = vsel %vm351_vm4, %v2154_v25, -inf }
0x143f   :  { %2157 = vmax.xlane.f32.xlu1 %v2156_v17 }
0x1440   :  { %v2159_v20 = vsel %vm355_vm5, %v2155_v54, -inf }
0x1441   :  { %2160 = vmax.xlane.f32.xlu0 %v2159_v20 }
0x1443   :  { %v2261_v60 = vpop.f32.mrb[64].mxu0 }
0x1444   :  { %v2262_v20 = vadd.f32 %v7988_v27, %v2261_v60  ;;  %v6813_v55 = vpop.f32.mrb[65].mxu0 }
0x14cc   :  { %v2158_v31 = vpop.xlane.xlu1 %2157 }
0x14cd   :  { %v2162_v30 = vsub.f32 %v2154_v25, %v2158_v31 }
0x14ce   :  { %v2161_v6 = vpop.xlane.xlu0 %2160 }
0x14cf   :  { %v2164_v62 = vmul.f32 1.442695, %v2162_v30  ;;  %v2163_v36 = vsub.f32 %v2155_v54, %v2161_v6 }
0x14d1   :  { %7452 = vpow2.f32 %v2164_v62  ;;  %v2166_v45 = vmul.f32 1.442695, %v2163_v36 }
0x14d3   :  { %7454 = vpow2.f32 %v2166_v45 }
0x14db   :  { %v7453_v8 = vpop.eup %7452 }
0x14dc   :  { %v2168_v37 = vsel %vm351_vm4, %v7453_v8, 0.0 }
0x14dd   :  { %v7455_v46 = vpop.eup %7454  ;;  %2169 = vadd.xlane.f32.xlu1 %v2168_v37 }
0x14de   :  { %v2171_v28 = vsel %vm355_vm5, %v7455_v46, 0.0 }
0x14df   :  { %2172 = vadd.xlane.f32.xlu0 %v2171_v28 }
0x156a   :  { %v2170_v13 = vpop.xlane.xlu1 %2169 }
0x156b   :  { %7456 = vrcp.f32 %v2170_v13 }
0x156c   :  { %v2173_v25 = vpop.xlane.xlu0 %2172 }
0x156d   :  { %7458 = vrcp.f32 %v2173_v25 }
0x1575   :  { %v7457_v7 = vpop.eup %7456 }
0x1576   :  { %v2176_v54 = vmul.f32 %v7457_v7, %v7453_v8 }
0x1577   :  { %v7459_v14 = vpop.eup %7458 }
0x1578   :  { %v2177_v52 = vmul.f32 %v7459_v14, %v7455_v46 }
0x157a   :  { %v2178_v17 = vpack.c.bf16 %v2177_v52, %v2176_v54 }
0x157c   :  { %6804 = vmatmul.mubr.msk.bf16.vlgmr.msra.gmra.mrb[64].mxu1 %vm351_vm4, %v2178_v17 }
0x157d   :  { %6816 = vmatpush3.bf16.msra.mxu1 %v7967_v22  ;;  %6819 = vmatprep.mubr.msk.bf16.mxu1 %vm7620_vm0, %v7619_v1  ;;  %v2264_v22 = vpop.f32.mrb[66].mxu0 }
0x157e   :  { %6817 = vmatprep.subr.bf16.mxu1 %v7619_v1  ;;  %v2265_v24 = vadd.f32 %v7988_v27, %v2264_v22  ;;  %v6814_v31 = vpop.f32.mrb[67].mxu0 }
0x1580   :  { %v2350_v30 = vpack.c.bf16 %v2265_v24, %v2262_v20 }
0x1581   :  { %6818 = vmatpush3.bf16.msra.mxu1 %v7974_v26 }
0x1582   :  { %6831 = vmatprep.subr.bf16.mxu1 %v7619_v1 }
0x1584   :  { %6820 = vmatmul.mubr.msk.bf16.vlgmr.msra.gmra.mrb[68].mxu1 %vm126_vm2, %v8249_v57 }
0x1585   :  { %6833 = vmatprep.mubr.msk.bf16.mxu1 %vm7620_vm0, %v7619_v1 }
0x164f   :  { %v8404_v6 = vpop.f32.mrb[64].mxu1 }
0x1650   :  { %v6805_v26 = vpop.f32.mrb[65].mxu1 }
0x1651   :  { %v8406_v62 = vpop.f32.mrb[66].mxu1 }
0x1652   :  { %v7293_v36 = vpack.i.bf16 %v8406_v62, %v8404_v6  ;;  %v6806_v45 = vpop.f32.mrb[67].mxu1 }
0x1657   :  { %v2302_v8 = vpop.f32.mrb[68].mxu1 }
0x1658   :  { %v6821_v37 = vpop.f32.mrb[69].mxu1  ;;  %v2303_v28 = vadd.f32 %v8001_v44, %v2302_v8 }
0x1659   :  { %v2305_v46 = vpop.f32.mrb[70].mxu1 }
0x165a   :  { %v2306_v15 = vadd.f32 %v8001_v44, %v2305_v46  ;;  %v6822_v42 = vpop.f32.mrb[71].mxu1 }
0x165c   :  { %v2351_v27 = vpack.c.bf16 %v2306_v15, %v2303_v28 }
0x165e   :  { %v2356_v18 = vsel %vm301_vm3, %v2351_v27, 0 }
0x165f   :  { %6832 = vmatpush3.bf16.xpose.msra.mxu1 %v2356_v18 }
0x1660   :  { %6843 = vmatprep.subr.bf16.mxu1 %v7619_v1 }
0x1666   :  { %6834 = vmatmul.mubr.msk.bf16.vlgmr.msra.gmra.mrb[72].mxu1 %vm301_vm3, %v2350_v30 }
0x1667   :  { %6844 = vmatpush3.bf16.msra.mxu1 %v8044_v47  ;;  %6847 = vmatprep.mubr.msk.bf16.mxu1 %vm7620_vm0, %v7619_v1 }
0x1668   :  { %6845 = vmatprep.subr.bf16.mxu1 %v7619_v1 }
0x166b   :  { %6846 = vmatpush3.bf16.msra.mxu1 %v8051_v48 }
0x166c   :  { %6859 = vmatprep.subr.bf16.mxu1 %v7619_v1 }
0x166e   :  { %6848 = vmatmul.mubr.msk.bf16.vlgmr.msra.gmra.mrb[76].mxu1 %vm126_vm2, %v8249_v57 }
0x166f   :  { %6860 = vmatpush3.bf16.msra.mxu1 %v8102_v50  ;;  %6863 = vmatprep.mubr.msk.bf16.mxu1 %vm7620_vm0, %v7619_v1 }
0x1670   :  { %6861 = vmatprep.subr.bf16.mxu1 %v7619_v1 }
0x1673   :  { %6862 = vmatpush3.bf16.msra.mxu1 %v8108_v51  ;;  %v2343_v51 = vpop.f32.mrb[68].mxu0 }
0x1674   :  { %6873 = vmatprep.subr.bf16.mxu1 %v7619_v1  ;;  %v6829_v25 = vpop.f32.mrb[69].mxu0  ;;  %v2344_v31 = vadd.f32 %v8035_v34, %v2343_v51 }
0x1675   :  { %v2346_v30 = vpop.f32.mrb[70].mxu0 }
0x1676   :  { %6864 = vmatmul.mubr.msk.bf16.vlgmr.msra.gmra.mrb[80].mxu1 %vm126_vm2, %v8249_v57  ;;  %v6830_v26 = vpop.f32.mrb[71].mxu0  ;;  %v2347_v45 = vadd.f32 %v8035_v34, %v2346_v30 }
0x1677   :  { %6875 = vmatprep.mubr.msk.bf16.mxu1 %vm7620_vm0, %v7619_v1 }
0x1678   :  { %v2424_v8 = vpack.c.bf16 %v2347_v45, %v2344_v31 }
0x167a   :  { %v2429_v37 = vand.u32 %v2424_v8, %v7849_v59 }
0x167c   :  { %6838 = vmatpush3.bf16.msra.mxu0 %v2429_v37 }
0x167d   :  { %6851 = vmatprep.subr.bf16.mxu0 %v7619_v1 }
0x1739   :  { %v2392_v44 = vpop.f32.mrb[72].mxu1 }
0x173a   :  { %v2399_v47 = vmul.f32 0.35355338, %v2392_v44  ;;  %v6835_v48 = vpop.f32.mrb[73].mxu1 }
0x173b   :  { %v2395_v29 = vpop.f32.mrb[74].mxu1 }
0x173c   :  { %v2400_v50 = vmul.f32 0.35355338, %v2395_v29  ;;  %v6836_v12 = vpop.f32.mrb[75].mxu1  ;;  %v2401_v19 = vsel %vm351_vm4, %v2399_v47, -inf }
0x173d   :  { %2402 = vmax.xlane.f32.xlu1 %v2401_v19 }
0x173e   :  { %v2404_v13 = vsel %vm355_vm5, %v2400_v50, -inf }
0x173f   :  { %2405 = vmax.xlane.f32.xlu0 %v2404_v13 }
0x1741   :  { %v2506_v34 = vpop.f32.mrb[76].mxu1 }
0x1742   :  { %v6849_v48 = vpop.f32.mrb[77].mxu1 }
0x17ca   :  { %v2403_v7 = vpop.xlane.xlu1 %2402 }
0x17cb   :  { %v2407_v14 = vsub.f32 %v2399_v47, %v2403_v7  ;;  %v2507_v47 = vadd.f32 %v8083_v2, %v2506_v34 }
0x17cc   :  { %v2406_v54 = vpop.xlane.xlu0 %2405 }
0x17cd   :  { %v2409_v52 = vmul.f32 1.442695, %v2407_v14  ;;  %v2408_v17 = vsub.f32 %v2400_v50, %v2406_v54 }
0x17cf   :  { %7460 = vpow2.f32 %v2409_v52  ;;  %v2411_v60 = vmul.f32 1.442695, %v2408_v17 }
0x17d1   :  { %7462 = vpow2.f32 %v2411_v60 }
0x17d9   :  { %v7461_v20 = vpop.eup %7460 }
0x17da   :  { %v2413_v55 = vsel %vm351_vm4, %v7461_v20, 0.0 }
0x17db   :  { %v7463_v22 = vpop.eup %7462  ;;  %2414 = vadd.xlane.f32.xlu1 %v2413_v55 }
0x17dc   :  { %v2416_v24 = vsel %vm355_vm5, %v7463_v22, 0.0 }
0x17dd   :  { %2417 = vadd.xlane.f32.xlu0 %v2416_v24 }
0x1868   :  { %v2415_v46 = vpop.xlane.xlu1 %2414 }
0x1869   :  { %7464 = vrcp.f32 %v2415_v46 }
0x186a   :  { %v2418_v28 = vpop.xlane.xlu0 %2417 }
0x186b   :  { %7466 = vrcp.f32 %v2418_v28 }
0x1873   :  { %v7465_v15 = vpop.eup %7464 }
0x1874   :  { %v2421_v27 = vmul.f32 %v7465_v15, %v7461_v20 }
0x1875   :  { %v7467_v42 = vpop.eup %7466 }
0x1876   :  { %v2422_v18 = vmul.f32 %v7467_v42, %v7463_v22 }
0x1878   :  { %v2423_v44 = vpack.c.bf16 %v2422_v18, %v2421_v27 }
0x187a   :  { %6840 = vmatmul.mubr.msk.bf16.vlgmr.msra.gmra.mrb[72].mxu0 %vm351_vm4, %v2423_v44 }
0x187b   :  { %6852 = vmatpush3.bf16.msra.mxu0 %v8062_v58  ;;  %6855 = vmatprep.mubr.msk.bf16.mxu0 %vm7620_vm0, %v7619_v1  ;;  %v2509_v58 = vpop.f32.mrb[78].mxu1 }
0x187c   :  { %6853 = vmatprep.subr.bf16.mxu0 %v7619_v1  ;;  %v2510_v29 = vadd.f32 %v8083_v2, %v2509_v58  ;;  %v6850_v50 = vpop.f32.mrb[79].mxu1 }
0x187d   :  { %v2588_v26 = vpop.f32.mrb[80].mxu1 }
0x187e   :  { %v2595_v12 = vpack.c.bf16 %v2510_v29, %v2507_v47  ;;  %v6865_v45 = vpop.f32.mrb[81].mxu1  ;;  %v2589_v34 = vadd.f32 %v8124_v43, %v2588_v26 }
0x187f   :  { %6854 = vmatpush3.bf16.msra.mxu0 %v8069_v0  ;;  %v2591_v47 = vpop.f32.mrb[82].mxu1 }
0x1880   :  { %6867 = vmatprep.subr.bf16.mxu0 %v7619_v1  ;;  %v6866_v48 = vpop.f32.mrb[83].mxu1  ;;  %v2592_v58 = vadd.f32 %v8124_v43, %v2591_v47 }
0x1882   :  { %6856 = vmatmul.mubr.msk.bf16.vlgmr.msra.gmra.mrb[76].mxu0 %vm126_vm2, %v8249_v57  ;;  %v2669_v29 = vpack.c.bf16 %v2592_v58, %v2589_v34 }
0x1883   :  { %6869 = vmatprep.mubr.msk.bf16.mxu0 %vm7620_vm0, %v7619_v1 }
0x1884   :  { %v2674_v50 = vand.u32 %v2669_v29, %v7849_v59 }
0x1886   :  { %6874 = vmatpush3.bf16.msra.mxu1 %v2674_v50 }
0x1887   :  { %6887 = vmatprep.subr.bf16.mxu1 %v7619_v1 }
0x194d   :  { %v2465_v19 = vpop.f32.mrb[72].mxu0 }
0x194e   :  { %v6841_v13 = vpop.f32.mrb[73].mxu0 }
0x194f   :  { %v2468_v0 = vpop.f32.mrb[74].mxu0 }
0x1950   :  { %v7298_v51 = vpack.i.bf16 %v2468_v0, %v2465_v19  ;;  %v6842_v25 = vpop.f32.mrb[75].mxu0 }
0x1955   :  { %v2547_v7 = vpop.f32.mrb[76].mxu0 }
0x1956   :  { %v6857_v14 = vpop.f32.mrb[77].mxu0  ;;  %v2548_v54 = vadd.f32 %v8090_v32, %v2547_v7 }
0x1957   :  { %v2550_v57 = vpop.f32.mrb[78].mxu0 }
0x1958   :  { %v2551_v52 = vadd.f32 %v8090_v32, %v2550_v57  ;;  %v6858_v17 = vpop.f32.mrb[79].mxu0 }
0x195a   :  { %v2596_v60 = vpack.c.bf16 %v2551_v52, %v2548_v54 }
0x195c   :  { %v2601_v20 = vsel %vm301_vm3, %v2596_v60, 0 }
0x195d   :  { %6868 = vmatpush3.bf16.xpose.msra.mxu0 %v2601_v20 }
0x195e   :  { %6879 = vmatprep.subr.bf16.mxu0 %v7619_v1 }
0x1964   :  { %6870 = vmatmul.mubr.msk.bf16.vlgmr.msra.gmra.mrb[80].mxu0 %vm301_vm3, %v2595_v12 }
0x1965   :  { %6880 = vmatpush3.bf16.msra.mxu0 %v8141_v39  ;;  %6883 = vmatprep.mubr.msk.bf16.mxu0 %vm7620_vm0, %v7619_v1 }
0x1966   :  { %6881 = vmatprep.subr.bf16.mxu0 %v7619_v1 }
0x1969   :  { %6882 = vmatpush3.bf16.msra.mxu0 %v8148_v41 }
0x196a   :  { %6895 = vmatprep.subr.bf16.mxu0 %v7619_v1 }
0x1a37   :  { %v2637_v2 = vpop.f32.mrb[80].mxu0 }
0x1a38   :  { %v2644_v32 = vmul.f32 0.35355338, %v2637_v2  ;;  %v6871_v55 = vpop.f32.mrb[81].mxu0 }
0x1a39   :  { %v2640_v22 = vpop.f32.mrb[82].mxu0 }
0x1a3a   :  { %v2645_v24 = vmul.f32 0.35355338, %v2640_v22  ;;  %v6872_v31 = vpop.f32.mrb[83].mxu0  ;;  %v2646_v30 = vsel %vm351_vm4, %v2644_v32, -inf }
0x1a3b   :  { %2647 = vmax.xlane.f32.xlu1 %v2646_v30 }
0x1a3c   :  { %v2649_v39 = vsel %vm355_vm5, %v2645_v24, -inf }
0x1a3d   :  { %2650 = vmax.xlane.f32.xlu0 %v2649_v39 }
0x1ac8   :  { %v2648_v8 = vpop.xlane.xlu1 %2647 }
0x1ac9   :  { %v2652_v37 = vsub.f32 %v2644_v32, %v2648_v8 }
0x1aca   :  { %v2651_v46 = vpop.xlane.xlu0 %2650 }
0x1acb   :  { %v2654_v41 = vmul.f32 1.442695, %v2652_v37  ;;  %v2653_v28 = vsub.f32 %v2645_v24, %v2651_v46 }
0x1acd   :  { %7468 = vpow2.f32 %v2654_v41  ;;  %v2656_v15 = vmul.f32 1.442695, %v2653_v28 }
0x1acf   :  { %7470 = vpow2.f32 %v2656_v15 }
0x1ad7   :  { %v7469_v42 = vpop.eup %7468 }
0x1ad8   :  { %v2658_v27 = vsel %vm351_vm4, %v7469_v42, 0.0 }
0x1ad9   :  { %v7471_v18 = vpop.eup %7470  ;;  %2659 = vadd.xlane.f32.xlu1 %v2658_v27 }
0x1ada   :  { %v2661_v44 = vsel %vm355_vm5, %v7471_v18, 0.0 }
0x1adb   :  { %2662 = vadd.xlane.f32.xlu0 %v2661_v44 }
0x1aea   :  { %7294 = vrot.lane.b32.xlu1 %v7293_v36, %s9432_s27 }
0x1af1   :  { %7299 = vrot.lane.b32.xlu0 %v7298_v51, %s9433_s0 }
0x1b66   :  { %v2660_v12 = vpop.xlane.xlu1 %2659 }
0x1b67   :  { %7472 = vrcp.f32 %v2660_v12 }
0x1b68   :  { %v2663_v19 = vpop.xlane.xlu0 %2662 }
0x1b69   :  { %7474 = vrcp.f32 %v2663_v19 }
0x1b6a   :  { %v7295_v57 = vpop.permute.xlu1 %7294 }
0x1b6b   :  { %v7297_v54 = vunpack.i.h.bf16 %v7295_v57  ;;  %v7296_v52 = vunpack.i.l.bf16 %v7295_v57 }
0x1b6d   :  { %v2742_v20 = vsel %vm301_vm3, %v8358_v3, %v7297_v54 }
0x1b71   :  { %v7473_v6 = vpop.eup %7472 }
0x1b72   :  { %v2666_v36 = vmul.f32 %v7473_v6, %v7469_v42 }
0x1b73   :  { %v7475_v62 = vpop.eup %7474 }
0x1b74   :  { %v2667_v13 = vmul.f32 %v7475_v62, %v7471_v18 }
0x1b76   :  { %v2668_v0 = vpack.c.bf16 %v2667_v13, %v2666_v36 }
0x1b78   :  { %6876 = vmatmul.mubr.msk.bf16.vlgmr.msra.gmra.mrb[84].mxu1 %vm351_vm4, %v2668_v0 }
0x1b79   :  { %6888 = vmatpush3.bf16.msra.mxu1 %v8180_v9  ;;  %6891 = vmatprep.mubr.msk.bf16.mxu1 %vm7620_vm0, %v7619_v1  ;;  %v7300_v9 = vpop.permute.xlu0 %7299 }
0x1b7a   :  { %6889 = vmatprep.subr.bf16.mxu1 %v7619_v1  ;;  %v7302_v17 = vunpack.i.h.bf16 %v7300_v9  ;;  %v7301_v60 = vunpack.i.l.bf16 %v7300_v9 }
0x1b7c   :  { %v2744_v22 = vsel %vm1414_vm8, %v2742_v20, %v7302_v17 }
0x1b7d   :  { %6890 = vmatpush3.bf16.msra.mxu1 %v8187_v49  ;;  %v2741_v49 = vsel %vm301_vm3, %v8356_v63, %v7296_v52 }
0x1b7e   :  { %6907 = vmatprep.subr.bf16.mxu1 %v7619_v1  ;;  %v2743_v24 = vsel %vm1414_vm8, %v2741_v49, %v7301_v60 }
0x1c4b   :  { %v2710_v43 = vpop.f32.mrb[84].mxu1 }
0x1c4c   :  { %v6877_v51 = vpop.f32.mrb[85].mxu1 }
0x1c4d   :  { %v2713_v25 = vpop.f32.mrb[86].mxu1 }
0x1c4e   :  { %v7303_v7 = vpack.i.bf16 %v2713_v25, %v2710_v43  ;;  %v6878_v14 = vpop.f32.mrb[87].mxu1 }
0x1c50   :  { %7304 = vrot.lane.b32.xlu1 %v7303_v7, %s9434_s5 }
0x1cc2   :  { %v7305_v2 = vpop.permute.xlu1 %7304 }
0x1cc3   :  { %v7307_v32 = vunpack.i.h.bf16 %v7305_v2  ;;  %v7306_v55 = vunpack.i.l.bf16 %v7305_v2 }
0x1cc5   :  { %v2745_v31 = vsel %vm1417_vm9, %v2743_v24, %v7306_v55  ;;  %v2746_v30 = vsel %vm1417_vm9, %v2744_v22, %v7307_v32 }
0x1cc6   :  { %v2747_v39 = vpack.c.bf16 %v2746_v30, %v2745_v31  ;;  %v6086_v31 = vld [vmem:[%s9383_s17] ss:$0 sm:$0xff] }
0x1cc8   :  { %6884 = vmatmul.mubr.msk.bf16.vlgmr.msra.gmra.mrb[84].mxu0 %vm126_vm2, %v2747_v39 }
0x1cc9   :  { %6896 = vmatpush3.bf16.msra.mxu0 %v8194_v53  ;;  %6903 = vmatprep.mubr.msk.bf16.mxu0 %vm7620_vm0, %v7619_v1  ;;  %v6080_v53 = vld [vmem:[%s9382_s16] ss:$0 sm:$0xff] }
0x1cca   :  { %6897 = vmatprep.subr.bf16.mxu0 %v7619_v1  ;;  %v1684_v3 = vadd.f32 %v6080_v53, %v8331_v38  ;;  %v1681_v8 = vadd.f32 %v6080_v53, %v8329_v61 }
0x1ccc   :  { %v1688_v28 = vadd.f32 %v1684_v3, %v8227_v35  ;;  %v1687_v15 = vadd.f32 %v1681_v8, %v8224_v33 }
0x1ccd   :  { %6898 = vmatpush3.bf16.msra.mxu0 %v8200_v56 }
0x1cce   :  { %6899 = vmatprep.subr.bf16.mxu0 %v7619_v1  ;;  %v1694_v42 = vsel %vm1491_vm10, %v1688_v28, 0.0 }
0x1cd1   :  { %6900 = vmatpush3.bf16.msra.mxu0 %v8274_v23 }
0x1cd2   :  { %6901 = vmatprep.subr.bf16.mxu0 %v7619_v1 }
0x1cd5   :  { %6902 = vmatpush3.bf16.msra.mxu0 %v8281_v4 }
0x1cd6   :  { %6923 = vmatprep.subr.bf16.mxu0 %v7619_v1 }
0x1d9b   :  { %v2785_v63 = vpop.f32.mrb[84].mxu0 }
0x1d9c   :  { %v2786_v26 = vadd.f32 %v8167_v21, %v2785_v63  ;;  %v6885_v56 = vpop.f32.mrb[85].mxu0 }
0x1d9d   :  { %v2788_v45 = vpop.f32.mrb[86].mxu0 }
0x1d9e   :  { %v2789_v23 = vadd.f32 %v8167_v21, %v2788_v45  ;;  %v6886_v37 = vpop.f32.mrb[87].mxu0  ;;  %v2792_v4 = vadd.f32 %v2786_v26, %v8244_v10  ;;  %v1691_v21 = vsel %vm126_vm2, %v1687_v15, 0.0  ;;  %v7370_v26 = vld [vmem:[%s9423_s1 + $0x40] sm:$0xff]  }
0x1d9f   :  { %v6087_v45 = vld [vmem:[%s9384_s18] ss:$0 sm:$0xff] }
0x1da0   :  { %v2794_v46 = vsel %vm126_vm2, %v2792_v4, 0.0  ;;  %v2793_v41 = vadd.f32 %v2789_v23, %v8229_v40 }
0x1da1   :  { %2795 = vadd.xlane.f32.xlu1 %v2794_v46 }
0x1da2   :  { %v2797_v38 = vsel %vm1491_vm10, %v2793_v41, 0.0 }
0x1da3   :  { %2798 = vadd.xlane.f32.xlu0 %v2797_v38 }
0x1da5   :  { %1695 = vadd.xlane.f32.xlu1 %v1694_v42 }
0x1da7   :  { %1692 = vadd.xlane.f32.xlu0 %v1691_v21 }
0x1e2e   :  { %v2796_v61 = vpop.xlane.xlu1 %2795 }
0x1e2f   :  { %v2800_v10 = vmul.f32 0.03125, %v2796_v61 }
0x1e30   :  { %v2799_v27 = vpop.xlane.xlu0 %2798 }
0x1e31   :  { %v2802_v18 = vsub.f32 %v2792_v4, %v2800_v10  ;;  %v2801_v44 = vmul.f32 0.03125, %v2799_v27  ;;  %v7372_v4 = vld [vmem:[%s9422_s6 + $0x40] sm:$0xff]  }
0x1e32   :  { %v1696_v40 = vpop.xlane.xlu1 %1695 }
0x1e33   :  { %v2803_v34 = vsub.f32 %v2793_v41, %v2801_v44  ;;  %v1698_v35 = vmul.f32 0.03125, %v1696_v40  ;;  %v2804_v47 = vmul.f32 %v2802_v18, %v2802_v18  ;;  %v7373_v41 = vld [vmem:[%s9422_s6 + $0x48] sm:$0xff]   ;;  %v6120_v40 = vld [vmem:[%s9427_s8 + $0x4] ss:$0 sm:$0xff] }
0x1e34   :  { %v1693_v48 = vpop.xlane.xlu0 %1692 }
0x1e35   :  { %v1700_v58 = vsub.f32 %v1688_v28, %v1698_v35  ;;  %v1697_v29 = vmul.f32 0.03125, %v1693_v48  ;;  %v2806_v33 = vsel %vm126_vm2, %v2804_v47, 0.0  ;;  %v2805_v50 = vmul.f32 %v2803_v34, %v2803_v34 }
0x1e36   :  { %2807 = vadd.xlane.f32.xlu0 %v2806_v33 }
0x1e37   :  { %v1699_v12 = vsub.f32 %v1687_v15, %v1697_v29  ;;  %v2809_v19 = vsel %vm1491_vm10, %v2805_v50, 0.0  ;;  %v1702_v6 = vmul.f32 %v1700_v58, %v1700_v58  ;;  %v6129_v50 = vld [vmem:[%s9428_s9 + $0x4] ss:$0 sm:$0xff] }
0x1e38   :  { %2810 = vadd.xlane.f32.xlu1 %v2809_v19 }
0x1e39   :  { %v1701_v62 = vmul.f32 %v1699_v12, %v1699_v12  ;;  %v1706_v36 = vsel %vm1491_vm10, %v1702_v6, 0.0 }
0x1e3b   :  { %v1703_v13 = vsel %vm126_vm2, %v1701_v62, 0.0 }
0x1e3c   :  { %1707 = vadd.xlane.f32.xlu1 %v1706_v36  ;;  %1704 = vadd.xlane.f32.xlu0 %v1703_v13 }
0x1ec3   :  { %v2808_v0 = vpop.xlane.xlu0 %2807 }
0x1ec4   :  { %v2812_v43 = vmul.f32 0.03125, %v2808_v0 }
0x1ec5   :  { %v2811_v51 = vpop.xlane.xlu1 %2810 }
0x1ec6   :  { %v2814_v25 = vadd.f32 1e-05, %v2812_v43  ;;  %v2813_v7 = vmul.f32 0.03125, %v2811_v51  ;;  %v7376_v51 = vld [vmem:[%s9423_s1 + $0x50] sm:$0xff]  }
0x1ec8   :  { %7476 = vrsqrt.f32 %v2814_v25  ;;  %v2815_v14 = vadd.f32 1e-05, %v2813_v7  ;;  %v7377_v25 = vld [vmem:[%s9423_s1 + $0x58] sm:$0xff]   ;;  %v7378_v7 = vld [vmem:[%s9429_s2 + $0x50] sm:$0xff]  }
0x1ec9   :  { %v1708_v57 = vpop.xlane.xlu1 %1707  ;;  %v1705_v54 = vpop.xlane.xlu0 %1704 }
0x1eca   :  { %7478 = vrsqrt.f32 %v2815_v14  ;;  %v1710_v52 = vmul.f32 0.03125, %v1708_v57  ;;  %v1709_v9 = vmul.f32 0.03125, %v1705_v54  ;;  %v7379_v14 = vld [vmem:[%s9429_s2 + $0x58] sm:$0xff]  }
0x1ecc   :  { %v1712_v17 = vadd.f32 1e-05, %v1710_v52  ;;  %v1711_v60 = vadd.f32 1e-05, %v1709_v9 }
0x1ece   :  { %7480 = vrsqrt.f32 %v1712_v17  ;;  %v6138_v17 = vld [vmem:[%s9430_s28 + $0x4] ss:$0 sm:$0xff] }
0x1ecf   :  { %7482 = vrsqrt.f32 %v1711_v60 }
0x1ed2   :  { %v7477_v20 = vpop.eup %7476 }
0x1ed3   :  { %v2818_v49 = vmul.f32 %v7477_v20, %v2802_v18  ;;  %v7374_v18 = vld [vmem:[%s9429_s2 + $0x40] sm:$0xff]  }
0x1ed4   :  { %v7479_v2 = vpop.eup %7478 }
0x1ed5   :  { %v2820_v32 = vmul.f32 %v8208_v16, %v2818_v49  ;;  %v2819_v55 = vmul.f32 %v7479_v2, %v2803_v34 }
0x1ed7   :  { %v2821_v22 = vmul.f32 %v8208_v16, %v2819_v55  ;;  %v8530_v53 = vadd.f32 %v8217_v11, %v2820_v32 }
0x1ed8   :  { %v7481_v24 = vpop.eup %7480 }
0x1ed9   :  { %v7483_v30 = vpop.eup %7482  ;;  %v1716_v39 = vmul.f32 %v7481_v24, %v1700_v58  ;;  %v8533_v63 = vadd.f32 %v8217_v11, %v2821_v22  ;;  %v7371_v11 = vld [vmem:[%s9423_s1 + $0x48] sm:$0xff]  }
0x1eda   :  { %v1715_v3 = vmul.f32 %v7483_v30, %v1699_v12 }
0x1edb   :  { %v1724_v56 = vmul.f32 %v6086_v31, %v1716_v39  ;;  %v2824_v16 = vpack.c.bf16 %v8533_v63, %v8530_v53 }
0x1edc   :  { %v1723_v8 = vmul.f32 %v6086_v31, %v1715_v3 }
0x1edd   :  { %6892 = vmatmul.mubr.msk.bf16.vlgmr.msra.gmra.mrb[88].mxu1 %vm126_vm2, %v2824_v16  ;;  %v8549_v23 = vadd.f32 %v6087_v45, %v1724_v56 }
0x1ede   :  { %6908 = vmatpush3.bf16.msra.mxu1 %v7370_v26  ;;  %6911 = vmatprep.mubr.msk.bf16.mxu1 %vm7620_vm0, %v7619_v1  ;;  %v8551_v37 = vadd.f32 %v6087_v45, %v1723_v8  ;;  %v6149_v8 = vld [vmem:[%s9427_s8 + $0x5] ss:$0 sm:$0xff] }
0x1edf   :  { %6909 = vmatprep.subr.bf16.mxu1 %v7619_v1 }
0x1ee0   :  { %v8559_v46 = vpack.c.bf16 %v8549_v23, %v8551_v37 }
0x1ee2   :  { %6910 = vmatpush3.bf16.msra.mxu1 %v7371_v11 }
0x1ee3   :  { %6915 = vmatprep.subr.bf16.mxu1 %v7619_v1 }
0x1ee5   :  { %6912 = vmatmul.mubr.msk.bf16.vlgmr.msra.gmra.mrb[92].mxu1 %vm126_vm2, %v8559_v46 }
0x1ee6   :  { %6916 = vmatpush3.bf16.msra.mxu1 %v7372_v4  ;;  %6919 = vmatprep.mubr.msk.bf16.mxu1 %vm7620_vm0, %v7619_v1 }
0x1ee7   :  { %6917 = vmatprep.subr.bf16.mxu1 %v7619_v1 }
0x1eea   :  { %6918 = vmatpush3.bf16.msra.mxu1 %v7373_v41 }
0x1eeb   :  { %6931 = vmatprep.subr.bf16.mxu1 %v7619_v1 }
0x1eed   :  { %6920 = vmatmul.mubr.msk.bf16.vlgmr.msra.gmra.mrb[96].mxu1 %vm126_vm2, %v8559_v46 }
0x1eee   :  { %6933 = vmatprep.mubr.msk.bf16.mxu1 %vm7620_vm0, %v7619_v1 }
0x1fb0   :  { %v2862_v28 = vpop.f32.mrb[88].mxu1 }
0x1fb1   :  { %v2863_v38 = vadd.f32 %v8288_v5, %v2862_v28  ;;  %v6893_v15 = vpop.f32.mrb[89].mxu1 }
0x1fb2   :  { %v2865_v42 = vpop.f32.mrb[90].mxu1 }
0x1fb3   :  { %v2866_v21 = vadd.f32 %v8288_v5, %v2865_v42  ;;  %v6894_v61 = vpop.f32.mrb[91].mxu1  ;;  %v2869_v10 = vmax.f32 %v2863_v38, 0.0  ;;  %v7375_v5 = vld [vmem:[%s9429_s2 + $0x48] sm:$0xff]  }
0x1fb5   :  { %v2870_v27 = vmax.f32 %v2866_v21, 0.0  ;;  %v6167_v21 = vld [vmem:[%s9430_s28 + $0x5] ss:$0 sm:$0xff] }
0x1fb7   :  { %v2871_v44 = vpack.c.bf16 %v2870_v27, %v2869_v10 }
0x1fb8   :  { %v3016_v34 = vpop.f32.mrb[92].mxu1 }
0x1fb9   :  { %6904 = vmatmul.mubr.msk.bf16.vlgmr.msra.gmra.mrb[88].mxu0 %vm1642_vm11, %v2871_v44  ;;  %v6913_v35 = vpop.f32.mrb[93].mxu1  ;;  %v3017_v48 = vadd.f32 %v6120_v40, %v3016_v34 }
0x1fba   :  { %v3019_v47 = vpop.f32.mrb[94].mxu1  ;;  %6924 = vmatpush3.bf16.msra.mxu0 %v7374_v18  ;;  %6927 = vmatprep.mubr.msk.bf16.mxu0 %vm7620_vm0, %v7619_v1 }
0x1fbb   :  { %v3020_v58 = vadd.f32 %v6120_v40, %v3019_v47  ;;  %v6914_v29 = vpop.f32.mrb[95].mxu1  ;;  %6925 = vmatprep.subr.bf16.mxu0 %v7619_v1 }
0x1fbd   :  { %v3155_v33 = vpack.c.bf16 %v3020_v58, %v3017_v48 }
0x1fbe   :  { %6926 = vmatpush3.bf16.msra.mxu0 %v7375_v5 }
0x1fbf   :  { %6937 = vmatprep.subr.bf16.mxu0 %v7619_v1 }
0x1fc0   :  { %v3082_v12 = vpop.f32.mrb[96].mxu1 }
0x1fc1   :  { %v6921_v19 = vpop.f32.mrb[97].mxu1  ;;  %6928 = vmatmul.mubr.msk.bf16.vlgmr.msra.gmra.mrb[92].mxu0 %vm126_vm2, %v8559_v46  ;;  %v3083_v62 = vadd.f32 %v6129_v50, %v3082_v12 }
0x1fc2   :  { %v3085_v6 = vpop.f32.mrb[98].mxu1  ;;  %6939 = vmatprep.mubr.msk.bf16.mxu0 %vm7620_vm0, %v7619_v1 }
0x1fc3   :  { %v3086_v36 = vadd.f32 %v6129_v50, %v3085_v6  ;;  %v6922_v13 = vpop.f32.mrb[99].mxu1 }
0x1fc5   :  { %v3156_v0 = vpack.c.bf16 %v3086_v36, %v3083_v62 }
0x1fc7   :  { %v3161_v43 = vsel %vm301_vm3, %v3156_v0, 0 }
0x1fc8   :  { %6932 = vmatpush3.bf16.xpose.msra.mxu1 %v3161_v43 }
0x1fc9   :  { %6943 = vmatprep.subr.bf16.mxu1 %v7619_v1 }
0x1fcf   :  { %6934 = vmatmul.mubr.msk.bf16.vlgmr.msra.gmra.mrb[100].mxu1 %vm301_vm3, %v3155_v33 }
0x1fd0   :  { %6944 = vmatpush3.bf16.msra.mxu1 %v7376_v51  ;;  %6947 = vmatprep.mubr.msk.bf16.mxu1 %vm7620_vm0, %v7619_v1 }
0x1fd1   :  { %6945 = vmatprep.subr.bf16.mxu1 %v7619_v1 }
0x1fd4   :  { %6946 = vmatpush3.bf16.msra.mxu1 %v7377_v25  ;;  %v7380_v25 = vld [vmem:[%s9422_s6 + $0x50] sm:$0xff]  }
0x1fd5   :  { %6959 = vmatprep.subr.bf16.mxu1 %v7619_v1 }
0x1fd7   :  { %6948 = vmatmul.mubr.msk.bf16.vlgmr.msra.gmra.mrb[104].mxu1 %vm126_vm2, %v8559_v46 }
0x1fd8   :  { %6960 = vmatpush3.bf16.msra.mxu1 %v7378_v7  ;;  %6963 = vmatprep.mubr.msk.bf16.mxu1 %vm7620_vm0, %v7619_v1 }
0x1fd9   :  { %6961 = vmatprep.subr.bf16.mxu1 %v7619_v1 }
0x1fdc   :  { %6962 = vmatpush3.bf16.msra.mxu1 %v7379_v14  ;;  %v7381_v14 = vld [vmem:[%s9422_s6 + $0x58] sm:$0xff]  }
0x1fdd   :  { %6973 = vmatprep.subr.bf16.mxu1 %v7619_v1 }
0x1fdf   :  { %6964 = vmatmul.mubr.msk.bf16.vlgmr.msra.gmra.mrb[108].mxu1 %vm126_vm2, %v8559_v46 }
0x1fe0   :  { %6975 = vmatprep.mubr.msk.bf16.mxu1 %vm7620_vm0, %v7619_v1 }
0x208c   :  { %v8627_v57 = vpop.f32.mrb[88].mxu0 }
0x208d   :  { %v6905_v54 = vpop.f32.mrb[89].mxu0 }
0x208e   :  { %v8629_v52 = vpop.f32.mrb[90].mxu0 }
0x208f   :  { %v6906_v9 = vpop.f32.mrb[91].mxu0 }
0x2094   :  { %v3148_v60 = vpop.f32.mrb[92].mxu0 }
0x2095   :  { %v6929_v20 = vpop.f32.mrb[93].mxu0  ;;  %v3149_v2 = vadd.f32 %v6138_v17, %v3148_v60 }
0x2096   :  { %v3151_v49 = vpop.f32.mrb[94].mxu0  ;;  %v6158_v20 = vld [vmem:[%s9428_s9 + $0x5] ss:$0 sm:$0xff] }
0x2097   :  { %v3152_v32 = vadd.f32 %v6138_v17, %v3151_v49  ;;  %v6930_v55 = vpop.f32.mrb[95].mxu0 }
0x2099   :  { %v3229_v22 = vpack.c.bf16 %v3152_v32, %v3149_v2 }
0x209b   :  { %v3234_v24 = vand.u32 %v3229_v22, %v7849_v59 }
0x209d   :  { %6938 = vmatpush3.bf16.msra.mxu0 %v3234_v24 }
0x209e   :  { %6951 = vmatprep.subr.bf16.mxu0 %v7619_v1 }
0x20a2   :  { %v3197_v31 = vpop.f32.mrb[100].mxu1 }
0x20a3   :  { %v3204_v30 = vmul.f32 0.35355338, %v3197_v31  ;;  %v6935_v39 = vpop.f32.mrb[101].mxu1 }
0x20a4   :  { %v3200_v3 = vpop.f32.mrb[102].mxu1  ;;  %v8681_v39 = vld [vmem:[%s9423_s1 + $0x60] sm:$0xff]  }
0x20a5   :  { %v3205_v26 = vmul.f32 0.35355338, %v3200_v3  ;;  %v6936_v56 = vpop.f32.mrb[103].mxu1  ;;  %v3206_v16 = vsel %vm351_vm4, %v3204_v30, -inf  ;;  %v8688_v3 = vld [vmem:[%s9423_s1 + $0x68] sm:$0xff]  }
0x20a6   :  { %3207 = vmax.xlane.f32.xlu0 %v3206_v16  ;;  %v8706_v56 = vld [vmem:[%s9429_s2 + $0x68] sm:$0xff]  }
0x20a7   :  { %v3209_v45 = vsel %vm355_vm5, %v3205_v26, -inf }
0x20a8   :  { %3210 = vmax.xlane.f32.xlu1 %v3209_v45 }
0x20aa   :  { %v3336_v11 = vpop.f32.mrb[104].mxu1 }
0x20ab   :  { %v6949_v4 = vpop.f32.mrb[105].mxu1  ;;  %v8641_v28 = vadd.f32 %v6149_v8, %v3336_v11 }
0x20ac   :  { %v3339_v41 = vpop.f32.mrb[106].mxu1 }
0x20ad   :  { %v8643_v38 = vadd.f32 %v6149_v8, %v3339_v41  ;;  %v6950_v15 = vpop.f32.mrb[107].mxu1 }
0x20ae   :  { %v8722_v15 = vld [vmem:[%s9427_s8 + $0x6] ss:$0 sm:$0xff] }
0x20af   :  { %v3475_v42 = vpack.c.bf16 %v8643_v38, %v8641_v28 }
0x20b2   :  { %v3468_v61 = vpop.f32.mrb[108].mxu1 }
0x20b3   :  { %v6965_v10 = vpop.f32.mrb[109].mxu1  ;;  %v3469_v18 = vadd.f32 %v6167_v21, %v3468_v61 }
0x20b4   :  { %v3471_v27 = vpop.f32.mrb[110].mxu1 }
0x20b5   :  { %v3472_v44 = vadd.f32 %v6167_v21, %v3471_v27  ;;  %v6966_v40 = vpop.f32.mrb[111].mxu1 }
0x20b6   :  { %v8735_v40 = vld [vmem:[%s9430_s28 + $0x6] ss:$0 sm:$0xff] }
0x20b7   :  { %v3549_v34 = vpack.c.bf16 %v3472_v44, %v3469_v18 }
0x20b9   :  { %v3554_v35 = vand.u32 %v3549_v34, %v7849_v59 }
0x20bb   :  { %6974 = vmatpush3.bf16.msra.mxu1 %v3554_v35 }
0x20bc   :  { %6987 = vmatprep.subr.bf16.mxu1 %v7619_v1 }
0x2133   :  { %v3208_v47 = vpop.xlane.xlu0 %3207 }
0x2134   :  { %v3212_v5 = vsub.f32 %v3204_v30, %v3208_v47 }
0x2135   :  { %v3211_v48 = vpop.xlane.xlu1 %3210 }
0x2136   :  { %v3214_v58 = vmul.f32 1.442695, %v3212_v5  ;;  %v3213_v29 = vsub.f32 %v3205_v26, %v3211_v48  ;;  %v8697_v26 = vld [vmem:[%s9429_s2 + $0x60] sm:$0xff]  }
0x2138   :  { %7484 = vpow2.f32 %v3214_v58  ;;  %v3216_v33 = vmul.f32 1.442695, %v3213_v29 }
0x213a   :  { %7486 = vpow2.f32 %v3216_v33 }
0x2142   :  { %v7485_v50 = vpop.eup %7484 }
0x2143   :  { %v3218_v12 = vsel %vm351_vm4, %v7485_v50, 0.0 }
0x2144   :  { %v7487_v19 = vpop.eup %7486  ;;  %3219 = vadd.xlane.f32.xlu0 %v3218_v12 }
0x2145   :  { %v3221_v6 = vsel %vm355_vm5, %v7487_v19, 0.0 }
0x2146   :  { %3222 = vadd.xlane.f32.xlu1 %v3221_v6 }
0x21d1   :  { %v3220_v62 = vpop.xlane.xlu0 %3219 }
0x21d2   :  { %7488 = vrcp.f32 %v3220_v62 }
0x21d3   :  { %v3223_v36 = vpop.xlane.xlu1 %3222 }
0x21d4   :  { %7490 = vrcp.f32 %v3223_v36 }
0x21dc   :  { %v7489_v13 = vpop.eup %7488 }
0x21dd   :  { %v3226_v43 = vmul.f32 %v7489_v13, %v7485_v50 }
0x21de   :  { %v7491_v0 = vpop.eup %7490 }
0x21df   :  { %v3227_v51 = vmul.f32 %v7491_v0, %v7487_v19 }
0x21e1   :  { %v3228_v7 = vpack.c.bf16 %v3227_v51, %v3226_v43 }
0x21e3   :  { %6940 = vmatmul.mubr.msk.bf16.vlgmr.msra.gmra.mrb[96].mxu0 %vm351_vm4, %v3228_v7 }
0x21e4   :  { %6952 = vmatpush3.bf16.msra.mxu0 %v7380_v25  ;;  %6955 = vmatprep.mubr.msk.bf16.mxu0 %vm7620_vm0, %v7619_v1 }
0x21e5   :  { %6953 = vmatprep.subr.bf16.mxu0 %v7619_v1 }
0x21e8   :  { %6954 = vmatpush3.bf16.msra.mxu0 %v7381_v14 }
0x21e9   :  { %6967 = vmatprep.subr.bf16.mxu0 %v7619_v1 }
0x21eb   :  { %6956 = vmatmul.mubr.msk.bf16.vlgmr.msra.gmra.mrb[100].mxu0 %vm126_vm2, %v8559_v46 }
0x21ec   :  { %6969 = vmatprep.mubr.msk.bf16.mxu0 %vm7620_vm0, %v7619_v1 }
0x22b6   :  { %v8669_v54 = vpop.f32.mrb[96].mxu0 }
0x22b7   :  { %v6941_v9 = vpop.f32.mrb[97].mxu0 }
0x22b8   :  { %v8671_v17 = vpop.f32.mrb[98].mxu0 }
0x22b9   :  { %v6942_v60 = vpop.f32.mrb[99].mxu0 }
0x22be   :  { %v3402_v49 = vpop.f32.mrb[100].mxu0 }
0x22bf   :  { %v6957_v2 = vpop.f32.mrb[101].mxu0  ;;  %v3403_v55 = vadd.f32 %v6158_v20, %v3402_v49  ;;  %v8746_v49 = vld [vmem:[%s9422_s6 + $0x60] sm:$0xff]  }
0x22c0   :  { %v3405_v32 = vpop.f32.mrb[102].mxu0 }
0x22c1   :  { %v3406_v22 = vadd.f32 %v6158_v20, %v3405_v32  ;;  %v6958_v24 = vpop.f32.mrb[103].mxu0  ;;  %v8753_v32 = vld [vmem:[%s9422_s6 + $0x68] sm:$0xff]  }
0x22c3   :  { %v3476_v31 = vpack.c.bf16 %v3406_v22, %v3403_v55 }
0x22c5   :  { %v3481_v30 = vsel %vm301_vm3, %v3476_v31, 0 }
0x22c6   :  { %6968 = vmatpush3.bf16.xpose.msra.mxu0 %v3481_v30 }
0x22c7   :  { %6979 = vmatprep.subr.bf16.mxu0 %v7619_v1 }
0x22cd   :  { %6970 = vmatmul.mubr.msk.bf16.vlgmr.msra.gmra.mrb[104].mxu0 %vm301_vm3, %v3475_v42 }
0x22ce   :  { %6980 = vmatpush3.bf16.msra.mxu0 %v8681_v39  ;;  %6983 = vmatprep.mubr.msk.bf16.mxu0 %vm7620_vm0, %v7619_v1 }
0x22cf   :  { %6981 = vmatprep.subr.bf16.mxu0 %v7619_v1 }
0x22d2   :  { %6982 = vmatpush3.bf16.msra.mxu0 %v8688_v3 }
0x22d3   :  { %6995 = vmatprep.subr.bf16.mxu0 %v7619_v1 }
0x22d5   :  { %6984 = vmatmul.mubr.msk.bf16.vlgmr.msra.gmra.mrb[108].mxu0 %vm126_vm2, %v8559_v46 }
0x22d6   :  { %6996 = vmatpush3.bf16.msra.mxu0 %v8697_v26  ;;  %6999 = vmatprep.mubr.msk.bf16.mxu0 %vm7620_vm0, %v7619_v1 }
0x22d7   :  { %6997 = vmatprep.subr.bf16.mxu0 %v7619_v1 }
0x22da   :  { %6998 = vmatpush3.bf16.msra.mxu0 %v8706_v56 }
0x22db   :  { %7009 = vmatprep.subr.bf16.mxu0 %v7619_v1 }
0x22dd   :  { %7000 = vmatmul.mubr.msk.bf16.vlgmr.msra.gmra.mrb[112].mxu0 %vm126_vm2, %v8559_v46 }
0x22de   :  { %7011 = vmatprep.mubr.msk.bf16.mxu0 %vm7620_vm0, %v7619_v1 }
0x23a0   :  { %v3517_v16 = vpop.f32.mrb[104].mxu0 }
0x23a1   :  { %v3524_v45 = vmul.f32 0.35355338, %v3517_v16  ;;  %v6971_v8 = vpop.f32.mrb[105].mxu0  ;;  %v8773_v16 = vld [vmem:[%s9428_s9 + $0x6] ss:$0 sm:$0xff] }
0x23a2   :  { %v3520_v11 = vpop.f32.mrb[106].mxu0 }
0x23a3   :  { %v3525_v4 = vmul.f32 0.35355338, %v3520_v11  ;;  %v6972_v41 = vpop.f32.mrb[107].mxu0  ;;  %v3526_v28 = vsel %vm351_vm4, %v3524_v45, -inf }
0x23a4   :  { %3527 = vmax.xlane.f32.xlu0 %v3526_v28 }
0x23a5   :  { %v3529_v38 = vsel %vm355_vm5, %v3525_v4, -inf }
0x23a6   :  { %3530 = vmax.xlane.f32.xlu1 %v3529_v38 }
0x23a8   :  { %v3656_v42 = vpop.f32.mrb[108].mxu0 }
0x23a9   :  { %v6985_v21 = vpop.f32.mrb[109].mxu0  ;;  %v8725_v10 = vadd.f32 %v8722_v15, %v3656_v42 }
0x23aa   :  { %v3659_v61 = vpop.f32.mrb[110].mxu0  ;;  %v8782_v21 = vld [vmem:[%s9423_s1 + $0x70] sm:$0xff]  }
0x23ab   :  { %v8728_v27 = vadd.f32 %v8722_v15, %v3659_v61  ;;  %v6986_v18 = vpop.f32.mrb[111].mxu0  ;;  %v8789_v61 = vld [vmem:[%s9423_s1 + $0x78] sm:$0xff]  }
0x23ad   :  { %v3795_v44 = vpack.c.bf16 %v8728_v27, %v8725_v10  ;;  %v8798_v10 = vld [vmem:[%s9429_s2 + $0x70] sm:$0xff]   ;;  %v8807_v27 = vld [vmem:[%s9429_s2 + $0x78] sm:$0xff]  }
0x23b0   :  { %v3788_v34 = vpop.f32.mrb[112].mxu0 }
0x23b1   :  { %v7001_v35 = vpop.f32.mrb[113].mxu0  ;;  %v3789_v5 = vadd.f32 %v8735_v40, %v3788_v34 }
0x23b2   :  { %v3791_v47 = vpop.f32.mrb[114].mxu0 }
0x23b3   :  { %v3792_v48 = vadd.f32 %v8735_v40, %v3791_v47  ;;  %v7002_v58 = vpop.f32.mrb[115].mxu0 }
0x23b5   :  { %v3869_v29 = vpack.c.bf16 %v3792_v48, %v3789_v5 }
0x23b7   :  { %v3874_v33 = vand.u32 %v3869_v29, %v7849_v59  ;;  %v8823_v29 = vld [vmem:[%s9427_s8 + $0x7] ss:$0 sm:$0xff] }
0x23b9   :  { %7010 = vmatpush3.bf16.msra.mxu0 %v3874_v33 }
0x23ba   :  { %7023 = vmatprep.subr.bf16.mxu0 %v7619_v1 }
0x2431   :  { %v3528_v50 = vpop.xlane.xlu0 %3527 }
0x2432   :  { %v3532_v12 = vsub.f32 %v3524_v45, %v3528_v50 }
0x2433   :  { %v3531_v19 = vpop.xlane.xlu1 %3530 }
0x2434   :  { %v3534_v6 = vmul.f32 1.442695, %v3532_v12  ;;  %v3533_v62 = vsub.f32 %v3525_v4, %v3531_v19 }
0x2436   :  { %7492 = vpow2.f32 %v3534_v6  ;;  %v3536_v36 = vmul.f32 1.442695, %v3533_v62 }
0x2438   :  { %7494 = vpow2.f32 %v3536_v36 }
0x2440   :  { %v7493_v13 = vpop.eup %7492 }
0x2441   :  { %v3538_v0 = vsel %vm351_vm4, %v7493_v13, 0.0 }
0x2442   :  { %v7495_v43 = vpop.eup %7494  ;;  %3539 = vadd.xlane.f32.xlu0 %v3538_v0 }
0x2443   :  { %v3541_v51 = vsel %vm355_vm5, %v7495_v43, 0.0 }
0x2444   :  { %3542 = vadd.xlane.f32.xlu1 %v3541_v51 }
0x24cf   :  { %v3540_v25 = vpop.xlane.xlu0 %3539 }
0x24d0   :  { %7496 = vrcp.f32 %v3540_v25 }
0x24d1   :  { %v3543_v7 = vpop.xlane.xlu1 %3542 }
0x24d2   :  { %7498 = vrcp.f32 %v3543_v7 }
0x24da   :  { %v7497_v14 = vpop.eup %7496 }
0x24db   :  { %v3546_v60 = vmul.f32 %v7497_v14, %v7493_v13  ;;  %v8836_v13 = vld [vmem:[%s9430_s28 + $0x7] ss:$0 sm:$0xff] }
0x24dc   :  { %v7499_v9 = vpop.eup %7498 }
0x24dd   :  { %v3547_v20 = vmul.f32 %v7499_v9, %v7495_v43 }
0x24df   :  { %v3548_v2 = vpack.c.bf16 %v3547_v20, %v3546_v60 }
0x24e1   :  { %6976 = vmatmul.mubr.msk.bf16.vlgmr.msra.gmra.mrb[112].mxu1 %vm351_vm4, %v3548_v2 }
0x24e2   :  { %6988 = vmatpush3.bf16.msra.mxu1 %v8746_v49  ;;  %6991 = vmatprep.mubr.msk.bf16.mxu1 %vm7620_vm0, %v7619_v1 }
0x24e3   :  { %6989 = vmatprep.subr.bf16.mxu1 %v7619_v1 }
0x24e6   :  { %6990 = vmatpush3.bf16.msra.mxu1 %v8753_v32 }
0x24e7   :  { %7003 = vmatprep.subr.bf16.mxu1 %v7619_v1 }
0x24e9   :  { %6992 = vmatmul.mubr.msk.bf16.vlgmr.msra.gmra.mrb[116].mxu1 %vm126_vm2, %v8559_v46 }
0x24ea   :  { %7005 = vmatprep.mubr.msk.bf16.mxu1 %vm7620_vm0, %v7619_v1 }
0x25b4   :  { %v8764_v55 = vpop.f32.mrb[112].mxu1 }
0x25b5   :  { %v6977_v22 = vpop.f32.mrb[113].mxu1 }
0x25b6   :  { %v8766_v24 = vpop.f32.mrb[114].mxu1 }
0x25b7   :  { %v7308_v31 = vpack.i.bf16 %v8766_v24, %v8764_v55  ;;  %v6978_v30 = vpop.f32.mrb[115].mxu1  ;;  %v8899_v55 = vld [vmem:[%s9431_s26 + $0x18] sm:$0xff]  }
0x25bc   :  { %v3722_v45 = vpop.f32.mrb[116].mxu1 }
0x25bd   :  { %v6993_v8 = vpop.f32.mrb[117].mxu1  ;;  %v3723_v4 = vadd.f32 %v8773_v16, %v3722_v45 }
0x25be   :  { %v3725_v11 = vpop.f32.mrb[118].mxu1 }
0x25bf   :  { %v3726_v41 = vadd.f32 %v8773_v16, %v3725_v11  ;;  %v6994_v28 = vpop.f32.mrb[119].mxu1 }
0x25c1   :  { %v3796_v38 = vpack.c.bf16 %v3726_v41, %v3723_v4 }
0x25c3   :  { %v3801_v42 = vsel %vm301_vm3, %v3796_v38, 0 }
0x25c4   :  { %7004 = vmatpush3.bf16.xpose.msra.mxu1 %v3801_v42 }
0x25c5   :  { %7015 = vmatprep.subr.bf16.mxu1 %v7619_v1 }
0x25cb   :  { %7006 = vmatmul.mubr.msk.bf16.vlgmr.msra.gmra.mrb[120].mxu1 %vm301_vm3, %v3795_v44 }
0x25cc   :  { %7016 = vmatpush3.bf16.msra.mxu1 %v8782_v21  ;;  %7019 = vmatprep.mubr.msk.bf16.mxu1 %vm7620_vm0, %v7619_v1 }
0x25cd   :  { %7017 = vmatprep.subr.bf16.mxu1 %v7619_v1 }
0x25d0   :  { %7018 = vmatpush3.bf16.msra.mxu1 %v8789_v61 }
0x25d1   :  { %7031 = vmatprep.subr.bf16.mxu1 %v7619_v1 }
0x25d3   :  { %7020 = vmatmul.mubr.msk.bf16.vlgmr.msra.gmra.mrb[124].mxu1 %vm126_vm2, %v8559_v46 }
0x25d4   :  { %7032 = vmatpush3.bf16.msra.mxu1 %v8798_v10  ;;  %7035 = vmatprep.mubr.msk.bf16.mxu1 %vm7620_vm0, %v7619_v1 }
0x25d5   :  { %7033 = vmatprep.subr.bf16.mxu1 %v7619_v1 }
0x25d8   :  { %7034 = vmatpush3.bf16.msra.mxu1 %v8807_v27 }
0x25d9   :  { %7045 = vmatprep.subr.bf16.mxu1 %v7619_v1 }
0x25db   :  { %7036 = vmatmul.mubr.msk.bf16.vlgmr.msra.gmra.mrb[128].mxu1 %vm126_vm2, %v8559_v46 }
0x25dc   :  { %7047 = vmatprep.mubr.msk.bf16.mxu1 %vm7620_vm0, %v7619_v1 }
0x269e   :  { %v3837_v18 = vpop.f32.mrb[120].mxu1 }
0x269f   :  { %v3844_v44 = vmul.f32 0.35355338, %v3837_v18  ;;  %v7007_v34 = vpop.f32.mrb[121].mxu1 }
0x26a0   :  { %v3840_v35 = vpop.f32.mrb[122].mxu1 }
0x26a1   :  { %v3845_v47 = vmul.f32 0.35355338, %v3840_v35  ;;  %v7008_v5 = vpop.f32.mrb[123].mxu1  ;;  %v3846_v48 = vsel %vm351_vm4, %v3844_v44, -inf }
0x26a2   :  { %3847 = vmax.xlane.f32.xlu0 %v3846_v48  ;;  %v8854_v48 = vld [vmem:[%s9422_s6 + $0x78] sm:$0xff]  }
0x26a3   :  { %v3849_v58 = vsel %vm355_vm5, %v3845_v47, -inf }
0x26a4   :  { %3850 = vmax.xlane.f32.xlu1 %v3849_v58 }
0x26a6   :  { %v3976_v33 = vpop.f32.mrb[124].mxu1 }
0x26a7   :  { %v7021_v50 = vpop.f32.mrb[125].mxu1  ;;  %v8826_v19 = vadd.f32 %v8823_v29, %v3976_v33 }
0x26a8   :  { %v3979_v12 = vpop.f32.mrb[126].mxu1 }
0x26a9   :  { %v8829_v6 = vadd.f32 %v8823_v29, %v3979_v12  ;;  %v7022_v62 = vpop.f32.mrb[127].mxu1 }
0x26ab   :  { %v4115_v36 = vpack.c.bf16 %v8829_v6, %v8826_v19  ;;  %v8868_v6 = vld [vmem:[%s9428_s9 + $0x7] ss:$0 sm:$0xff] }
0x26ae   :  { %v4108_v0 = vpop.f32.mrb[128].mxu1 }
0x26af   :  { %v7037_v43 = vpop.f32.mrb[129].mxu1  ;;  %v4109_v25 = vadd.f32 %v8836_v13, %v4108_v0 }
0x26b0   :  { %v4111_v51 = vpop.f32.mrb[130].mxu1 }
0x26b1   :  { %v4112_v7 = vadd.f32 %v8836_v13, %v4111_v51  ;;  %v7038_v14 = vpop.f32.mrb[131].mxu1 }
0x26b3   :  { %v4189_v9 = vpack.c.bf16 %v4112_v7, %v4109_v25 }
0x26b5   :  { %v4194_v60 = vand.u32 %v4189_v9, %v7849_v59 }
0x26b7   :  { %7046 = vmatpush3.bf16.msra.mxu1 %v4194_v60 }
0x26b8   :  { %7059 = vmatprep.subr.bf16.mxu1 %v7619_v1 }
0x272f   :  { %v3848_v20 = vpop.xlane.xlu0 %3847 }
0x2730   :  { %v3852_v2 = vsub.f32 %v3844_v44, %v3848_v20 }
0x2731   :  { %v3851_v22 = vpop.xlane.xlu1 %3850 }
0x2732   :  { %v3854_v30 = vmul.f32 1.442695, %v3852_v2  ;;  %v3853_v45 = vsub.f32 %v3845_v47, %v3851_v22  ;;  %v8847_v47 = vld [vmem:[%s9422_s6 + $0x70] sm:$0xff]  }
0x2734   :  { %7500 = vpow2.f32 %v3854_v30  ;;  %v3856_v8 = vmul.f32 1.442695, %v3853_v45 }
0x2736   :  { %7502 = vpow2.f32 %v3856_v8 }
0x273e   :  { %v7501_v11 = vpop.eup %7500 }
0x273f   :  { %v3858_v4 = vsel %vm351_vm4, %v7501_v11, 0.0 }
0x2740   :  { %v7503_v41 = vpop.eup %7502  ;;  %3859 = vadd.xlane.f32.xlu0 %v3858_v4 }
0x2741   :  { %v3861_v28 = vsel %vm355_vm5, %v7503_v41, 0.0 }
0x2742   :  { %3862 = vadd.xlane.f32.xlu1 %v3861_v28 }
0x27cd   :  { %v3860_v38 = vpop.xlane.xlu0 %3859 }
0x27ce   :  { %7504 = vrcp.f32 %v3860_v38 }
0x27cf   :  { %v3863_v42 = vpop.xlane.xlu1 %3862 }
0x27d0   :  { %7506 = vrcp.f32 %v3863_v42 }
0x27d8   :  { %v7505_v18 = vpop.eup %7504 }
0x27d9   :  { %v3866_v34 = vmul.f32 %v7505_v18, %v7501_v11 }
0x27da   :  { %v7507_v44 = vpop.eup %7506 }
0x27db   :  { %v3867_v35 = vmul.f32 %v7507_v44, %v7503_v41 }
0x27dd   :  { %v3868_v5 = vpack.c.bf16 %v3867_v35, %v3866_v34 }
0x27df   :  { %7012 = vmatmul.mubr.msk.bf16.vlgmr.msra.gmra.mrb[116].mxu0 %vm351_vm4, %v3868_v5 }
0x27e0   :  { %7024 = vmatpush3.bf16.msra.mxu0 %v8847_v47  ;;  %7027 = vmatprep.mubr.msk.bf16.mxu0 %vm7620_vm0, %v7619_v1 }
0x27e1   :  { %7025 = vmatprep.subr.bf16.mxu0 %v7619_v1 }
0x27e4   :  { %7026 = vmatpush3.bf16.msra.mxu0 %v8854_v48 }
0x27e5   :  { %7039 = vmatprep.subr.bf16.mxu0 %v7619_v1 }
0x27e7   :  { %7028 = vmatmul.mubr.msk.bf16.vlgmr.msra.gmra.mrb[120].mxu0 %vm126_vm2, %v8559_v46 }
0x27e8   :  { %7041 = vmatprep.mubr.msk.bf16.mxu0 %vm7620_vm0, %v7619_v1 }
0x28b2   :  { %v3910_v58 = vpop.f32.mrb[116].mxu0 }
0x28b3   :  { %v7013_v33 = vpop.f32.mrb[117].mxu0 }
0x28b4   :  { %v3913_v50 = vpop.f32.mrb[118].mxu0 }
0x28b5   :  { %v7313_v12 = vpack.i.bf16 %v3913_v50, %v3910_v58  ;;  %v7014_v19 = vpop.f32.mrb[119].mxu0 }
0x28ba   :  { %v4042_v62 = vpop.f32.mrb[120].mxu0 }
0x28bb   :  { %v7029_v0 = vpop.f32.mrb[121].mxu0  ;;  %v4043_v51 = vadd.f32 %v8868_v6, %v4042_v62 }
0x28bc   :  { %v4045_v43 = vpop.f32.mrb[122].mxu0 }
0x28bd   :  { %v4046_v46 = vadd.f32 %v8868_v6, %v4045_v43  ;;  %v7030_v25 = vpop.f32.mrb[123].mxu0 }
0x28bf   :  { %v4116_v7 = vpack.c.bf16 %v4046_v46, %v4043_v51 }
0x28c1   :  { %v4121_v14 = vsel %vm301_vm3, %v4116_v7, 0 }
0x28c2   :  { %7040 = vmatpush3.bf16.xpose.msra.mxu0 %v4121_v14 }
0x28c3   :  { %7051 = vmatprep.subr.bf16.mxu0 %v7619_v1 }
0x28c9   :  { %7042 = vmatmul.mubr.msk.bf16.vlgmr.msra.gmra.mrb[124].mxu0 %vm301_vm3, %v4115_v36 }
0x28ca   :  { %7055 = vmatprep.mubr.msk.bf16.mxu0 %vm7620_vm0, %v7619_v1 }
0x299c   :  { %v4157_v9 = vpop.f32.mrb[124].mxu0 }
0x299d   :  { %v4164_v60 = vmul.f32 0.35355338, %v4157_v9  ;;  %v7043_v20 = vpop.f32.mrb[125].mxu0 }
0x299e   :  { %v4160_v2 = vpop.f32.mrb[126].mxu0 }
0x299f   :  { %v4165_v22 = vmul.f32 0.35355338, %v4160_v2  ;;  %v7044_v30 = vpop.f32.mrb[127].mxu0  ;;  %v4166_v45 = vsel %vm351_vm4, %v4164_v60, -inf }
0x29a0   :  { %4167 = vmax.xlane.f32.xlu0 %v4166_v45 }
0x29a1   :  { %v4169_v8 = vsel %vm355_vm5, %v4165_v22, -inf }
0x29a2   :  { %4170 = vmax.xlane.f32.xlu1 %v4169_v8 }
0x2a2d   :  { %v4168_v11 = vpop.xlane.xlu0 %4167 }
0x2a2e   :  { %v4172_v4 = vsub.f32 %v4164_v60, %v4168_v11 }
0x2a2f   :  { %v4171_v41 = vpop.xlane.xlu1 %4170 }
0x2a30   :  { %v4174_v28 = vmul.f32 1.442695, %v4172_v4  ;;  %v4173_v36 = vsub.f32 %v4165_v22, %v4171_v41 }
0x2a32   :  { %7508 = vpow2.f32 %v4174_v28  ;;  %v4176_v38 = vmul.f32 1.442695, %v4173_v36 }
0x2a34   :  { %7510 = vpow2.f32 %v4176_v38 }
0x2a3c   :  { %v7509_v42 = vpop.eup %7508 }
0x2a3d   :  { %v4178_v18 = vsel %vm351_vm4, %v7509_v42, 0.0 }
0x2a3e   :  { %v7511_v44 = vpop.eup %7510  ;;  %4179 = vadd.xlane.f32.xlu0 %v4178_v18  ;;  %v7574_v18 = vld [vmem:[%s9382_s16] ss:$0 sm:$0xff] }
0x2a3f   :  { %v4181_v34 = vsel %vm355_vm5, %v7511_v44, 0.0 }
0x2a40   :  { %4182 = vadd.xlane.f32.xlu1 %v4181_v34 }
0x2a51   :  { %7314 = vrot.lane.b32.xlu1 %v7313_v12, %s9433_s0  ;;  %v8892_v12 = vld [vmem:[%s9431_s26 + $0x10] sm:$0xff]  }
0x2a52   :  { %7052 = vmatpush3.bf16.msra.mxu0 %v8892_v12 }
0x2a53   :  { %7053 = vmatprep.subr.bf16.mxu0 %v7619_v1 }
0x2a54   :  { %7309 = vrot.lane.b32.xlu0 %v7308_v31, %s9432_s27 }
0x2a56   :  { %7054 = vmatpush3.bf16.msra.mxu0 %v8899_v55 }
0x2a57   :  { %7067 = vmatprep.subr.bf16.mxu0 %v7619_v1 }
0x2acb   :  { %v4180_v35 = vpop.xlane.xlu0 %4179 }
0x2acc   :  { %7512 = vrcp.f32 %v4180_v35 }
0x2acd   :  { %v4183_v5 = vpop.xlane.xlu1 %4182 }
0x2ace   :  { %7514 = vrcp.f32 %v4183_v5 }
0x2acf   :  { %v7310_v46 = vpop.permute.xlu0 %7309 }
0x2ad0   :  { %v7312_v25 = vunpack.i.h.bf16 %v7310_v46  ;;  %v7311_v7 = vunpack.i.l.bf16 %v7310_v46 }
0x2ad1   :  { %v7315_v14 = vpop.permute.xlu1 %7314 }
0x2ad2   :  { %v7317_v9 = vunpack.i.h.bf16 %v7315_v14  ;;  %v7316_v60 = vunpack.i.l.bf16 %v7315_v14  ;;  %v4262_v20 = vsel %vm301_vm3, %v8671_v17, %v7312_v25  ;;  %v4261_v2 = vsel %vm301_vm3, %v8669_v54, %v7311_v7  ;;  %v8918_v54 = vld [vmem:[%s9376_s10 + $0x1] ss:$0 sm:$0xff] }
0x2ad4   :  { %v4264_v8 = vsel %vm1414_vm8, %v4262_v20, %v7317_v9  ;;  %v4263_v11 = vsel %vm1414_vm8, %v4261_v2, %v7316_v60 }
0x2ad6   :  { %v7513_v58 = vpop.eup %7512 }
0x2ad7   :  { %v4186_v50 = vmul.f32 %v7513_v58, %v7509_v42 }
0x2ad8   :  { %v7515_v33 = vpop.eup %7514 }
0x2ad9   :  { %v4187_v19 = vmul.f32 %v7515_v33, %v7511_v44  ;;  %v2910_v44 = vadd.f32 %v7574_v18, %v8627_v57 }
0x2adb   :  { %v4188_v62 = vpack.c.bf16 %v4187_v19, %v4186_v50  ;;  %v2913_v50 = vadd.f32 %v7574_v18, %v8629_v52 }
0x2add   :  { %7048 = vmatmul.mubr.msk.bf16.vlgmr.msra.gmra.mrb[132].mxu1 %vm351_vm4, %v4188_v62  ;;  %v2916_v62 = vadd.f32 %v2910_v44, %v8530_v53  ;;  %v2917_v57 = vadd.f32 %v2913_v50, %v8533_v63 }
0x2ade   :  { %7063 = vmatprep.mubr.msk.bf16.mxu1 %vm7620_vm0, %v7619_v1 }
0x2bb0   :  { %v4230_v24 = vpop.f32.mrb[132].mxu1 }
0x2bb1   :  { %v7049_v31 = vpop.f32.mrb[133].mxu1 }
0x2bb2   :  { %v4233_v0 = vpop.f32.mrb[134].mxu1  ;;  %v2921_v31 = vsel %vm1491_vm10, %v2917_v57, 0.0 }
0x2bb3   :  { %v7318_v43 = vpack.i.bf16 %v4233_v0, %v4230_v24  ;;  %v7050_v51 = vpop.f32.mrb[135].mxu1  ;;  %v2918_v24 = vsel %vm126_vm2, %v2916_v62, 0.0 }
0x2bb5   :  { %7319 = vrot.lane.b32.xlu1 %v7318_v43, %s9434_s5 }
0x2c27   :  { %v7320_v22 = vpop.permute.xlu1 %7319 }
0x2c28   :  { %v7322_v30 = vunpack.i.h.bf16 %v7320_v22  ;;  %v7321_v45 = vunpack.i.l.bf16 %v7320_v22 }
0x2c2a   :  { %v4265_v4 = vsel %vm1417_vm9, %v4263_v11, %v7321_v45  ;;  %v4266_v41 = vsel %vm1417_vm9, %v4264_v8, %v7322_v30  ;;  %v8942_v11 = vld [vmem:[%s9379_s13 + $0x10] sm:$0xff]  }
0x2c2b   :  { %v4267_v28 = vpack.c.bf16 %v4266_v41, %v4265_v4  ;;  %7060 = vmatpush3.bf16.msra.mxu1 %v8942_v11  ;;  %v8949_v4 = vld [vmem:[%s9379_s13 + $0x18] sm:$0xff]   ;;  %v8956_v41 = vld [vmem:[%s9381_s15 + $0x20] sm:$0xff]   ;;  %s9436_s13 = sld [smem:[#allocation16_spill]] }
0x2c2c   :  { %7061 = vmatprep.subr.bf16.mxu1 %v7619_v1 }
0x2c2d   :  { %7056 = vmatmul.mubr.msk.bf16.vlgmr.msra.gmra.mrb[128].mxu0 %vm126_vm2, %v4267_v28  ;;  %v8962_v28 = vld [vmem:[%s9381_s15 + $0x28] sm:$0xff]  }
0x2c2e   :  { %7075 = vmatprep.mubr.msk.bf16.mxu0 %vm7620_vm0, %v7619_v1  ;;  %7068 = vmatpush3.bf16.msra.mxu0 %v8956_v41 }
0x2c2f   :  { %7062 = vmatpush3.bf16.msra.mxu1 %v8949_v4  ;;  %7069 = vmatprep.subr.bf16.mxu0 %v7619_v1 }
0x2c30   :  { %7079 = vmatprep.subr.bf16.mxu1 %v7619_v1 }
0x2c32   :  { %7070 = vmatpush3.bf16.msra.mxu0 %v8962_v28 }
0x2c33   :  { %7071 = vmatprep.subr.bf16.mxu0 %v7619_v1 }
0x2d00   :  { %v4325_v17 = vpop.f32.mrb[128].mxu0 }
0x2d01   :  { %v4326_v36 = vadd.f32 %v8918_v54, %v4325_v17  ;;  %v7057_v38 = vpop.f32.mrb[129].mxu0 }
0x2d02   :  { %v4328_v42 = vpop.f32.mrb[130].mxu0 }
0x2d03   :  { %v4329_v34 = vadd.f32 %v8918_v54, %v4328_v42  ;;  %v7058_v35 = vpop.f32.mrb[131].mxu0  ;;  %v4332_v5 = vadd.f32 %v4326_v36, %v8551_v37 }
0x2d05   :  { %v4338_v58 = vsel %vm126_vm2, %v4332_v5, 0.0  ;;  %v4333_v33 = vadd.f32 %v4329_v34, %v8549_v23 }
0x2d06   :  { %4339 = vadd.xlane.f32.xlu1 %v4338_v58 }
0x2d07   :  { %v4341_v19 = vsel %vm1491_vm10, %v4333_v33, 0.0 }
0x2d08   :  { %4342 = vadd.xlane.f32.xlu0 %v4341_v19 }
0x2d0c   :  { %2919 = vadd.xlane.f32.xlu0 %v2918_v24 }
0x2d10   :  { %2922 = vadd.xlane.f32.xlu0 %v2921_v31 }
0x2d93   :  { %v4340_v37 = vpop.xlane.xlu1 %4339 }
0x2d94   :  { %v4344_v0 = vmul.f32 0.03125, %v4340_v37 }
0x2d95   :  { %v4343_v43 = vpop.xlane.xlu0 %4342 }
0x2d96   :  { %v4346_v23 = vsub.f32 %v4332_v5, %v4344_v0  ;;  %v4345_v51 = vmul.f32 0.03125, %v4343_v43  ;;  %v8976_v0 = vld [vmem:[%s9378_s12 + $0x1] ss:$0 sm:$0xff] }
0x2d98   :  { %v4347_v46 = vsub.f32 %v4333_v33, %v4345_v51  ;;  %v4348_v52 = vmul.f32 %v4346_v23, %v4346_v23 }
0x2d99   :  { %v2920_v25 = vpop.xlane.xlu0 %2919 }
0x2d9a   :  { %v2924_v7 = vmul.f32 0.03125, %v2920_v25  ;;  %v4350_v53 = vsel %vm126_vm2, %v4348_v52, 0.0  ;;  %v4349_v14 = vmul.f32 %v4347_v46, %v4347_v46 }
0x2d9b   :  { %4351 = vadd.xlane.f32.xlu1 %v4350_v53 }
0x2d9c   :  { %v2926_v9 = vsub.f32 %v2916_v62, %v2924_v7  ;;  %v4353_v63 = vsel %vm1491_vm10, %v4349_v14, 0.0  ;;  %v8970_v62 = vld [vmem:[%s9377_s11 + $0x1] ss:$0 sm:$0xff] }
0x2d9d   :  { %4354 = vadd.xlane.f32.xlu0 %v4353_v63  ;;  %v2923_v60 = vpop.xlane.xlu0 %2922 }
0x2d9e   :  { %v2925_v20 = vmul.f32 0.03125, %v2923_v60  ;;  %v2928_v2 = vmul.f32 %v2926_v9, %v2926_v9 }
0x2da0   :  { %v2927_v22 = vsub.f32 %v2917_v57, %v2925_v20  ;;  %v2930_v30 = vsel %vm126_vm2, %v2928_v2, 0.0  ;;  %v7577_v20 = vld [vmem:[%s9384_s18] ss:$0 sm:$0xff] }
0x2da1   :  { %2931 = vadd.xlane.f32.xlu1 %v2930_v30  ;;  %v7578_v30 = vld [vmem:[%s9423_s1 + $0x48] sm:$0xff]  }
0x2da2   :  { %v2929_v45 = vmul.f32 %v2927_v22, %v2927_v22 }
0x2da4   :  { %v2933_v8 = vsel %vm1491_vm10, %v2929_v45, 0.0 }
0x2da5   :  { %2934 = vadd.xlane.f32.xlu0 %v2933_v8  ;;  %v7579_v8 = vld [vmem:[%s9422_s6 + $0x40] sm:$0xff]  }
0x2e28   :  { %v4352_v17 = vpop.xlane.xlu1 %4351 }
0x2e29   :  { %v4356_v36 = vmul.f32 0.03125, %v4352_v17  ;;  %v7580_v17 = vld [vmem:[%s9422_s6 + $0x48] sm:$0xff]  }
0x2e2a   :  { %v4355_v38 = vpop.xlane.xlu0 %4354 }
0x2e2b   :  { %v4358_v42 = vadd.f32 1e-05, %v4356_v36  ;;  %v4357_v18 = vmul.f32 0.03125, %v4355_v38  ;;  %v9028_v36 = vld [vmem:[%s9381_s15 + $0x30] sm:$0xff]   ;;  %v9035_v38 = vld [vmem:[%s9381_s15 + $0x38] sm:$0xff]  }
0x2e2c   :  { %7072 = vmatpush3.bf16.msra.mxu0 %v9028_v36 }
0x2e2d   :  { %7516 = vrsqrt.f32 %v4358_v42  ;;  %v4359_v44 = vadd.f32 1e-05, %v4357_v18  ;;  %7073 = vmatprep.subr.bf16.mxu0 %v7619_v1  ;;  %v9042_v42 = vld [vmem:[%s9380_s14 + $0x1] ss:$0 sm:$0xff] }
0x2e2e   :  { %v2932_v34 = vpop.xlane.xlu1 %2931 }
0x2e2f   :  { %7518 = vrsqrt.f32 %v4359_v44  ;;  %v2936_v35 = vmul.f32 0.03125, %v2932_v34 }
0x2e30   :  { %7074 = vmatpush3.bf16.msra.mxu0 %v9035_v38 }
0x2e31   :  { %v2938_v5 = vadd.f32 1e-05, %v2936_v35  ;;  %7095 = vmatprep.subr.bf16.mxu0 %v7619_v1 }
0x2e32   :  { %v2935_v58 = vpop.xlane.xlu0 %2934 }
0x2e33   :  { %7520 = vrsqrt.f32 %v2938_v5  ;;  %v2937_v33 = vmul.f32 0.03125, %v2935_v58 }
0x2e35   :  { %v2939_v50 = vadd.f32 1e-05, %v2937_v33 }
0x2e37   :  { %v7517_v19 = vpop.eup %7516  ;;  %7522 = vrsqrt.f32 %v2939_v50 }
0x2e38   :  { %v4362_v24 = vmul.f32 %v7517_v19, %v4346_v23 }
0x2e39   :  { %v7519_v57 = vpop.eup %7518 }
0x2e3a   :  { %v4370_v31 = vmul.f32 %v8970_v62, %v4362_v24  ;;  %v4363_v37 = vmul.f32 %v7519_v57, %v4347_v46  ;;  %v7575_v46 = vld [vmem:[%s9383_s17] ss:$0 sm:$0xff] }
0x2e3c   :  { %v4371_v43 = vmul.f32 %v8970_v62, %v4363_v37  ;;  %v8980_v25 = vadd.f32 %v8976_v0, %v4370_v31  ;;  %v7581_v37 = vld [vmem:[%s9429_s2 + $0x40] sm:$0xff]  }
0x2e3d   :  { %v7521_v51 = vpop.eup %7520 }
0x2e3e   :  { %v2942_v52 = vmul.f32 %v7521_v51, %v2926_v9  ;;  %v4379_v7 = vadd.f32 %v8976_v0, %v4371_v43  ;;  %v7576_v9 = vld [vmem:[%s9423_s1 + $0x40] sm:$0xff]  }
0x2e3f   :  { %v7582_v43 = vld [vmem:[%s9427_s8 + $0x4] ss:$0 sm:$0xff] }
0x2e40   :  { %v4380_v23 = vpack.c.bf16 %v4379_v7, %v8980_v25  ;;  %v2944_v14 = vmul.f32 %v7575_v46, %v2942_v52 }
0x2e41   :  { %v7523_v53 = vpop.eup %7522 }
0x2e42   :  { %v2943_v63 = vmul.f32 %v7523_v53, %v2927_v22  ;;  %7064 = vmatmul.mubr.msk.bf16.vlgmr.msra.gmra.mrb[136].mxu1 %vm126_vm2, %v4380_v23  ;;  %v8997_v2 = vadd.f32 %v7577_v20, %v2944_v14  ;;  %v7583_v53 = vld [vmem:[%s9429_s2 + $0x48] sm:$0xff]  }
0x2e43   :  { %7080 = vmatpush3.bf16.msra.mxu1 %v7576_v9  ;;  %7083 = vmatprep.mubr.msk.bf16.mxu1 %vm7620_vm0, %v7619_v1  ;;  %v7584_v9 = vld [vmem:[%s9428_s9 + $0x4] ss:$0 sm:$0xff] }
0x2e44   :  { %v2945_v60 = vmul.f32 %v7575_v46, %v2943_v63  ;;  %7081 = vmatprep.subr.bf16.mxu1 %v7619_v1 }
0x2e46   :  { %v8999_v22 = vadd.f32 %v7577_v20, %v2945_v60 }
0x2e47   :  { %7082 = vmatpush3.bf16.msra.mxu1 %v7578_v30 }
0x2e48   :  { %v9006_v45 = vpack.c.bf16 %v8999_v22, %v8997_v2  ;;  %7087 = vmatprep.subr.bf16.mxu1 %v7619_v1 }
0x2e4a   :  { %7084 = vmatmul.mubr.msk.bf16.vlgmr.msra.gmra.mrb[140].mxu1 %vm126_vm2, %v9006_v45 }
0x2e4b   :  { %7088 = vmatpush3.bf16.msra.mxu1 %v7579_v8  ;;  %7091 = vmatprep.mubr.msk.bf16.mxu1 %vm7620_vm0, %v7619_v1 }
0x2e4c   :  { %7089 = vmatprep.subr.bf16.mxu1 %v7619_v1 }
0x2e4f   :  { %7090 = vmatpush3.bf16.msra.mxu1 %v7580_v17 }
0x2e50   :  { %7103 = vmatprep.subr.bf16.mxu1 %v7619_v1 }
0x2e52   :  { %7092 = vmatmul.mubr.msk.bf16.vlgmr.msra.gmra.mrb[144].mxu1 %vm126_vm2, %v9006_v45 }
0x2e53   :  { %7105 = vmatprep.mubr.msk.bf16.mxu1 %vm7620_vm0, %v7619_v1 }
0x2f15   :  { %v4443_v18 = vpop.f32.mrb[136].mxu1 }
0x2f16   :  { %v4444_v44 = vadd.f32 %v9042_v42, %v4443_v18  ;;  %v7065_v34 = vpop.f32.mrb[137].mxu1  ;;  %v7585_v18 = vld [vmem:[%s9423_s1 + $0x50] sm:$0xff]  }
0x2f17   :  { %v4446_v35 = vpop.f32.mrb[138].mxu1  ;;  %v7587_v34 = vld [vmem:[%s9429_s2 + $0x50] sm:$0xff]  }
0x2f18   :  { %v4447_v5 = vadd.f32 %v9042_v42, %v4446_v35  ;;  %v7066_v58 = vpop.f32.mrb[139].mxu1  ;;  %v4450_v33 = vmax.f32 %v4444_v44, 0.0  ;;  %v7586_v44 = vld [vmem:[%s9423_s1 + $0x58] sm:$0xff]  }
0x2f19   :  { %v7588_v35 = vld [vmem:[%s9429_s2 + $0x58] sm:$0xff]  }
0x2f1a   :  { %v4451_v50 = vmax.f32 %v4447_v5, 0.0 }
0x2f1c   :  { %v4452_v19 = vpack.c.bf16 %v4451_v50, %v4450_v33 }
0x2f1d   :  { %v4607_v24 = vpop.f32.mrb[140].mxu1 }
0x2f1e   :  { %7076 = vmatmul.mubr.msk.bf16.vlgmr.msra.gmra.mrb[132].mxu0 %vm1642_vm11, %v4452_v19  ;;  %v7085_v57 = vpop.f32.mrb[141].mxu1  ;;  %v4608_v51 = vadd.f32 %v7582_v43, %v4607_v24 }
0x2f1f   :  { %v4610_v31 = vpop.f32.mrb[142].mxu1  ;;  %7096 = vmatpush3.bf16.msra.mxu0 %v7581_v37  ;;  %7099 = vmatprep.mubr.msk.bf16.mxu0 %vm7620_vm0, %v7619_v1 }
0x2f20   :  { %v4611_v52 = vadd.f32 %v7582_v43, %v4610_v31  ;;  %v7086_v7 = vpop.f32.mrb[143].mxu1  ;;  %7097 = vmatprep.subr.bf16.mxu0 %v7619_v1  ;;  %v7589_v31 = vld [vmem:[%s9430_s28 + $0x4] ss:$0 sm:$0xff] }
0x2f22   :  { %v4696_v23 = vpack.c.bf16 %v4611_v52, %v4608_v51 }
0x2f23   :  { %7098 = vmatpush3.bf16.msra.mxu0 %v7583_v53 }
0x2f24   :  { %7109 = vmatprep.subr.bf16.mxu0 %v7619_v1 }
0x2f25   :  { %v4648_v46 = vpop.f32.mrb[144].mxu1 }
0x2f26   :  { %v7093_v14 = vpop.f32.mrb[145].mxu1  ;;  %7100 = vmatmul.mubr.msk.bf16.vlgmr.msra.gmra.mrb[136].mxu0 %vm126_vm2, %v9006_v45  ;;  %v4649_v60 = vadd.f32 %v7584_v9, %v4648_v46 }
0x2f27   :  { %v4651_v63 = vpop.f32.mrb[146].mxu1  ;;  %7111 = vmatprep.mubr.msk.bf16.mxu0 %vm7620_vm0, %v7619_v1 }
0x2f28   :  { %v4652_v20 = vadd.f32 %v7584_v9, %v4651_v63  ;;  %v7094_v30 = vpop.f32.mrb[147].mxu1 }
0x2f2a   :  { %v4697_v8 = vpack.c.bf16 %v4652_v20, %v4649_v60 }
0x2f2c   :  { %v4702_v17 = vsel %vm301_vm3, %v4697_v8, 0 }
0x2f2d   :  { %7104 = vmatpush3.bf16.xpose.msra.mxu1 %v4702_v17 }
0x2f2e   :  { %7115 = vmatprep.subr.bf16.mxu1 %v7619_v1 }
0x2f34   :  { %7106 = vmatmul.mubr.msk.bf16.vlgmr.msra.gmra.mrb[148].mxu1 %vm301_vm3, %v4696_v23 }
0x2f35   :  { %7116 = vmatpush3.bf16.msra.mxu1 %v7585_v18  ;;  %7119 = vmatprep.mubr.msk.bf16.mxu1 %vm7620_vm0, %v7619_v1  ;;  %v7590_v18 = vld [vmem:[%s9427_s8 + $0x5] ss:$0 sm:$0xff]  ;;  %s9435_s8 = sld [smem:[#allocation15_spill]] }
0x2f36   :  { %7117 = vmatprep.subr.bf16.mxu1 %v7619_v1 }
0x2f39   :  { %7118 = vmatpush3.bf16.msra.mxu1 %v7586_v44 }
0x2f3a   :  { %7131 = vmatprep.subr.bf16.mxu1 %v7619_v1 }
0x2f3c   :  { %7120 = vmatmul.mubr.msk.bf16.vlgmr.msra.gmra.mrb[152].mxu1 %vm126_vm2, %v9006_v45 }
0x2f3d   :  { %7132 = vmatpush3.bf16.msra.mxu1 %v7587_v34  ;;  %7135 = vmatprep.mubr.msk.bf16.mxu1 %vm7620_vm0, %v7619_v1 }
0x2f3e   :  { %7133 = vmatprep.subr.bf16.mxu1 %v7619_v1 }
0x2f41   :  { %7134 = vmatpush3.bf16.msra.mxu1 %v7588_v35 }
0x2f42   :  { %7145 = vmatprep.subr.bf16.mxu1 %v7619_v1 }
0x2f44   :  { %7136 = vmatmul.mubr.msk.bf16.vlgmr.msra.gmra.mrb[156].mxu1 %vm126_vm2, %v9006_v45 }
0x2f45   :  { %7147 = vmatprep.mubr.msk.bf16.mxu1 %vm7620_vm0, %v7619_v1 }
0x2ff1   :  { %v9096_v5 = vpop.f32.mrb[132].mxu0 }
0x2ff2   :  { %v7077_v58 = vpop.f32.mrb[133].mxu0 }
0x2ff3   :  { %v4534_v33 = vpop.f32.mrb[134].mxu0 }
0x2ff4   :  { %v7078_v50 = vpop.f32.mrb[135].mxu0 }
0x2ff9   :  { %v4689_v19 = vpop.f32.mrb[136].mxu0 }
0x2ffa   :  { %v7101_v24 = vpop.f32.mrb[137].mxu0  ;;  %v4690_v37 = vadd.f32 %v7589_v31, %v4689_v19 }
0x2ffb   :  { %v4692_v57 = vpop.f32.mrb[138].mxu0  ;;  %v7591_v24 = vld [vmem:[%s9430_s28 + $0x5] ss:$0 sm:$0xff] }
0x2ffc   :  { %v4693_v43 = vadd.f32 %v7589_v31, %v4692_v57  ;;  %v7102_v51 = vpop.f32.mrb[139].mxu0 }
0x2ffe   :  { %v4770_v52 = vpack.c.bf16 %v4693_v43, %v4690_v37 }
0x3000   :  { %v4775_v7 = vand.u32 %v4770_v52, %v7849_v59 }
0x3002   :  { %7110 = vmatpush3.bf16.msra.mxu0 %v4775_v7 }
0x3003   :  { %7123 = vmatprep.subr.bf16.mxu0 %v7619_v1 }
0x3007   :  { %v4738_v23 = vpop.f32.mrb[148].mxu1 }
0x3008   :  { %v4745_v53 = vmul.f32 0.35355338, %v4738_v23  ;;  %v7107_v46 = vpop.f32.mrb[149].mxu1 }
0x3009   :  { %v4741_v14 = vpop.f32.mrb[150].mxu1 }
0x300a   :  { %v4746_v63 = vmul.f32 0.35355338, %v4741_v14  ;;  %v7108_v9 = vpop.f32.mrb[151].mxu1  ;;  %v4747_v60 = vsel %vm351_vm4, %v4745_v53, -inf }
0x300b   :  { %4748 = vmax.xlane.f32.xlu1 %v4747_v60 }
0x300c   :  { %v4750_v20 = vsel %vm355_vm5, %v4746_v63, -inf }
0x300d   :  { %4751 = vmax.xlane.f32.xlu0 %v4750_v20 }
0x300f   :  { %v4852_v30 = vpop.f32.mrb[152].mxu1 }
0x3010   :  { %v7121_v8 = vpop.f32.mrb[153].mxu1  ;;  %v9108_v44 = vadd.f32 %v7590_v18, %v4852_v30 }
0x3011   :  { %v4855_v17 = vpop.f32.mrb[154].mxu1 }
0x3012   :  { %v9110_v34 = vadd.f32 %v7590_v18, %v4855_v17  ;;  %v7122_v35 = vpop.f32.mrb[155].mxu1 }
0x3014   :  { %v4941_v58 = vpack.c.bf16 %v9110_v34, %v9108_v44 }
0x3017   :  { %v4934_v33 = vpop.f32.mrb[156].mxu1 }
0x3018   :  { %v7137_v50 = vpop.f32.mrb[157].mxu1  ;;  %v4935_v57 = vadd.f32 %v7591_v24, %v4934_v33  ;;  %v7592_v33 = vld [vmem:[%s9422_s6 + $0x50] sm:$0xff]  }
0x3019   :  { %v4937_v19 = vpop.f32.mrb[158].mxu1  ;;  %v7593_v50 = vld [vmem:[%s9422_s6 + $0x58] sm:$0xff]  }
0x301a   :  { %v4938_v31 = vadd.f32 %v7591_v24, %v4937_v19  ;;  %v7138_v37 = vpop.f32.mrb[159].mxu1 }
0x301c   :  { %v5015_v43 = vpack.c.bf16 %v4938_v31, %v4935_v57 }
0x301e   :  { %v5020_v51 = vand.u32 %v5015_v43, %v7849_v59 }
0x3020   :  { %7146 = vmatpush3.bf16.msra.mxu1 %v5020_v51 }
0x3021   :  { %7159 = vmatprep.subr.bf16.mxu1 %v7619_v1 }
0x3098   :  { %v4749_v52 = vpop.xlane.xlu1 %4748 }
0x3099   :  { %v4753_v7 = vsub.f32 %v4745_v53, %v4749_v52  ;;  %v7594_v52 = vld [vmem:[%s9428_s9 + $0x5] ss:$0 sm:$0xff] }
0x309a   :  { %v4752_v23 = vpop.xlane.xlu0 %4751 }
0x309b   :  { %v4755_v46 = vmul.f32 1.442695, %v4753_v7  ;;  %v4754_v14 = vsub.f32 %v4746_v63, %v4752_v23 }
0x309d   :  { %7524 = vpow2.f32 %v4755_v46  ;;  %v4757_v9 = vmul.f32 1.442695, %v4754_v14 }
0x309f   :  { %7526 = vpow2.f32 %v4757_v9 }
0x30a7   :  { %v7525_v60 = vpop.eup %7524 }
0x30a8   :  { %v4759_v20 = vsel %vm351_vm4, %v7525_v60, 0.0 }
0x30a9   :  { %v7527_v30 = vpop.eup %7526  ;;  %4760 = vadd.xlane.f32.xlu1 %v4759_v20 }
0x30aa   :  { %v4762_v8 = vsel %vm355_vm5, %v7527_v30, 0.0 }
0x30ab   :  { %4763 = vadd.xlane.f32.xlu0 %v4762_v8 }
0x3136   :  { %v4761_v17 = vpop.xlane.xlu1 %4760 }
0x3137   :  { %7528 = vrcp.f32 %v4761_v17 }
0x3138   :  { %v4764_v18 = vpop.xlane.xlu0 %4763 }
0x3139   :  { %7530 = vrcp.f32 %v4764_v18 }
0x3141   :  { %v7529_v44 = vpop.eup %7528 }
0x3142   :  { %v4767_v34 = vmul.f32 %v7529_v44, %v7525_v60 }
0x3143   :  { %v7531_v53 = vpop.eup %7530 }
0x3144   :  { %v4768_v35 = vmul.f32 %v7531_v53, %v7527_v30 }
0x3146   :  { %v4769_v63 = vpack.c.bf16 %v4768_v35, %v4767_v34 }
0x3148   :  { %7112 = vmatmul.mubr.msk.bf16.vlgmr.msra.gmra.mrb[140].mxu0 %vm351_vm4, %v4769_v63 }
0x3149   :  { %7124 = vmatpush3.bf16.msra.mxu0 %v7592_v33  ;;  %7127 = vmatprep.mubr.msk.bf16.mxu0 %vm7620_vm0, %v7619_v1 }
0x314a   :  { %7125 = vmatprep.subr.bf16.mxu0 %v7619_v1 }
0x314d   :  { %7126 = vmatpush3.bf16.msra.mxu0 %v7593_v50 }
0x314e   :  { %7139 = vmatprep.subr.bf16.mxu0 %v7619_v1 }
0x3150   :  { %7128 = vmatmul.mubr.msk.bf16.vlgmr.msra.gmra.mrb[144].mxu0 %vm126_vm2, %v9006_v45 }
0x3151   :  { %7141 = vmatprep.mubr.msk.bf16.mxu0 %vm7620_vm0, %v7619_v1 }
0x321b   :  { %v9136_v19 = vpop.f32.mrb[140].mxu0 }
0x321c   :  { %v7113_v24 = vpop.f32.mrb[141].mxu0 }
0x321d   :  { %v9138_v57 = vpop.f32.mrb[142].mxu0 }
0x321e   :  { %v7114_v31 = vpop.f32.mrb[143].mxu0 }
0x3223   :  { %v4893_v37 = vpop.f32.mrb[144].mxu0 }
0x3224   :  { %v7129_v43 = vpop.f32.mrb[145].mxu0  ;;  %v4894_v7 = vadd.f32 %v7594_v52, %v4893_v37 }
0x3225   :  { %v4896_v51 = vpop.f32.mrb[146].mxu0 }
0x3226   :  { %v4897_v23 = vadd.f32 %v7594_v52, %v4896_v51  ;;  %v7130_v46 = vpop.f32.mrb[147].mxu0 }
0x3228   :  { %v4942_v14 = vpack.c.bf16 %v4897_v23, %v4894_v7 }
0x322a   :  { %v4947_v9 = vsel %vm301_vm3, %v4942_v14, 0 }
0x322b   :  { %7140 = vmatpush3.bf16.xpose.msra.mxu0 %v4947_v9 }
0x322c   :  { %7151 = vmatprep.subr.bf16.mxu0 %v7619_v1 }
0x3232   :  { %7142 = vmatmul.mubr.msk.bf16.vlgmr.msra.gmra.mrb[148].mxu0 %vm301_vm3, %v4941_v58 }
0x3233   :  { %7152 = vmatpush3.bf16.msra.mxu0 %v8681_v39  ;;  %7155 = vmatprep.mubr.msk.bf16.mxu0 %vm7620_vm0, %v7619_v1 }
0x3234   :  { %7153 = vmatprep.subr.bf16.mxu0 %v7619_v1 }
0x3237   :  { %7154 = vmatpush3.bf16.msra.mxu0 %v8688_v3 }
0x3238   :  { %7167 = vmatprep.subr.bf16.mxu0 %v7619_v1 }
0x323a   :  { %7156 = vmatmul.mubr.msk.bf16.vlgmr.msra.gmra.mrb[152].mxu0 %vm126_vm2, %v9006_v45 }
0x323b   :  { %7168 = vmatpush3.bf16.msra.mxu0 %v8697_v26  ;;  %7171 = vmatprep.mubr.msk.bf16.mxu0 %vm7620_vm0, %v7619_v1 }
0x323c   :  { %7169 = vmatprep.subr.bf16.mxu0 %v7619_v1 }
0x323f   :  { %7170 = vmatpush3.bf16.msra.mxu0 %v8706_v56 }
0x3240   :  { %7181 = vmatprep.subr.bf16.mxu0 %v7619_v1 }
0x3242   :  { %7172 = vmatmul.mubr.msk.bf16.vlgmr.msra.gmra.mrb[156].mxu0 %vm126_vm2, %v9006_v45 }
0x3243   :  { %7183 = vmatprep.mubr.msk.bf16.mxu0 %vm7620_vm0, %v7619_v1 }
0x3305   :  { %v4983_v39 = vpop.f32.mrb[148].mxu0 }
0x3306   :  { %v4990_v3 = vmul.f32 0.35355338, %v4983_v39  ;;  %v7143_v58 = vpop.f32.mrb[149].mxu0 }
0x3307   :  { %v4986_v60 = vpop.f32.mrb[150].mxu0 }
0x3308   :  { %v4991_v26 = vmul.f32 0.35355338, %v4986_v60  ;;  %v7144_v20 = vpop.f32.mrb[151].mxu0  ;;  %v4992_v30 = vsel %vm351_vm4, %v4990_v3, -inf }
0x3309   :  { %4993 = vmax.xlane.f32.xlu1 %v4992_v30 }
0x330a   :  { %v4995_v8 = vsel %vm355_vm5, %v4991_v26, -inf }
0x330b   :  { %4996 = vmax.xlane.f32.xlu0 %v4995_v8 }
0x330d   :  { %v5097_v56 = vpop.f32.mrb[152].mxu0 }
0x330e   :  { %v7157_v17 = vpop.f32.mrb[153].mxu0  ;;  %v5098_v44 = vadd.f32 %v8722_v15, %v5097_v56 }
0x330f   :  { %v5100_v18 = vpop.f32.mrb[154].mxu0 }
0x3310   :  { %v5101_v53 = vadd.f32 %v8722_v15, %v5100_v18  ;;  %v7158_v34 = vpop.f32.mrb[155].mxu0 }
0x3312   :  { %v5186_v35 = vpack.c.bf16 %v5101_v53, %v5098_v44 }
0x3315   :  { %v5179_v63 = vpop.f32.mrb[156].mxu0 }
0x3316   :  { %v7173_v33 = vpop.f32.mrb[157].mxu0  ;;  %v5180_v24 = vadd.f32 %v8735_v40, %v5179_v63 }
0x3317   :  { %v5182_v50 = vpop.f32.mrb[158].mxu0 }
0x3318   :  { %v5183_v31 = vadd.f32 %v8735_v40, %v5182_v50  ;;  %v7174_v37 = vpop.f32.mrb[159].mxu0 }
0x331a   :  { %v5260_v43 = vpack.c.bf16 %v5183_v31, %v5180_v24 }
0x331c   :  { %v5265_v51 = vand.u32 %v5260_v43, %v7849_v59 }
0x331e   :  { %7182 = vmatpush3.bf16.msra.mxu0 %v5265_v51 }
0x331f   :  { %7195 = vmatprep.subr.bf16.mxu0 %v7619_v1 }
0x3396   :  { %v4994_v52 = vpop.xlane.xlu1 %4993 }
0x3397   :  { %v4998_v7 = vsub.f32 %v4990_v3, %v4994_v52 }
0x3398   :  { %v4997_v23 = vpop.xlane.xlu0 %4996 }
0x3399   :  { %v5000_v15 = vmul.f32 1.442695, %v4998_v7  ;;  %v4999_v46 = vsub.f32 %v4991_v26, %v4997_v23 }
0x339b   :  { %7532 = vpow2.f32 %v5000_v15  ;;  %v5002_v14 = vmul.f32 1.442695, %v4999_v46 }
0x339d   :  { %7534 = vpow2.f32 %v5002_v14 }
0x33a5   :  { %v7533_v9 = vpop.eup %7532 }
0x33a6   :  { %v5004_v39 = vsel %vm351_vm4, %v7533_v9, 0.0 }
0x33a7   :  { %v7535_v58 = vpop.eup %7534  ;;  %5005 = vadd.xlane.f32.xlu1 %v5004_v39 }
0x33a8   :  { %v5007_v40 = vsel %vm355_vm5, %v7535_v58, 0.0 }
0x33a9   :  { %5008 = vadd.xlane.f32.xlu0 %v5007_v40 }
0x3434   :  { %v5006_v60 = vpop.xlane.xlu1 %5005 }
0x3435   :  { %7536 = vrcp.f32 %v5006_v60 }
0x3436   :  { %v5009_v20 = vpop.xlane.xlu0 %5008 }
0x3437   :  { %7538 = vrcp.f32 %v5009_v20 }
0x343f   :  { %v7537_v30 = vpop.eup %7536 }
0x3440   :  { %v5012_v8 = vmul.f32 %v7537_v30, %v7533_v9 }
0x3441   :  { %v7539_v3 = vpop.eup %7538 }
0x3442   :  { %v5013_v56 = vmul.f32 %v7539_v3, %v7535_v58 }
0x3444   :  { %v5014_v26 = vpack.c.bf16 %v5013_v56, %v5012_v8 }
0x3446   :  { %7148 = vmatmul.mubr.msk.bf16.vlgmr.msra.gmra.mrb[160].mxu1 %vm351_vm4, %v5014_v26 }
0x3447   :  { %7160 = vmatpush3.bf16.msra.mxu1 %v8746_v49  ;;  %7163 = vmatprep.mubr.msk.bf16.mxu1 %vm7620_vm0, %v7619_v1 }
0x3448   :  { %7161 = vmatprep.subr.bf16.mxu1 %v7619_v1 }
0x344b   :  { %7162 = vmatpush3.bf16.msra.mxu1 %v8753_v32 }
0x344c   :  { %7175 = vmatprep.subr.bf16.mxu1 %v7619_v1 }
0x344e   :  { %7164 = vmatmul.mubr.msk.bf16.vlgmr.msra.gmra.mrb[164].mxu1 %vm126_vm2, %v9006_v45 }
0x344f   :  { %7177 = vmatprep.mubr.msk.bf16.mxu1 %vm7620_vm0, %v7619_v1 }
0x3519   :  { %v9185_v17 = vpop.f32.mrb[160].mxu1 }
0x351a   :  { %v7149_v18 = vpop.f32.mrb[161].mxu1 }
0x351b   :  { %v9187_v44 = vpop.f32.mrb[162].mxu1 }
0x351c   :  { %v7323_v49 = vpack.i.bf16 %v9187_v44, %v9185_v17  ;;  %v7150_v53 = vpop.f32.mrb[163].mxu1 }
0x3521   :  { %v5138_v34 = vpop.f32.mrb[164].mxu1 }
0x3522   :  { %v7165_v63 = vpop.f32.mrb[165].mxu1  ;;  %v5139_v33 = vadd.f32 %v8773_v16, %v5138_v34 }
0x3523   :  { %v5141_v32 = vpop.f32.mrb[166].mxu1 }
0x3524   :  { %v5142_v50 = vadd.f32 %v8773_v16, %v5141_v32  ;;  %v7166_v24 = vpop.f32.mrb[167].mxu1 }
0x3526   :  { %v5187_v31 = vpack.c.bf16 %v5142_v50, %v5139_v33 }
0x3528   :  { %v5192_v37 = vsel %vm301_vm3, %v5187_v31, 0 }
0x3529   :  { %7176 = vmatpush3.bf16.xpose.msra.mxu1 %v5192_v37 }
0x352a   :  { %7187 = vmatprep.subr.bf16.mxu1 %v7619_v1 }
0x3530   :  { %7178 = vmatmul.mubr.msk.bf16.vlgmr.msra.gmra.mrb[168].mxu1 %vm301_vm3, %v5186_v35 }
0x3531   :  { %7188 = vmatpush3.bf16.msra.mxu1 %v8782_v21  ;;  %7191 = vmatprep.mubr.msk.bf16.mxu1 %vm7620_vm0, %v7619_v1 }
0x3532   :  { %7189 = vmatprep.subr.bf16.mxu1 %v7619_v1 }
0x3535   :  { %7190 = vmatpush3.bf16.msra.mxu1 %v8789_v61 }
0x3536   :  { %7203 = vmatprep.subr.bf16.mxu1 %v7619_v1 }
0x3538   :  { %7192 = vmatmul.mubr.msk.bf16.vlgmr.msra.gmra.mrb[172].mxu1 %vm126_vm2, %v9006_v45 }
0x3539   :  { %7204 = vmatpush3.bf16.msra.mxu1 %v8798_v10  ;;  %7207 = vmatprep.mubr.msk.bf16.mxu1 %vm7620_vm0, %v7619_v1 }
0x353a   :  { %7205 = vmatprep.subr.bf16.mxu1 %v7619_v1 }
0x353d   :  { %7206 = vmatpush3.bf16.msra.mxu1 %v8807_v27 }
0x353e   :  { %7217 = vmatprep.subr.bf16.mxu1 %v7619_v1 }
0x3540   :  { %7208 = vmatmul.mubr.msk.bf16.vlgmr.msra.gmra.mrb[176].mxu1 %vm126_vm2, %v9006_v45 }
0x3541   :  { %7219 = vmatprep.mubr.msk.bf16.mxu1 %vm7620_vm0, %v7619_v1 }
0x3603   :  { %v5228_v16 = vpop.f32.mrb[168].mxu1 }
0x3604   :  { %v5235_v21 = vmul.f32 0.35355338, %v5228_v16  ;;  %v7179_v61 = vpop.f32.mrb[169].mxu1 }
0x3605   :  { %v5231_v35 = vpop.f32.mrb[170].mxu1 }
0x3606   :  { %v5236_v10 = vmul.f32 0.35355338, %v5231_v35  ;;  %v7180_v43 = vpop.f32.mrb[171].mxu1  ;;  %v5237_v51 = vsel %vm351_vm4, %v5235_v21, -inf }
0x3607   :  { %5238 = vmax.xlane.f32.xlu1 %v5237_v51 }
0x3608   :  { %v5240_v52 = vsel %vm355_vm5, %v5236_v10, -inf }
0x3609   :  { %5241 = vmax.xlane.f32.xlu0 %v5240_v52 }
0x360b   :  { %v5342_v27 = vpop.f32.mrb[172].mxu1 }
0x360c   :  { %v7193_v7 = vpop.f32.mrb[173].mxu1  ;;  %v5343_v15 = vadd.f32 %v8823_v29, %v5342_v27 }
0x360d   :  { %v5345_v23 = vpop.f32.mrb[174].mxu1 }
0x360e   :  { %v5346_v46 = vadd.f32 %v8823_v29, %v5345_v23  ;;  %v7194_v14 = vpop.f32.mrb[175].mxu1 }
0x3610   :  { %v5431_v9 = vpack.c.bf16 %v5346_v46, %v5343_v15 }
0x3613   :  { %v5424_v39 = vpop.f32.mrb[176].mxu1 }
0x3614   :  { %v7209_v58 = vpop.f32.mrb[177].mxu1  ;;  %v5425_v60 = vadd.f32 %v8836_v13, %v5424_v39 }
0x3615   :  { %v5427_v40 = vpop.f32.mrb[178].mxu1 }
0x3616   :  { %v5428_v20 = vadd.f32 %v8836_v13, %v5427_v40  ;;  %v7210_v30 = vpop.f32.mrb[179].mxu1 }
0x3618   :  { %v5505_v3 = vpack.c.bf16 %v5428_v20, %v5425_v60 }
0x361a   :  { %v5510_v8 = vand.u32 %v5505_v3, %v7849_v59 }
0x361c   :  { %7218 = vmatpush3.bf16.msra.mxu1 %v5510_v8 }
0x361d   :  { %7231 = vmatprep.subr.bf16.mxu1 %v7619_v1 }
0x3694   :  { %v5239_v56 = vpop.xlane.xlu1 %5238 }
0x3695   :  { %v5243_v26 = vsub.f32 %v5235_v21, %v5239_v56 }
0x3696   :  { %v5242_v18 = vpop.xlane.xlu0 %5241 }
0x3697   :  { %v5245_v29 = vmul.f32 1.442695, %v5243_v26  ;;  %v5244_v53 = vsub.f32 %v5236_v10, %v5242_v18 }
0x3699   :  { %7540 = vpow2.f32 %v5245_v29  ;;  %v5247_v34 = vmul.f32 1.442695, %v5244_v53 }
0x369b   :  { %7542 = vpow2.f32 %v5247_v34 }
0x36a3   :  { %v7541_v63 = vpop.eup %7540 }
0x36a4   :  { %v5249_v32 = vsel %vm351_vm4, %v7541_v63, 0.0 }
0x36a5   :  { %v7543_v33 = vpop.eup %7542  ;;  %5250 = vadd.xlane.f32.xlu1 %v5249_v32 }
0x36a6   :  { %v5252_v13 = vsel %vm355_vm5, %v7543_v33, 0.0 }
0x36a7   :  { %5253 = vadd.xlane.f32.xlu0 %v5252_v13 }
0x3732   :  { %v5251_v59 = vpop.xlane.xlu1 %5250 }
0x3733   :  { %7544 = vrcp.f32 %v5251_v59 }
0x3734   :  { %v5254_v50 = vpop.xlane.xlu0 %5253 }
0x3735   :  { %7546 = vrcp.f32 %v5254_v50 }
0x373d   :  { %v7545_v24 = vpop.eup %7544 }
0x373e   :  { %v5257_v37 = vmul.f32 %v7545_v24, %v7541_v63 }
0x373f   :  { %v7547_v31 = vpop.eup %7546 }
0x3740   :  { %v5258_v16 = vmul.f32 %v7547_v31, %v7543_v33 }
0x3742   :  { %v5259_v21 = vpack.c.bf16 %v5258_v16, %v5257_v37 }
0x3744   :  { %7184 = vmatmul.mubr.msk.bf16.vlgmr.msra.gmra.mrb[160].mxu0 %vm351_vm4, %v5259_v21 }
0x3745   :  { %7196 = vmatpush3.bf16.msra.mxu0 %v8847_v47  ;;  %7199 = vmatprep.mubr.msk.bf16.mxu0 %vm7620_vm0, %v7619_v1 }
0x3746   :  { %7197 = vmatprep.subr.bf16.mxu0 %v7619_v1 }
0x3749   :  { %7198 = vmatpush3.bf16.msra.mxu0 %v8854_v48 }
0x374a   :  { %7211 = vmatprep.subr.bf16.mxu0 %v7619_v1 }
0x374c   :  { %7200 = vmatmul.mubr.msk.bf16.vlgmr.msra.gmra.mrb[164].mxu0 %vm126_vm2, %v9006_v45 }
0x374d   :  { %7213 = vmatprep.mubr.msk.bf16.mxu0 %vm7620_vm0, %v7619_v1 }
0x3817   :  { %v5301_v61 = vpop.f32.mrb[160].mxu0 }
0x3818   :  { %v7185_v35 = vpop.f32.mrb[161].mxu0 }
0x3819   :  { %v5304_v10 = vpop.f32.mrb[162].mxu0 }
0x381a   :  { %v7328_v43 = vpack.i.bf16 %v5304_v10, %v5301_v61  ;;  %v7186_v47 = vpop.f32.mrb[163].mxu0 }
0x381f   :  { %v5383_v51 = vpop.f32.mrb[164].mxu0 }
0x3820   :  { %v7201_v52 = vpop.f32.mrb[165].mxu0  ;;  %v5384_v7 = vadd.f32 %v8868_v6, %v5383_v51 }
0x3821   :  { %v5386_v27 = vpop.f32.mrb[166].mxu0 }
0x3822   :  { %v5387_v48 = vadd.f32 %v8868_v6, %v5386_v27  ;;  %v7202_v23 = vpop.f32.mrb[167].mxu0 }
0x3824   :  { %v5432_v15 = vpack.c.bf16 %v5387_v48, %v5384_v7 }
0x3826   :  { %v5437_v46 = vsel %vm301_vm3, %v5432_v15, 0 }
0x3827   :  { %7212 = vmatpush3.bf16.xpose.msra.mxu0 %v5437_v46 }
0x3828   :  { %7223 = vmatprep.subr.bf16.mxu0 %v7619_v1 }
0x382e   :  { %7214 = vmatmul.mubr.msk.bf16.vlgmr.msra.gmra.mrb[168].mxu0 %vm301_vm3, %v5431_v9 }
0x382f   :  { %7224 = vmatpush3.bf16.msra.mxu0 %v8892_v12  ;;  %7227 = vmatprep.mubr.msk.bf16.mxu0 %vm7620_vm0, %v7619_v1 }
0x3830   :  { %7225 = vmatprep.subr.bf16.mxu0 %v7619_v1 }
0x3833   :  { %7226 = vmatpush3.bf16.msra.mxu0 %v8899_v55 }
0x3834   :  { %7239 = vmatprep.subr.bf16.mxu0 %v7619_v1 }
0x3901   :  { %v5473_v6 = vpop.f32.mrb[168].mxu0 }
0x3902   :  { %v5480_v45 = vmul.f32 0.35355338, %v5473_v6  ;;  %v7215_v14 = vpop.f32.mrb[169].mxu0 }
0x3903   :  { %v5476_v39 = vpop.f32.mrb[170].mxu0 }
0x3904   :  { %v5481_v58 = vmul.f32 0.35355338, %v5476_v39  ;;  %v7216_v40 = vpop.f32.mrb[171].mxu0  ;;  %v5482_v60 = vsel %vm351_vm4, %v5480_v45, -inf  ;;  %v6258_v39 = vld [vmem:[%s9382_s16 + $0x1] ss:$0 sm:$0xff] }
0x3905   :  { %5483 = vmax.xlane.f32.xlu1 %v5482_v60  ;;  %v4532_v60 = vadd.f32 %v6258_v39, %v9096_v5 }
0x3906   :  { %v5485_v12 = vsel %vm355_vm5, %v5481_v58, -inf }
0x3907   :  { %5486 = vmax.xlane.f32.xlu0 %v5485_v12 }
0x3992   :  { %v5484_v9 = vpop.xlane.xlu1 %5483 }
0x3993   :  { %v5488_v20 = vsub.f32 %v5480_v45, %v5484_v9 }
0x3994   :  { %v5487_v30 = vpop.xlane.xlu0 %5486 }
0x3995   :  { %v5490_v3 = vmul.f32 1.442695, %v5488_v20  ;;  %v5489_v8 = vsub.f32 %v5481_v58, %v5487_v30  ;;  %v4537_v20 = vadd.f32 %v4532_v60, %v8980_v25 }
0x3997   :  { %7548 = vpow2.f32 %v5490_v3  ;;  %v5492_v55 = vmul.f32 1.442695, %v5489_v8  ;;  %v4542_v3 = vsel %vm126_vm2, %v4537_v20, 0.0 }
0x3999   :  { %7550 = vpow2.f32 %v5492_v55 }
0x39a1   :  { %v7549_v56 = vpop.eup %7548 }
0x39a2   :  { %v5494_v26 = vsel %vm351_vm4, %v7549_v56, 0.0 }
0x39a3   :  { %v7551_v18 = vpop.eup %7550  ;;  %5495 = vadd.xlane.f32.xlu1 %v5494_v26 }
0x39a4   :  { %v5497_v29 = vsel %vm355_vm5, %v7551_v18, 0.0 }
0x39a5   :  { %5498 = vadd.xlane.f32.xlu0 %v5497_v29 }
0x39b4   :  { %7324 = vrot.lane.b32.xlu1 %v7323_v49, %s9432_s27 }
0x39bb   :  { %7329 = vrot.lane.b32.xlu0 %v7328_v43, %s9433_s0 }
0x3a30   :  { %v5496_v53 = vpop.xlane.xlu1 %5495 }
0x3a31   :  { %7552 = vrcp.f32 %v5496_v53 }
0x3a32   :  { %v5499_v34 = vpop.xlane.xlu0 %5498 }
0x3a33   :  { %7554 = vrcp.f32 %v5499_v34 }
0x3a34   :  { %v7325_v31 = vpop.permute.xlu1 %7324 }
0x3a35   :  { %v7327_v37 = vunpack.i.h.bf16 %v7325_v31  ;;  %v7326_v16 = vunpack.i.l.bf16 %v7325_v31 }
0x3a37   :  { %v5578_v35 = vsel %vm301_vm3, %v9138_v57, %v7327_v37 }
0x3a3b   :  { %v7553_v63 = vpop.eup %7552 }
0x3a3c   :  { %v5502_v33 = vmul.f32 %v7553_v63, %v7549_v56 }
0x3a3d   :  { %v7555_v32 = vpop.eup %7554 }
0x3a3e   :  { %v5503_v13 = vmul.f32 %v7555_v32, %v7551_v18 }
0x3a40   :  { %v5504_v59 = vpack.c.bf16 %v5503_v13, %v5502_v33 }
0x3a42   :  { %7220 = vmatmul.mubr.msk.bf16.vlgmr.msra.gmra.mrb[180].mxu1 %vm351_vm4, %v5504_v59 }
0x3a43   :  { %7232 = vmatpush3.bf16.msra.mxu1 %v8942_v11  ;;  %7235 = vmatprep.mubr.msk.bf16.mxu1 %vm7620_vm0, %v7619_v1  ;;  %v7330_v11 = vpop.permute.xlu0 %7329 }
0x3a44   :  { %7233 = vmatprep.subr.bf16.mxu1 %v7619_v1  ;;  %v7332_v21 = vunpack.i.h.bf16 %v7330_v11  ;;  %v7331_v61 = vunpack.i.l.bf16 %v7330_v11 }
0x3a46   :  { %v5580_v51 = vsel %vm1414_vm8, %v5578_v35, %v7332_v21 }
0x3a47   :  { %7234 = vmatpush3.bf16.msra.mxu1 %v8949_v4  ;;  %v5577_v4 = vsel %vm301_vm3, %v9136_v19, %v7326_v16 }
0x3a48   :  { %7251 = vmatprep.subr.bf16.mxu1 %v7619_v1  ;;  %v5579_v52 = vsel %vm1414_vm8, %v5577_v4, %v7331_v61 }
0x3b15   :  { %v5546_v17 = vpop.f32.mrb[180].mxu1 }
0x3b16   :  { %v7221_v44 = vpop.f32.mrb[181].mxu1 }
0x3b17   :  { %v5549_v49 = vpop.f32.mrb[182].mxu1 }
0x3b18   :  { %v7333_v50 = vpack.i.bf16 %v5549_v49, %v5546_v17  ;;  %v7222_v24 = vpop.f32.mrb[183].mxu1 }
0x3b1a   :  { %7334 = vrot.lane.b32.xlu1 %v7333_v50, %s9434_s5 }
0x3b8c   :  { %v7335_v10 = vpop.permute.xlu1 %7334 }
0x3b8d   :  { %v7337_v43 = vunpack.i.h.bf16 %v7335_v10  ;;  %v7336_v47 = vunpack.i.l.bf16 %v7335_v10 }
0x3b8f   :  { %v5581_v27 = vsel %vm1417_vm9, %v5579_v52, %v7336_v47  ;;  %v5582_v7 = vsel %vm1417_vm9, %v5580_v51, %v7337_v43 }
0x3b90   :  { %v5583_v48 = vpack.c.bf16 %v5582_v7, %v5581_v27 }
0x3b92   :  { %7228 = vmatmul.mubr.msk.bf16.vlgmr.msra.gmra.mrb[172].mxu0 %vm126_vm2, %v5583_v48 }
0x3b93   :  { %7240 = vmatpush3.bf16.msra.mxu0 %v8956_v41  ;;  %7247 = vmatprep.mubr.msk.bf16.mxu0 %vm7620_vm0, %v7619_v1 }
0x3b94   :  { %7241 = vmatprep.subr.bf16.mxu0 %v7619_v1 }
0x3b97   :  { %7242 = vmatpush3.bf16.msra.mxu0 %v8962_v28 }
0x3b98   :  { %7243 = vmatprep.subr.bf16.mxu0 %v7619_v1 }
0x3b9b   :  { %7244 = vmatpush3.bf16.msra.mxu0 %v9028_v36 }
0x3b9c   :  { %7245 = vmatprep.subr.bf16.mxu0 %v7619_v1 }
0x3b9f   :  { %7246 = vmatpush3.bf16.msra.mxu0 %v9035_v38 }
0x3c65   :  { %v5621_v19 = vpop.f32.mrb[172].mxu0 }
0x3c66   :  { %v5622_v57 = vadd.f32 %v8918_v54, %v5621_v19  ;;  %v7229_v23 = vpop.f32.mrb[173].mxu0 }
0x3c67   :  { %v5624_v41 = vpop.f32.mrb[174].mxu0 }
0x3c68   :  { %v5625_v15 = vadd.f32 %v8918_v54, %v5624_v41  ;;  %v7230_v46 = vpop.f32.mrb[175].mxu0  ;;  %v5628_v6 = vadd.f32 %v5622_v57, %v8997_v2 }
0x3c6a   :  { %v5630_v28 = vsel %vm126_vm2, %v5628_v6, 0.0  ;;  %v5629_v45 = vadd.f32 %v5625_v15, %v8999_v22 }
0x3c6b   :  { %5631 = vadd.xlane.f32.xlu1 %v5630_v28 }
0x3c6c   :  { %v5633_v36 = vsel %vm1491_vm10, %v5629_v45, 0.0 }
0x3c6d   :  { %5634 = vadd.xlane.f32.xlu0 %v5633_v36 }
0x3cf8   :  { %v5632_v14 = vpop.xlane.xlu1 %5631 }
0x3cf9   :  { %v5636_v38 = vmul.f32 0.03125, %v5632_v14 }
0x3cfa   :  { %v5635_v58 = vpop.xlane.xlu0 %5634 }
0x3cfb   :  { %v5638_v40 = vsub.f32 %v5628_v6, %v5636_v38  ;;  %v5637_v54 = vmul.f32 0.03125, %v5635_v58  ;;  %v6266_v38 = vld [vmem:[%s9383_s17 + $0x1] ss:$0 sm:$0xff] }
0x3cfd   :  { %v5639_v2 = vsub.f32 %v5629_v45, %v5637_v54  ;;  %v5640_v12 = vmul.f32 %v5638_v40, %v5638_v40  ;;  %v6267_v54 = vld [vmem:[%s9384_s18 + $0x1] ss:$0 sm:$0xff] }
0x3cff   :  { %v5642_v9 = vsel %vm126_vm2, %v5640_v12, 0.0  ;;  %v5641_v22 = vmul.f32 %v5639_v2, %v5639_v2 }
0x3d00   :  { %5643 = vadd.xlane.f32.xlu0 %v5642_v9 }
0x3d01   :  { %v5645_v30 = vsel %vm1491_vm10, %v5641_v22, 0.0 }
0x3d02   :  { %5646 = vadd.xlane.f32.xlu1 %v5645_v30 }
0x3d06   :  { %4543 = vadd.xlane.f32.xlu1 %v4542_v3 }
0x3d8d   :  { %v5644_v8 = vpop.xlane.xlu0 %5643 }
0x3d8e   :  { %v5648_v55 = vmul.f32 0.03125, %v5644_v8 }
0x3d8f   :  { %v5647_v56 = vpop.xlane.xlu1 %5646 }
0x3d90   :  { %v5650_v26 = vadd.f32 1e-05, %v5648_v55  ;;  %v5649_v18 = vmul.f32 0.03125, %v5647_v56  ;;  %v7402_v56 = vld [vmem:[%s9387_s21] sm:$0xff]  }
0x3d92   :  { %7556 = vrsqrt.f32 %v5650_v26  ;;  %v5651_v5 = vadd.f32 1e-05, %v5649_v18  ;;  %v7403_v26 = vld [vmem:[%s9387_s21 + $0x8] sm:$0xff]  }
0x3d93   :  { %v4544_v29 = vpop.xlane.xlu1 %4543 }
0x3d94   :  { %7558 = vrsqrt.f32 %v5651_v5  ;;  %v4545_v53 = vmul.f32 0.03125, %v4544_v29 }
0x3d96   :  { %v4546_v34 = vsub.f32 %v4537_v20, %v4545_v53 }
0x3d98   :  { %v4547_v63 = vmul.f32 %v4546_v34, %v4546_v34 }
0x3d9a   :  { %v4548_v25 = vsel %vm126_vm2, %v4547_v63, 0.0 }
0x3d9b   :  { %4549 = vadd.xlane.f32.xlu1 %v4548_v25  ;;  %v6292_v25 = vld [vmem:[%s9386_s20] ss:$0 sm:$0xff] }
0x3d9c   :  { %v7557_v32 = vpop.eup %7556 }
0x3d9d   :  { %v5654_v33 = vmul.f32 %v7557_v32, %v5638_v40 }
0x3d9e   :  { %v7559_v13 = vpop.eup %7558 }
0x3d9f   :  { %v5656_v59 = vmul.f32 %v8970_v62, %v5654_v33  ;;  %v5655_v17 = vmul.f32 %v7559_v13, %v5639_v2  ;;  %v7404_v13 = vld [vmem:[%s9389_s23] sm:$0xff]  }
0x3da1   :  { %v5657_v44 = vmul.f32 %v8970_v62, %v5655_v17  ;;  %v5658_v49 = vadd.f32 %v8976_v0, %v5656_v59  ;;  %v7405_v17 = vld [vmem:[%s9389_s23 + $0x8] sm:$0xff]  }
0x3da3   :  { %v5659_v50 = vadd.f32 %v8976_v0, %v5657_v44  ;;  %v7406_v44 = vld [vmem:[%s9389_s23 + $0x10] sm:$0xff]  }
0x3da5   :  { %v5660_v24 = vpack.c.bf16 %v5659_v50, %v5658_v49  ;;  %v6293_v50 = vld [vmem:[%s9435_s8] ss:$0 sm:$0xff] }
0x3da7   :  { %7236 = vmatmul.mubr.msk.bf16.vlgmr.msra.gmra.mrb[184].mxu1 %vm126_vm2, %v5660_v24 }
0x3da8   :  { %7255 = vmatprep.mubr.msk.bf16.mxu1 %vm7620_vm0, %v7619_v1  ;;  %7252 = vmatpush3.bf16.msra.mxu1 %v7402_v56 }
0x3da9   :  { %7253 = vmatprep.subr.bf16.mxu1 %v7619_v1 }
0x3dac   :  { %7254 = vmatpush3.bf16.msra.mxu1 %v7403_v26 }
0x3dad   :  { %7259 = vmatprep.subr.bf16.mxu1 %v7619_v1 }
0x3e28   :  { %v4550_v23 = vpop.xlane.xlu1 %4549 }
0x3e29   :  { %v4551_v41 = vmul.f32 0.03125, %v4550_v23 }
0x3e2b   :  { %v4552_v15 = vadd.f32 1e-05, %v4551_v41 }
0x3e2d   :  { %7560 = vrsqrt.f32 %v4552_v15 }
0x3e37   :  { %v7561_v45 = vpop.eup %7560 }
0x3e38   :  { %v4554_v36 = vmul.f32 %v7561_v45, %v4546_v34  ;;  %v6291_v34 = vld [vmem:[%s9385_s19] ss:$0 sm:$0xff] }
0x3e3a   :  { %v4561_v58 = vmul.f32 %v6266_v38, %v4554_v36 }
0x3e3c   :  { %v4568_v2 = vadd.f32 %v6267_v54, %v4561_v58 }
0x3e7a   :  { %v5698_v31 = vpop.f32.mrb[184].mxu1 }
0x3e7b   :  { %v5699_v37 = vadd.f32 %v9042_v42, %v5698_v31  ;;  %v7237_v16 = vpop.f32.mrb[185].mxu1 }
0x3e7c   :  { %v5701_v11 = vpop.f32.mrb[186].mxu1 }
0x3e7d   :  { %v5702_v21 = vadd.f32 %v9042_v42, %v5701_v11  ;;  %v7238_v61 = vpop.f32.mrb[187].mxu1  ;;  %v5705_v35 = vmax.f32 %v5699_v37, 0.0 }
0x3e7f   :  { %v5706_v62 = vmax.f32 %v5702_v21, 0.0 }
0x3e81   :  { %v5707_v4 = vpack.c.bf16 %v5706_v62, %v5705_v35 }
0x3e83   :  { %7248 = vmatmul.mubr.msk.bf16.vlgmr.msra.gmra.mrb[176].mxu0 %vm1642_vm11, %v5707_v4 }
0x3f56   :  { %v5745_v0 = vpop.f32.mrb[176].mxu0 }
0x3f57   :  { %v5746_v10 = vadd.f32 %v6258_v39, %v5745_v0  ;;  %v7249_v43 = vpop.f32.mrb[177].mxu0 }
0x3f58   :  { %v5748_v47 = vpop.f32.mrb[178].mxu0 }
0x3f59   :  { %v5751_v51 = vadd.f32 %v5746_v10, %v5658_v49  ;;  %v7250_v52 = vpop.f32.mrb[179].mxu0  ;;  %v7407_v49 = vld [vmem:[%s9389_s23 + $0x18] sm:$0xff]   ;;  %s5960_s23 = sshll.u32 %s7625_s4, 4  ;;  %s5961_s23 = int_to_ptr.vmem [resolvable:$true] %s5960_s23 }
0x3f5a   :  { %s7595_s6 = scalar_lea.vmem %s5961_s23, 32  ;;  %p7600_p1 = scmp.lt.s32.totalorder %s5961_s23, %s5961_s23 }
0x3f5b   :  { %v5752_v27 = vsel %vm126_vm2, %v5751_v51, 0.0  ;;  %p7596_p0 = scmp.ne.s32.totalorder %s5961_s23, %s7595_s6  ;;  %p7601_p2 = scmp.lt.s32.totalorder %s7595_s6, %s7595_s6 }
0x3f5c   :  { %5753 = vadd.xlane.f32.xlu0 %v5752_v27 }
0x3f5d   :  { %p7602_p3 = por %p7601_p2, %p7600_p1 }
0x3f5f   :  { %p7603_p4 = pnand %p7602_p3, %p7596_p0 }
0x3fe9   :  { %v5754_v7 = vpop.xlane.xlu0 %5753 }
0x3fea   :  { %v5755_v48 = vmul.f32 0.03125, %v5754_v7 }
0x3fec   :  { %v5756_v19 = vsub.f32 %v5751_v51, %v5755_v48 }
0x3fee   :  { %v5757_v57 = vmul.f32 %v5756_v19, %v5756_v19 }
0x3ff0   :  { %v5758_v42 = vsel %vm126_vm2, %v5757_v57, 0.0 }
0x3ff1   :  { %5759 = vadd.xlane.f32.xlu0 %v5758_v42 }
0x407e   :  { %v5760_v46 = vpop.xlane.xlu0 %5759 }
0x407f   :  { %v5761_v6 = vmul.f32 0.03125, %v5760_v46 }
0x4081   :  { %v5762_v28 = vadd.f32 1e-05, %v5761_v6 }
0x4083   :  { %7562 = vrsqrt.f32 %v5762_v28 }
0x408d   :  { %v7563_v14 = vpop.eup %7562 }
0x408e   :  { %v5764_v39 = vmul.f32 %v7563_v14, %v5756_v19 }
0x4090   :  { %v5765_v40 = vmul.f32 %v6266_v38, %v5764_v39 }
0x4092   :  { %v5766_v60 = vadd.f32 %v6267_v54, %v5765_v40 }
0x4094   :  { %v5768_v12 = vrot.slane %v5766_v60, 7 }
0x4096   :  { %v5770_v9 = vsel %vm89_vm1, %v4568_v2, %v5768_v12 }
0x4097   :  { %v5774_v22 = vsel %vm5773_vm12, %v5770_v9, 0.0 }
0x4098   :  { %5775 = vadd.xlane.f32.xlu0 %v5774_v22 }
0x4125   :  { %v5776_v20 = vpop.xlane.xlu0 %5775 }
0x4126   :  { %v5777_v30 = vmul.f32 0.03125, %v5776_v20 }
0x4128   :  { %v5778_v3 = vsub.f32 %v5770_v9, %v5777_v30 }
0x412a   :  { %v5779_v8 = vmul.f32 %v5778_v3, %v5778_v3 }
0x412c   :  { %v5780_v55 = vsel %vm5773_vm12, %v5779_v8, 0.0 }
0x412d   :  { %5781 = vadd.xlane.f32.xlu1 %v5780_v55 }
0x41ba   :  { %v5782_v18 = vpop.xlane.xlu1 %5781 }
0x41bb   :  { %v5783_v5 = vmul.f32 0.03125, %v5782_v18 }
0x41bd   :  { %v5784_v29 = vadd.f32 1e-05, %v5783_v5 }
0x41bf   :  { %7564 = vrsqrt.f32 %v5784_v29 }
0x41c9   :  { %v7565_v53 = vpop.eup %7564 }
0x41ca   :  { %v5786_v63 = vmul.f32 %v7565_v53, %v5778_v3 }
0x41cc   :  { %v5793_v32 = vmul.f32 %v6291_v34, %v5786_v63 }
0x41ce   :  { %v5800_v33 = vadd.f32 %v6292_v25, %v5793_v32 }
0x41d0   :  { %v5801_v59 = vpack.c.bf16 %v5800_v33, %v5800_v33 }
0x41d2   :  { %7256 = vmatmul.mubr.msk.bf16.vlgmr.msra.gmra.mrb[188].mxu1 %vm126_vm2, %v5801_v59 }
0x41d3   :  { %7260 = vmatpush3.bf16.msra.mxu1 %v7404_v13  ;;  %7267 = vmatprep.mubr.msk.bf16.mxu1 %vm7620_vm0, %v7619_v1 }
0x41d4   :  { %7261 = vmatprep.subr.bf16.mxu1 %v7619_v1 }
0x41d7   :  { %7262 = vmatpush3.bf16.msra.mxu1 %v7405_v17 }
0x41d8   :  { %7263 = vmatprep.subr.bf16.mxu1 %v7619_v1 }
0x41db   :  { %7264 = vmatpush3.bf16.msra.mxu1 %v7406_v44 }
0x41dc   :  { %7265 = vmatprep.subr.bf16.mxu1 %v7619_v1  ;;  %v6297_v1 = vld [vmem:[%s9436_s13] ss:$0 sm:$0xff] }
0x41df   :  { %7266 = vmatpush3.bf16.msra.mxu1 %v7407_v49 }
0x42a5   :  { %v5862_v24 = vpop.f32.mrb[188].mxu1 }
0x42a6   :  { %v5863_v31 = vadd.f32 %v6293_v50, %v5862_v24  ;;  %v7257_v37 = vpop.f32.mrb[189].mxu1 }
0x42a7   :  { %v5865_v16 = vpop.f32.mrb[190].mxu1 }
0x42a8   :  { %v5868_v11 = vmax.f32 %v5863_v31, 0.0  ;;  %v7258_v21 = vpop.f32.mrb[191].mxu1 }
0x42aa   :  { %v5869_v61 = vpack.c.bf16 %v5868_v11, %v5868_v11 }
0x42ac   :  { %7268 = vmatmul.mubr.msk.bf16.vlgmr.msra.gmra.mrb[192].mxu1 %vm1642_vm11, %v5869_v61 }
0x437f   :  { %v5946_v35 = vpop.f32.mrb[192].mxu1 }
0x4380   :  { %v5947_v62 = vadd.f32 %v6297_v1, %v5946_v35  ;;  %v7269_v4 = vpop.f32.mrb[193].mxu1 }
0x4381   :  { %v5949_v0 = vpop.f32.mrb[194].mxu1 }
0x4382   :  { %v7270_v10 = vpop.f32.mrb[195].mxu1  ;;  %5953 = vst.msk [vmem:[#allocation2] sm:$0x3] %vm5952_vm13, %v5947_v62 }
0x4383   :  { %7606 = shalt.err (!%p7603_p4)
}
0x4384   :  { %s9437_s16 = sld [smem:[#allocation17_spill]] }
0x438a   :  { %s7607_s0 = scalar_lea.hbm %s9437_s16, 32 }
0x438b   :  { %p7608_p5 = scmp.ne.s32.totalorder %s9437_s16, %s7607_s0  ;;  %p7611_p6 = scmp.lt.u32.totalorder %s7607_s0, %s9437_s16 }
0x438d   :  { %p7613_p7 = pnand %p7611_p6, %p7608_p5 }
0x438f   :  { %7616 = shalt.err (!%p7613_p7)
}
0x4390   :  { %5963 = dma.vmem_to_hbm [thread:$0]  %s5961_s23, 32, %s9437_s16, [#allocation3]  }
0x4391   :  { %7617 = dma.done.wait [#allocation3], 32  }
0x4392   :  { %7618 = vsyncadd [#allocation3], 4294967264 }
0x4393   :  { %5967 = vsyncpa [#allocation3], 1 }

</bundles_post_ra>
